<compile_context>
chip_gen: v7x
topology: tpu7x:2x2x1
jax: 0.10.0
libtpu: 0.0.40
codegen_flags: <defaults>
</compile_context>

<pallas_src>
import functools

import jax
import jax.numpy as jnp
import numpy as np
from jax.experimental import pallas as pl
from jax.experimental.pallas import tpu as pltpu


def _round_up(x, m):
    return ((x + m - 1) // m) * m


# ----------------------------------------------------------------------------
# Separable box mean over a reflect-padded plane (value-level shifted adds).
# tp: (H+2r, >=W+2r) value whose first W+2r columns hold the padded plane.
# Returns the (H, W) mean over (2r+1)^2 windows.
# ----------------------------------------------------------------------------
def _box_from_padded(tp, H, W, r):
    v = tp[0:H, :]
    for d in range(1, 2 * r + 1):                 # vertical (sublane) pass
        v = v + tp[d:d + H, :]
    o = v[:, 0:W]
    for d in range(1, 2 * r + 1):                 # horizontal (lane) pass
        o = o + v[:, d:d + W]
    return o * (1.0 / float((2 * r + 1) ** 2))


# ----------------------------------------------------------------------------
# Stage 1: products + all first-round box means, fused, one grid step per batch.
# ----------------------------------------------------------------------------
def _stage1_kernel(Ip_ref, pp_ref, mI_ref, mp_ref, mIp_ref, mII_ref,
                   *, C, H, W, r):
    Ich = [Ip_ref[0, c] for c in range(C)]        # (HP, WP), zero beyond W+2r
    pch = pp_ref[0, 0]
    box = lambda t: _box_from_padded(t, H, W, r)

    for c in range(C):
        mI_ref[0, c, :, 0:W] = box(Ich[c])
    mp_ref[0, 0, :, 0:W] = box(pch)
    for c in range(C):
        mIp_ref[0, c, :, 0:W] = box(Ich[c] * pch)
    k = 0
    for i in range(C):
        for j in range(i, C):
            mII_ref[0, k, :, 0:W] = box(Ich[i] * Ich[j])
            k += 1


# ----------------------------------------------------------------------------
# Stage 2: fused covariance + per-pixel CxC solve, native BCHW layout.
# ----------------------------------------------------------------------------
def _solve_kernel(mI_ref, mp_ref, mIp_ref, mII_ref, a_ref, b_ref, *, C, eps):
    mI = [mI_ref[0, c] for c in range(C)]
    mp = mp_ref[0, 0]
    rhs = [mIp_ref[0, c] - mI[c] * mp for c in range(C)]   # cov_Ip

    s = {}
    k = 0
    for i in range(C):
        for j in range(i, C):
            v = mII_ref[0, k] - mI[i] * mI[j]
            if i == j:
                v = v + eps
            s[(i, j)] = v                                   # S = cov_II + eps*I
            k += 1

    if C == 3:
        # closed-form symmetric 3x3 solve (adjugate + single divide); cofactors
        # are consumed immediately to limit live (TH,TW) temporaries.
        s00, s01, s02 = s[(0, 0)], s[(0, 1)], s[(0, 2)]
        s11, s12, s22 = s[(1, 1)], s[(1, 2)], s[(2, 2)]
        r0, r1, r2 = rhs
        c00 = s11 * s22 - s12 * s12
        c01 = s02 * s12 - s01 * s22
        c02 = s01 * s12 - s11 * s02
        det = s00 * c00 + s01 * c01 + s02 * c02
        a0 = c00 * r0 + c01 * r1 + c02 * r2
        c11 = s00 * s22 - s02 * s02
        c12 = s01 * s02 - s00 * s12
        a1 = c01 * r0 + c11 * r1 + c12 * r2
        c22 = s00 * s11 - s01 * s01
        a2 = c02 * r0 + c12 * r1 + c22 * r2
        inv_det = 1.0 / det                                 # exact divide (tolerance-safe)
        a_vals = [a0 * inv_det, a1 * inv_det, a2 * inv_det]
    else:
        # Gauss-Jordan without pivoting: safe because S is SPD (eps*I added).
        A = [[s[(min(i, j), max(i, j))] for j in range(C)] for i in range(C)]
        bv = list(rhs)
        for kk in range(C):
            inv = 1.0 / A[kk][kk]
            for j in range(kk + 1, C):
                A[kk][j] = A[kk][j] * inv
            bv[kk] = bv[kk] * inv
            for i in range(C):
                if i == kk:
                    continue
                f = A[i][kk]
                for j in range(kk + 1, C):
                    A[i][j] = A[i][j] - f * A[kk][j]
                bv[i] = bv[i] - f * bv[kk]
        a_vals = bv

    b_val = mp
    for c in range(C):
        a_ref[0, c] = a_vals[c]
        b_val = b_val - a_vals[c] * mI[c]
    b_ref[0, 0] = b_val                                     # b = mean_p - a . mean_I


# ----------------------------------------------------------------------------
# Stage 3: second box filter + epilogue, fused: q = sum_c box(a_c)*I_c + box(b).
# ----------------------------------------------------------------------------
def _stage3_kernel(ap_ref, bp_ref, Ip_ref, q_ref, *, C, H, W, r):
    q = _box_from_padded(bp_ref[0, 0], H, W, r)
    for c in range(C):
        mean_ac = _box_from_padded(ap_ref[0, c], H, W, r)
        Ic = Ip_ref[0, c]
        q = q + mean_ac * Ic[r:r + H, r:r + W]
    q_ref[0, 0, :, 0:W] = q


# ----------------------------------------------------------------------------
# Helpers.
# ----------------------------------------------------------------------------
def _pick_tile(dim, align, cap):
    """Largest divisor of `dim` that is a multiple of `align` and <= cap (else full dim)."""
    if dim <= cap or dim % align != 0:
        return dim
    best = align
    t = align
    while t <= cap:
        if dim % t == 0:
            best = t
        t += align
    return best


def _params(sem, need_bytes):
    kw = dict(dimension_semantics=sem)
    # Raise the scoped-VMEM limit only when the estimate (double-buffered blocks
    # + in-kernel temporaries) could exceed v5e's 16 MiB default.
    if need_bytes > 12 * 1024 * 1024:
        kw["vmem_limit_bytes"] = int(min(need_bytes + (2 << 20), 96 * 1024 * 1024))
    return pltpu.CompilerParams(**kw)


# ----------------------------------------------------------------------------
# Full ColorGuidedFilter forward.
# ----------------------------------------------------------------------------
def color_guided_filter(I, p, radius, epsilon=0.01):
    B, C, H, W = I.shape
    r = int(radius)
    assert 1 <= r < H and r < W, "reflect padding requires 1 <= radius < min(H, W)"
    U = C * (C + 1) // 2
    I = I.astype(jnp.float32)
    p = p.astype(jnp.float32)

    HP = H + 2 * r
    WP = _round_up(W + 2 * r, 128)   # lane-dense width for reflect-padded inputs
    WO = _round_up(W, 128)           # lane-dense width for intermediates / output

    def pad_reflect(x):              # (B, c, H, W) -> (B, c, HP, WP)
        xr = jnp.pad(x, ((0, 0), (0, 0), (r, r), (r, r)), mode="reflect")
        return jnp.pad(xr, ((0, 0), (0, 0), (0, 0), (0, WP - (W + 2 * r))))

    Ipad = pad_reflect(I)
    ppad = pad_reflect(p)

    im4 = lambda b: (b, 0, 0, 0)

    # ---- stage 1: fused products + box means --------------------------------
    need1 = (2 * ((C + 1) * HP * WP + (2 * C + 1 + U) * H * WO)
             + 8 * HP * WP) * 4
    mean_I, mean_p, mean_Ip, mean_II = pl.pallas_call(
        functools.partial(_stage1_kernel, C=C, H=H, W=W, r=r),
        out_shape=(
            jax.ShapeDtypeStruct((B, C, H, WO), jnp.float32),
            jax.ShapeDtypeStruct((B, 1, H, WO), jnp.float32),
            jax.ShapeDtypeStruct((B, C, H, WO), jnp.float32),
            jax.ShapeDtypeStruct((B, U, H, WO), jnp.float32),
        ),
        grid=(B,),
        in_specs=[
            pl.BlockSpec((1, C, HP, WP), im4),
            pl.BlockSpec((1, 1, HP, WP), im4),
        ],
        out_specs=(
            pl.BlockSpec((1, C, H, WO), im4),
            pl.BlockSpec((1, 1, H, WO), im4),
            pl.BlockSpec((1, C, H, WO), im4),
            pl.BlockSpec((1, U, H, WO), im4),
        ),
        compiler_params=_params(("parallel",), need1),
    )(Ipad, ppad)

    # ---- stage 2: fused covariance + per-pixel CxC solve ---------------------
    TH = _pick_tile(H, 8, 256)
    TW = _pick_tile(WO, 128, 512)
    need2 = (2 * (2 * C + 1 + U + C + 1) + 26) * TH * TW * 4
    imt = lambda b, h, w: (b, 0, h, w)
    a, b_img = pl.pallas_call(
        functools.partial(_solve_kernel, C=C, eps=float(epsilon)),
        out_shape=(
            jax.ShapeDtypeStruct((B, C, H, WO), jnp.float32),
            jax.ShapeDtypeStruct((B, 1, H, WO), jnp.float32),
        ),
        grid=(B, H // TH, WO // TW),
        in_specs=[
            pl.BlockSpec((1, C, TH, TW), imt),
            pl.BlockSpec((1, 1, TH, TW), imt),
            pl.BlockSpec((1, C, TH, TW), imt),
            pl.BlockSpec((1, U, TH, TW), imt),
        ],
        out_specs=(
            pl.BlockSpec((1, C, TH, TW), imt),
            pl.BlockSpec((1, 1, TH, TW), imt),
        ),
        compiler_params=_params(("parallel", "parallel", "parallel"), need2),
    )(mean_I, mean_p, mean_Ip, mean_II)

    # ---- stage 3: second box filter + fused epilogue -------------------------
    def pad_reflect_valid(x):        # (B, c, H, WO) -> (B, c, HP, WP), valid cols only
        xr = jnp.pad(x[:, :, :, :W], ((0, 0), (0, 0), (r, r), (r, r)), mode="reflect")
        return jnp.pad(xr, ((0, 0), (0, 0), (0, 0), (0, WP - (W + 2 * r))))

    apad = pad_reflect_valid(a)
    bpad = pad_reflect_valid(b_img)
    need3 = (2 * ((2 * C + 1) * HP * WP + H * WO) + 8 * HP * WP) * 4
    q = pl.pallas_call(
        functools.partial(_stage3_kernel, C=C, H=H, W=W, r=r),
        out_shape=jax.ShapeDtypeStruct((B, 1, H, WO), jnp.float32),
        grid=(B,),
        in_specs=[
            pl.BlockSpec((1, C, HP, WP), im4),
            pl.BlockSpec((1, 1, HP, WP), im4),
            pl.BlockSpec((1, C, HP, WP), im4),
        ],
        out_specs=pl.BlockSpec((1, 1, H, WO), im4),
        compiler_params=_params(("parallel",), need3),
    )(apad, bpad, Ipad)

    return q[:, :, :, :W]


# ----------------------------------------------------------------------------
# Pure-JAX reference (literal translation of the PyTorch module) for checking.
# ----------------------------------------------------------------------------
def _diff_x(x, r):
    left = x[..., r:2 * r + 1, :]
    middle = x[..., 2 * r + 1:, :] - x[..., :-2 * r - 1, :]
    right = x[..., -1:, :] - x[..., -2 * r - 1:-r - 1, :]
    return jnp.concatenate([left, middle, right], axis=-2)


def _diff_y(x, r):
    left = x[..., r:2 * r + 1]
    middle = x[..., 2 * r + 1:] - x[..., :-2 * r - 1]
    right = x[..., -1:] - x[..., -2 * r - 1:-r - 1]
    return jnp.concatenate([left, middle, right], axis=-1)


def _box_ref(x, r):
    pad = [(0, 0)] * (x.ndim - 2) + [(r, r), (r, r)]
    x = jnp.pad(x, pad, mode="reflect")
    x = jnp.cumsum(x, axis=-2)
    x = _diff_x(x, r)
    x = jnp.cumsum(x, axis=-1)
    x = _diff_y(x, r)
    return x[..., r:-r, r:-r] / float((2 * r + 1) ** 2)


def _forward_ref(I, p, radius, epsilon):
    B, C, H, W = I.shape
    box = lambda t: _box_ref(t, radius)
    mean_I = box(I)
    mean_p = box(p)
    mean_Ip = box(I * p)
    cov_Ip = mean_Ip - mean_I * mean_p
    mean_II = box(I[:, :, None] * I[:, None])
    cov_II = mean_II - mean_I[:, :, None] * mean_I[:, None]
    S = cov_II + epsilon * jnp.eye(C, dtype=I.dtype)[None, :, :, None, None]
    Smat = jnp.transpose(S, (0, 3, 4, 1, 2)).reshape(-1, C, C)
    rhs = jnp.transpose(cov_Ip, (0, 2, 3, 1)).reshape(-1, C, 1)
    a = jnp.linalg.solve(Smat, rhs)
    a = jnp.transpose(a.reshape(B, H, W, C), (0, 3, 1, 2))
    a_mean_I = jnp.sum(a * mean_I, axis=1)
    b = mean_p - a_mean_I[:, None]
    mean_a = box(a)
    mean_b = box(b)
    q = jnp.sum(mean_a * I, axis=1, keepdims=True) + mean_b
    return q


if __name__ == "__main__":
    key = jax.random.PRNGKey(0)
    k1, k2 = jax.random.split(key)
    B, C, H, W = 2, 3, 16, 16
    radius, epsilon = 2, 0.01

    I = jax.random.uniform(k1, (B, C, H, W), dtype=jnp.float32)
    p = jax.random.uniform(k2, (B, 1, H, W), dtype=jnp.float32)

    fwd = jax.jit(color_guided_filter, static_argnums=(2, 3))
    q = fwd(I, p, radius, epsilon)
    q = jax.block_until_ready(q)

    q_ref = _forward_ref(I, p, radius, epsilon)
    assert q.shape == (B, 1, H, W)
    err = float(jnp.max(jnp.abs(q - q_ref)))
    assert np.isfinite(err) and err < 5e-3, f"max abs error {err}"

    print("KERNEL_OK")
</pallas_src>

<mosaic_0001>
module attributes {stable_mosaic.version = 11 : i64} {
  func.func @_solve_kernel(%arg0: i32, %arg1: i32, %arg2: i32, %arg3: memref<1x3x16x128xf32, #tpu.memory_space<vmem>>, %arg4: memref<1x1x16x128xf32, #tpu.memory_space<vmem>>, %arg5: memref<1x3x16x128xf32, #tpu.memory_space<vmem>>, %arg6: memref<1x6x16x128xf32, #tpu.memory_space<vmem>>, %arg7: memref<1x3x16x128xf32, #tpu.memory_space<vmem>>, %arg8: memref<1x1x16x128xf32, #tpu.memory_space<vmem>>) attributes {dimension_semantics = [#tpu.dimension_semantics<parallel>, #tpu.dimension_semantics<parallel>, #tpu.dimension_semantics<parallel>], iteration_bounds = array<i64: 2, 1, 1>, scalar_prefetch = 0 : i64, scratch_operands = 0 : i64, tpu.core_type = #tpu.core_type<tc>, window_params = [{transform_indices = @transform_0, window_bounds = array<i64: 1, 3, 16, 128>}, {transform_indices = @transform_1, window_bounds = array<i64: 1, 1, 16, 128>}, {transform_indices = @transform_2, window_bounds = array<i64: 1, 3, 16, 128>}, {transform_indices = @transform_3, window_bounds = array<i64: 1, 6, 16, 128>}, {transform_indices = @transform_4, window_bounds = array<i64: 1, 3, 16, 128>}, {transform_indices = @transform_5, window_bounds = array<i64: 1, 1, 16, 128>}]} {
    %c0 = arith.constant 0 : index
    %c0_0 = arith.constant 0 : index
    %c0_1 = arith.constant 0 : index
    %c0_2 = arith.constant 0 : index
    %0 = vector.load %arg3[%c0, %c0_0, %c0_1, %c0_2] : memref<1x3x16x128xf32, #tpu.memory_space<vmem>>, vector<1x1x16x128xf32>
    %1 = vector.shape_cast %0 : vector<1x1x16x128xf32> to vector<16x128xf32>
    %c0_3 = arith.constant 0 : index
    %c1 = arith.constant 1 : index
    %c0_4 = arith.constant 0 : index
    %c0_5 = arith.constant 0 : index
    %2 = vector.load %arg3[%c0_3, %c1, %c0_4, %c0_5] : memref<1x3x16x128xf32, #tpu.memory_space<vmem>>, vector<1x1x16x128xf32>
    %3 = vector.shape_cast %2 : vector<1x1x16x128xf32> to vector<16x128xf32>
    %c0_6 = arith.constant 0 : index
    %c2 = arith.constant 2 : index
    %c0_7 = arith.constant 0 : index
    %c0_8 = arith.constant 0 : index
    %4 = vector.load %arg3[%c0_6, %c2, %c0_7, %c0_8] : memref<1x3x16x128xf32, #tpu.memory_space<vmem>>, vector<1x1x16x128xf32>
    %5 = vector.shape_cast %4 : vector<1x1x16x128xf32> to vector<16x128xf32>
    %c0_9 = arith.constant 0 : index
    %c0_10 = arith.constant 0 : index
    %c0_11 = arith.constant 0 : index
    %c0_12 = arith.constant 0 : index
    %6 = vector.load %arg4[%c0_9, %c0_10, %c0_11, %c0_12] : memref<1x1x16x128xf32, #tpu.memory_space<vmem>>, vector<1x1x16x128xf32>
    %7 = vector.shape_cast %6 : vector<1x1x16x128xf32> to vector<16x128xf32>
    %c0_13 = arith.constant 0 : index
    %c0_14 = arith.constant 0 : index
    %c0_15 = arith.constant 0 : index
    %c0_16 = arith.constant 0 : index
    %8 = vector.load %arg5[%c0_13, %c0_14, %c0_15, %c0_16] : memref<1x3x16x128xf32, #tpu.memory_space<vmem>>, vector<1x1x16x128xf32>
    %9 = vector.shape_cast %8 : vector<1x1x16x128xf32> to vector<16x128xf32>
    %10 = arith.mulf %1, %7 : vector<16x128xf32>
    %11 = arith.subf %9, %10 : vector<16x128xf32>
    %c0_17 = arith.constant 0 : index
    %c1_18 = arith.constant 1 : index
    %c0_19 = arith.constant 0 : index
    %c0_20 = arith.constant 0 : index
    %12 = vector.load %arg5[%c0_17, %c1_18, %c0_19, %c0_20] : memref<1x3x16x128xf32, #tpu.memory_space<vmem>>, vector<1x1x16x128xf32>
    %13 = vector.shape_cast %12 : vector<1x1x16x128xf32> to vector<16x128xf32>
    %14 = arith.mulf %3, %7 : vector<16x128xf32>
    %15 = arith.subf %13, %14 : vector<16x128xf32>
    %c0_21 = arith.constant 0 : index
    %c2_22 = arith.constant 2 : index
    %c0_23 = arith.constant 0 : index
    %c0_24 = arith.constant 0 : index
    %16 = vector.load %arg5[%c0_21, %c2_22, %c0_23, %c0_24] : memref<1x3x16x128xf32, #tpu.memory_space<vmem>>, vector<1x1x16x128xf32>
    %17 = vector.shape_cast %16 : vector<1x1x16x128xf32> to vector<16x128xf32>
    %18 = arith.mulf %5, %7 : vector<16x128xf32>
    %19 = arith.subf %17, %18 : vector<16x128xf32>
    %c0_25 = arith.constant 0 : index
    %c0_26 = arith.constant 0 : index
    %c0_27 = arith.constant 0 : index
    %c0_28 = arith.constant 0 : index
    %20 = vector.load %arg6[%c0_25, %c0_26, %c0_27, %c0_28] : memref<1x6x16x128xf32, #tpu.memory_space<vmem>>, vector<1x1x16x128xf32>
    %21 = vector.shape_cast %20 : vector<1x1x16x128xf32> to vector<16x128xf32>
    %22 = arith.mulf %1, %1 : vector<16x128xf32>
    %23 = arith.subf %21, %22 : vector<16x128xf32>
    %cst = arith.constant 0.00999999977 : f32
    %24 = vector.broadcast %cst : f32 to vector<16x128xf32>
    %25 = arith.addf %23, %24 : vector<16x128xf32>
    %c0_29 = arith.constant 0 : index
    %c1_30 = arith.constant 1 : index
    %c0_31 = arith.constant 0 : index
    %c0_32 = arith.constant 0 : index
    %26 = vector.load %arg6[%c0_29, %c1_30, %c0_31, %c0_32] : memref<1x6x16x128xf32, #tpu.memory_space<vmem>>, vector<1x1x16x128xf32>
    %27 = vector.shape_cast %26 : vector<1x1x16x128xf32> to vector<16x128xf32>
    %28 = arith.mulf %1, %3 : vector<16x128xf32>
    %29 = arith.subf %27, %28 : vector<16x128xf32>
    %c0_33 = arith.constant 0 : index
    %c2_34 = arith.constant 2 : index
    %c0_35 = arith.constant 0 : index
    %c0_36 = arith.constant 0 : index
    %30 = vector.load %arg6[%c0_33, %c2_34, %c0_35, %c0_36] : memref<1x6x16x128xf32, #tpu.memory_space<vmem>>, vector<1x1x16x128xf32>
    %31 = vector.shape_cast %30 : vector<1x1x16x128xf32> to vector<16x128xf32>
    %32 = arith.mulf %1, %5 : vector<16x128xf32>
    %33 = arith.subf %31, %32 : vector<16x128xf32>
    %c0_37 = arith.constant 0 : index
    %c3 = arith.constant 3 : index
    %c0_38 = arith.constant 0 : index
    %c0_39 = arith.constant 0 : index
    %34 = vector.load %arg6[%c0_37, %c3, %c0_38, %c0_39] : memref<1x6x16x128xf32, #tpu.memory_space<vmem>>, vector<1x1x16x128xf32>
    %35 = vector.shape_cast %34 : vector<1x1x16x128xf32> to vector<16x128xf32>
    %36 = arith.mulf %3, %3 : vector<16x128xf32>
    %37 = arith.subf %35, %36 : vector<16x128xf32>
    %cst_40 = arith.constant 0.00999999977 : f32
    %38 = vector.broadcast %cst_40 : f32 to vector<16x128xf32>
    %39 = arith.addf %37, %38 : vector<16x128xf32>
    %c0_41 = arith.constant 0 : index
    %c4 = arith.constant 4 : index
    %c0_42 = arith.constant 0 : index
    %c0_43 = arith.constant 0 : index
    %40 = vector.load %arg6[%c0_41, %c4, %c0_42, %c0_43] : memref<1x6x16x128xf32, #tpu.memory_space<vmem>>, vector<1x1x16x128xf32>
    %41 = vector.shape_cast %40 : vector<1x1x16x128xf32> to vector<16x128xf32>
    %42 = arith.mulf %3, %5 : vector<16x128xf32>
    %43 = arith.subf %41, %42 : vector<16x128xf32>
    %c0_44 = arith.constant 0 : index
    %c5 = arith.constant 5 : index
    %c0_45 = arith.constant 0 : index
    %c0_46 = arith.constant 0 : index
    %44 = vector.load %arg6[%c0_44, %c5, %c0_45, %c0_46] : memref<1x6x16x128xf32, #tpu.memory_space<vmem>>, vector<1x1x16x128xf32>
    %45 = vector.shape_cast %44 : vector<1x1x16x128xf32> to vector<16x128xf32>
    %46 = arith.mulf %5, %5 : vector<16x128xf32>
    %47 = arith.subf %45, %46 : vector<16x128xf32>
    %cst_47 = arith.constant 0.00999999977 : f32
    %48 = vector.broadcast %cst_47 : f32 to vector<16x128xf32>
    %49 = arith.addf %47, %48 : vector<16x128xf32>
    %50 = arith.mulf %39, %49 : vector<16x128xf32>
    %51 = arith.mulf %43, %43 : vector<16x128xf32>
    %52 = arith.subf %50, %51 : vector<16x128xf32>
    %53 = arith.mulf %33, %43 : vector<16x128xf32>
    %54 = arith.mulf %29, %49 : vector<16x128xf32>
    %55 = arith.subf %53, %54 : vector<16x128xf32>
    %56 = arith.mulf %29, %43 : vector<16x128xf32>
    %57 = arith.mulf %39, %33 : vector<16x128xf32>
    %58 = arith.subf %56, %57 : vector<16x128xf32>
    %59 = arith.mulf %25, %52 : vector<16x128xf32>
    %60 = arith.mulf %29, %55 : vector<16x128xf32>
    %61 = arith.addf %59, %60 : vector<16x128xf32>
    %62 = arith.mulf %33, %58 : vector<16x128xf32>
    %63 = arith.addf %61, %62 : vector<16x128xf32>
    %64 = arith.mulf %52, %11 : vector<16x128xf32>
    %65 = arith.mulf %55, %15 : vector<16x128xf32>
    %66 = arith.addf %64, %65 : vector<16x128xf32>
    %67 = arith.mulf %58, %19 : vector<16x128xf32>
    %68 = arith.addf %66, %67 : vector<16x128xf32>
    %69 = arith.mulf %25, %49 : vector<16x128xf32>
    %70 = arith.mulf %33, %33 : vector<16x128xf32>
    %71 = arith.subf %69, %70 : vector<16x128xf32>
    %72 = arith.mulf %29, %33 : vector<16x128xf32>
    %73 = arith.mulf %25, %43 : vector<16x128xf32>
    %74 = arith.subf %72, %73 : vector<16x128xf32>
    %75 = arith.mulf %55, %11 : vector<16x128xf32>
    %76 = arith.mulf %71, %15 : vector<16x128xf32>
    %77 = arith.addf %75, %76 : vector<16x128xf32>
    %78 = arith.mulf %74, %19 : vector<16x128xf32>
    %79 = arith.addf %77, %78 : vector<16x128xf32>
    %80 = arith.mulf %25, %39 : vector<16x128xf32>
    %81 = arith.mulf %29, %29 : vector<16x128xf32>
    %82 = arith.subf %80, %81 : vector<16x128xf32>
    %83 = arith.mulf %58, %11 : vector<16x128xf32>
    %84 = arith.mulf %74, %15 : vector<16x128xf32>
    %85 = arith.addf %83, %84 : vector<16x128xf32>
    %86 = arith.mulf %82, %19 : vector<16x128xf32>
    %87 = arith.addf %85, %86 : vector<16x128xf32>
    %cst_48 = arith.constant 1.000000e+00 : f32
    %88 = vector.broadcast %cst_48 : f32 to vector<16x128xf32>
    %89 = arith.divf %88, %63 : vector<16x128xf32>
    %90 = arith.mulf %68, %89 : vector<16x128xf32>
    %91 = arith.mulf %79, %89 : vector<16x128xf32>
    %92 = arith.mulf %87, %89 : vector<16x128xf32>
    %c0_49 = arith.constant 0 : index
    %c0_50 = arith.constant 0 : index
    %c0_51 = arith.constant 0 : index
    %c0_52 = arith.constant 0 : index
    %93 = vector.load %arg7[%c0_49, %c0_50, %c0_51, %c0_52] : memref<1x3x16x128xf32, #tpu.memory_space<vmem>>, vector<1x1x16x128xf32>
    %94 = vector.shape_cast %93 : vector<1x1x16x128xf32> to vector<16x128xf32>
    %95 = vector.shape_cast %90 : vector<16x128xf32> to vector<1x1x16x128xf32>
    tpu.vector_store %arg7[%c0_49, %c0_50, %c0_51, %c0_52], %95 {strides = array<i32>} : memref<1x3x16x128xf32, #tpu.memory_space<vmem>>, vector<1x1x16x128xf32>,
    %96 = arith.mulf %90, %1 : vector<16x128xf32>
    %97 = arith.subf %7, %96 : vector<16x128xf32>
    %c0_53 = arith.constant 0 : index
    %c1_54 = arith.constant 1 : index
    %c0_55 = arith.constant 0 : index
    %c0_56 = arith.constant 0 : index
    %98 = vector.load %arg7[%c0_53, %c1_54, %c0_55, %c0_56] : memref<1x3x16x128xf32, #tpu.memory_space<vmem>>, vector<1x1x16x128xf32>
    %99 = vector.shape_cast %98 : vector<1x1x16x128xf32> to vector<16x128xf32>
    %100 = vector.shape_cast %91 : vector<16x128xf32> to vector<1x1x16x128xf32>
    tpu.vector_store %arg7[%c0_53, %c1_54, %c0_55, %c0_56], %100 {strides = array<i32>} : memref<1x3x16x128xf32, #tpu.memory_space<vmem>>, vector<1x1x16x128xf32>,
    %101 = arith.mulf %91, %3 : vector<16x128xf32>
    %102 = arith.subf %97, %101 : vector<16x128xf32>
    %c0_57 = arith.constant 0 : index
    %c2_58 = arith.constant 2 : index
    %c0_59 = arith.constant 0 : index
    %c0_60 = arith.constant 0 : index
    %103 = vector.load %arg7[%c0_57, %c2_58, %c0_59, %c0_60] : memref<1x3x16x128xf32, #tpu.memory_space<vmem>>, vector<1x1x16x128xf32>
    %104 = vector.shape_cast %103 : vector<1x1x16x128xf32> to vector<16x128xf32>
    %105 = vector.shape_cast %92 : vector<16x128xf32> to vector<1x1x16x128xf32>
    tpu.vector_store %arg7[%c0_57, %c2_58, %c0_59, %c0_60], %105 {strides = array<i32>} : memref<1x3x16x128xf32, #tpu.memory_space<vmem>>, vector<1x1x16x128xf32>,
    %106 = arith.mulf %92, %5 : vector<16x128xf32>
    %107 = arith.subf %102, %106 : vector<16x128xf32>
    %c0_61 = arith.constant 0 : index
    %c0_62 = arith.constant 0 : index
    %c0_63 = arith.constant 0 : index
    %c0_64 = arith.constant 0 : index
    %108 = vector.load %arg8[%c0_61, %c0_62, %c0_63, %c0_64] : memref<1x1x16x128xf32, #tpu.memory_space<vmem>>, vector<1x1x16x128xf32>
    %109 = vector.shape_cast %108 : vector<1x1x16x128xf32> to vector<16x128xf32>
    %110 = vector.shape_cast %107 : vector<16x128xf32> to vector<1x1x16x128xf32>
    tpu.vector_store %arg8[%c0_61, %c0_62, %c0_63, %c0_64], %110 {strides = array<i32>} : memref<1x1x16x128xf32, #tpu.memory_space<vmem>>, vector<1x1x16x128xf32>,
    return
  }
  func.func @transform_0(%arg0: i32, %arg1: i32, %arg2: i32) -> (i32, i32, i32, i32) {
    %c0_i32 = arith.constant 0 : i32
    %c0_i32_0 = arith.constant 0 : i32
    return %arg0, %c0_i32, %arg1, %arg2 : i32, i32, i32, i32
  }
  func.func @transform_1(%arg0: i32, %arg1: i32, %arg2: i32) -> (i32, i32, i32, i32) {
    %c0_i32 = arith.constant 0 : i32
    %c0_i32_0 = arith.constant 0 : i32
    return %arg0, %c0_i32, %arg1, %arg2 : i32, i32, i32, i32
  }
  func.func @transform_2(%arg0: i32, %arg1: i32, %arg2: i32) -> (i32, i32, i32, i32) {
    %c0_i32 = arith.constant 0 : i32
    %c0_i32_0 = arith.constant 0 : i32
    return %arg0, %c0_i32, %arg1, %arg2 : i32, i32, i32, i32
  }
  func.func @transform_3(%arg0: i32, %arg1: i32, %arg2: i32) -> (i32, i32, i32, i32) {
    %c0_i32 = arith.constant 0 : i32
    %c0_i32_0 = arith.constant 0 : i32
    return %arg0, %c0_i32, %arg1, %arg2 : i32, i32, i32, i32
  }
  func.func @transform_4(%arg0: i32, %arg1: i32, %arg2: i32) -> (i32, i32, i32, i32) {
    %c0_i32 = arith.constant 0 : i32
    %c0_i32_0 = arith.constant 0 : i32
    return %arg0, %c0_i32, %arg1, %arg2 : i32, i32, i32, i32
  }
  func.func @transform_5(%arg0: i32, %arg1: i32, %arg2: i32) -> (i32, i32, i32, i32) {
    %c0_i32 = arith.constant 0 : i32
    %c0_i32_0 = arith.constant 0 : i32
    return %arg0, %c0_i32, %arg1, %arg2 : i32, i32, i32, i32
  }
}

module attributes {stable_mosaic.version = 11 : i64} {
  func.func @_stage1_kernel(%arg0: i32, %arg1: memref<1x3x20x128xf32, #tpu.memory_space<vmem>>, %arg2: memref<1x1x20x128xf32, #tpu.memory_space<vmem>>, %arg3: memref<1x3x16x128xf32, #tpu.memory_space<vmem>>, %arg4: memref<1x1x16x128xf32, #tpu.memory_space<vmem>>, %arg5: memref<1x3x16x128xf32, #tpu.memory_space<vmem>>, %arg6: memref<1x6x16x128xf32, #tpu.memory_space<vmem>>) attributes {dimension_semantics = [#tpu.dimension_semantics<parallel>], iteration_bounds = array<i64: 2>, scalar_prefetch = 0 : i64, scratch_operands = 0 : i64, tpu.core_type = #tpu.core_type<tc>, window_params = [{transform_indices = @transform_0, window_bounds = array<i64: 1, 3, 20, 128>}, {transform_indices = @transform_1, window_bounds = array<i64: 1, 1, 20, 128>}, {transform_indices = @transform_2, window_bounds = array<i64: 1, 3, 16, 128>}, {transform_indices = @transform_3, window_bounds = array<i64: 1, 1, 16, 128>}, {transform_indices = @transform_4, window_bounds = array<i64: 1, 3, 16, 128>}, {transform_indices = @transform_5, window_bounds = array<i64: 1, 6, 16, 128>}]} {
    %c0 = arith.constant 0 : index
    %c0_0 = arith.constant 0 : index
    %c0_1 = arith.constant 0 : index
    %c0_2 = arith.constant 0 : index
    %0 = vector.load %arg1[%c0, %c0_0, %c0_1, %c0_2] : memref<1x3x20x128xf32, #tpu.memory_space<vmem>>, vector<1x1x20x128xf32>
    %1 = vector.shape_cast %0 : vector<1x1x20x128xf32> to vector<20x128xf32>
    %c0_3 = arith.constant 0 : index
    %c1 = arith.constant 1 : index
    %c0_4 = arith.constant 0 : index
    %c0_5 = arith.constant 0 : index
    %2 = vector.load %arg1[%c0_3, %c1, %c0_4, %c0_5] : memref<1x3x20x128xf32, #tpu.memory_space<vmem>>, vector<1x1x20x128xf32>
    %3 = vector.shape_cast %2 : vector<1x1x20x128xf32> to vector<20x128xf32>
    %c0_6 = arith.constant 0 : index
    %c2 = arith.constant 2 : index
    %c0_7 = arith.constant 0 : index
    %c0_8 = arith.constant 0 : index
    %4 = vector.load %arg1[%c0_6, %c2, %c0_7, %c0_8] : memref<1x3x20x128xf32, #tpu.memory_space<vmem>>, vector<1x1x20x128xf32>
    %5 = vector.shape_cast %4 : vector<1x1x20x128xf32> to vector<20x128xf32>
    %c0_9 = arith.constant 0 : index
    %c0_10 = arith.constant 0 : index
    %c0_11 = arith.constant 0 : index
    %c0_12 = arith.constant 0 : index
    %6 = vector.load %arg2[%c0_9, %c0_10, %c0_11, %c0_12] : memref<1x1x20x128xf32, #tpu.memory_space<vmem>>, vector<1x1x20x128xf32>
    %7 = vector.shape_cast %6 : vector<1x1x20x128xf32> to vector<20x128xf32>
    %8 = vector.extract_strided_slice %1 {offsets = [0, 0], sizes = [16, 128], strides = [1, 1]} : vector<20x128xf32> to vector<16x128xf32>
    %9 = vector.extract_strided_slice %1 {offsets = [1, 0], sizes = [16, 128], strides = [1, 1]} : vector<20x128xf32> to vector<16x128xf32>
    %10 = arith.addf %8, %9 : vector<16x128xf32>
    %11 = vector.extract_strided_slice %1 {offsets = [2, 0], sizes = [16, 128], strides = [1, 1]} : vector<20x128xf32> to vector<16x128xf32>
    %12 = arith.addf %10, %11 : vector<16x128xf32>
    %13 = vector.extract_strided_slice %1 {offsets = [3, 0], sizes = [16, 128], strides = [1, 1]} : vector<20x128xf32> to vector<16x128xf32>
    %14 = arith.addf %12, %13 : vector<16x128xf32>
    %15 = vector.extract_strided_slice %1 {offsets = [4, 0], sizes = [16, 128], strides = [1, 1]} : vector<20x128xf32> to vector<16x128xf32>
    %16 = arith.addf %14, %15 : vector<16x128xf32>
    %17 = vector.extract_strided_slice %16 {offsets = [0, 0], sizes = [16, 16], strides = [1, 1]} : vector<16x128xf32> to vector<16x16xf32>
    %18 = vector.extract_strided_slice %16 {offsets = [0, 1], sizes = [16, 16], strides = [1, 1]} : vector<16x128xf32> to vector<16x16xf32>
    %19 = arith.addf %17, %18 : vector<16x16xf32>
    %20 = vector.extract_strided_slice %16 {offsets = [0, 2], sizes = [16, 16], strides = [1, 1]} : vector<16x128xf32> to vector<16x16xf32>
    %21 = arith.addf %19, %20 : vector<16x16xf32>
    %22 = vector.extract_strided_slice %16 {offsets = [0, 3], sizes = [16, 16], strides = [1, 1]} : vector<16x128xf32> to vector<16x16xf32>
    %23 = arith.addf %21, %22 : vector<16x16xf32>
    %24 = vector.extract_strided_slice %16 {offsets = [0, 4], sizes = [16, 16], strides = [1, 1]} : vector<16x128xf32> to vector<16x16xf32>
    %25 = arith.addf %23, %24 : vector<16x16xf32>
    %cst = arith.constant 4.000000e-02 : f32
    %26 = vector.broadcast %cst : f32 to vector<16x16xf32>
    %27 = arith.mulf %25, %26 : vector<16x16xf32>
    %c0_13 = arith.constant 0 : index
    %c0_14 = arith.constant 0 : index
    %c0_15 = arith.constant 0 : index
    %c0_16 = arith.constant 0 : index
    %28 = vector.load %arg3[%c0_13, %c0_14, %c0_15, %c0_16] : memref<1x3x16x128xf32, #tpu.memory_space<vmem>>, vector<1x1x16x16xf32>
    %29 = vector.shape_cast %28 : vector<1x1x16x16xf32> to vector<16x16xf32>
    %30 = vector.shape_cast %27 : vector<16x16xf32> to vector<1x1x16x16xf32>
    tpu.vector_store %arg3[%c0_13, %c0_14, %c0_15, %c0_16], %30 {strides = array<i32>} : memref<1x3x16x128xf32, #tpu.memory_space<vmem>>, vector<1x1x16x16xf32>,
    %31 = vector.extract_strided_slice %3 {offsets = [0, 0], sizes = [16, 128], strides = [1, 1]} : vector<20x128xf32> to vector<16x128xf32>
    %32 = vector.extract_strided_slice %3 {offsets = [1, 0], sizes = [16, 128], strides = [1, 1]} : vector<20x128xf32> to vector<16x128xf32>
    %33 = arith.addf %31, %32 : vector<16x128xf32>
    %34 = vector.extract_strided_slice %3 {offsets = [2, 0], sizes = [16, 128], strides = [1, 1]} : vector<20x128xf32> to vector<16x128xf32>
    %35 = arith.addf %33, %34 : vector<16x128xf32>
    %36 = vector.extract_strided_slice %3 {offsets = [3, 0], sizes = [16, 128], strides = [1, 1]} : vector<20x128xf32> to vector<16x128xf32>
    %37 = arith.addf %35, %36 : vector<16x128xf32>
    %38 = vector.extract_strided_slice %3 {offsets = [4, 0], sizes = [16, 128], strides = [1, 1]} : vector<20x128xf32> to vector<16x128xf32>
    %39 = arith.addf %37, %38 : vector<16x128xf32>
    %40 = vector.extract_strided_slice %39 {offsets = [0, 0], sizes = [16, 16], strides = [1, 1]} : vector<16x128xf32> to vector<16x16xf32>
    %41 = vector.extract_strided_slice %39 {offsets = [0, 1], sizes = [16, 16], strides = [1, 1]} : vector<16x128xf32> to vector<16x16xf32>
    %42 = arith.addf %40, %41 : vector<16x16xf32>
    %43 = vector.extract_strided_slice %39 {offsets = [0, 2], sizes = [16, 16], strides = [1, 1]} : vector<16x128xf32> to vector<16x16xf32>
    %44 = arith.addf %42, %43 : vector<16x16xf32>
    %45 = vector.extract_strided_slice %39 {offsets = [0, 3], sizes = [16, 16], strides = [1, 1]} : vector<16x128xf32> to vector<16x16xf32>
    %46 = arith.addf %44, %45 : vector<16x16xf32>
    %47 = vector.extract_strided_slice %39 {offsets = [0, 4], sizes = [16, 16], strides = [1, 1]} : vector<16x128xf32> to vector<16x16xf32>
    %48 = arith.addf %46, %47 : vector<16x16xf32>
    %cst_17 = arith.constant 4.000000e-02 : f32
    %49 = vector.broadcast %cst_17 : f32 to vector<16x16xf32>
    %50 = arith.mulf %48, %49 : vector<16x16xf32>
    %c0_18 = arith.constant 0 : index
    %c1_19 = arith.constant 1 : index
    %c0_20 = arith.constant 0 : index
    %c0_21 = arith.constant 0 : index
    %51 = vector.load %arg3[%c0_18, %c1_19, %c0_20, %c0_21] : memref<1x3x16x128xf32, #tpu.memory_space<vmem>>, vector<1x1x16x16xf32>
    %52 = vector.shape_cast %51 : vector<1x1x16x16xf32> to vector<16x16xf32>
    %53 = vector.shape_cast %50 : vector<16x16xf32> to vector<1x1x16x16xf32>
    tpu.vector_store %arg3[%c0_18, %c1_19, %c0_20, %c0_21], %53 {strides = array<i32>} : memref<1x3x16x128xf32, #tpu.memory_space<vmem>>, vector<1x1x16x16xf32>,
    %54 = vector.extract_strided_slice %5 {offsets = [0, 0], sizes = [16, 128], strides = [1, 1]} : vector<20x128xf32> to vector<16x128xf32>
    %55 = vector.extract_strided_slice %5 {offsets = [1, 0], sizes = [16, 128], strides = [1, 1]} : vector<20x128xf32> to vector<16x128xf32>
    %56 = arith.addf %54, %55 : vector<16x128xf32>
    %57 = vector.extract_strided_slice %5 {offsets = [2, 0], sizes = [16, 128], strides = [1, 1]} : vector<20x128xf32> to vector<16x128xf32>
    %58 = arith.addf %56, %57 : vector<16x128xf32>
    %59 = vector.extract_strided_slice %5 {offsets = [3, 0], sizes = [16, 128], strides = [1, 1]} : vector<20x128xf32> to vector<16x128xf32>
    %60 = arith.addf %58, %59 : vector<16x128xf32>
    %61 = vector.extract_strided_slice %5 {offsets = [4, 0], sizes = [16, 128], strides = [1, 1]} : vector<20x128xf32> to vector<16x128xf32>
    %62 = arith.addf %60, %61 : vector<16x128xf32>
    %63 = vector.extract_strided_slice %62 {offsets = [0, 0], sizes = [16, 16], strides = [1, 1]} : vector<16x128xf32> to vector<16x16xf32>
    %64 = vector.extract_strided_slice %62 {offsets = [0, 1], sizes = [16, 16], strides = [1, 1]} : vector<16x128xf32> to vector<16x16xf32>
    %65 = arith.addf %63, %64 : vector<16x16xf32>
    %66 = vector.extract_strided_slice %62 {offsets = [0, 2], sizes = [16, 16], strides = [1, 1]} : vector<16x128xf32> to vector<16x16xf32>
    %67 = arith.addf %65, %66 : vector<16x16xf32>
    %68 = vector.extract_strided_slice %62 {offsets = [0, 3], sizes = [16, 16], strides = [1, 1]} : vector<16x128xf32> to vector<16x16xf32>
    %69 = arith.addf %67, %68 : vector<16x16xf32>
    %70 = vector.extract_strided_slice %62 {offsets = [0, 4], sizes = [16, 16], strides = [1, 1]} : vector<16x128xf32> to vector<16x16xf32>
    %71 = arith.addf %69, %70 : vector<16x16xf32>
    %cst_22 = arith.constant 4.000000e-02 : f32
    %72 = vector.broadcast %cst_22 : f32 to vector<16x16xf32>
    %73 = arith.mulf %71, %72 : vector<16x16xf32>
    %c0_23 = arith.constant 0 : index
    %c2_24 = arith.constant 2 : index
    %c0_25 = arith.constant 0 : index
    %c0_26 = arith.constant 0 : index
    %74 = vector.load %arg3[%c0_23, %c2_24, %c0_25, %c0_26] : memref<1x3x16x128xf32, #tpu.memory_space<vmem>>, vector<1x1x16x16xf32>
    %75 = vector.shape_cast %74 : vector<1x1x16x16xf32> to vector<16x16xf32>
    %76 = vector.shape_cast %73 : vector<16x16xf32> to vector<1x1x16x16xf32>
    tpu.vector_store %arg3[%c0_23, %c2_24, %c0_25, %c0_26], %76 {strides = array<i32>} : memref<1x3x16x128xf32, #tpu.memory_space<vmem>>, vector<1x1x16x16xf32>,
    %77 = vector.extract_strided_slice %7 {offsets = [0, 0], sizes = [16, 128], strides = [1, 1]} : vector<20x128xf32> to vector<16x128xf32>
    %78 = vector.extract_strided_slice %7 {offsets = [1, 0], sizes = [16, 128], strides = [1, 1]} : vector<20x128xf32> to vector<16x128xf32>
    %79 = arith.addf %77, %78 : vector<16x128xf32>
    %80 = vector.extract_strided_slice %7 {offsets = [2, 0], sizes = [16, 128], strides = [1, 1]} : vector<20x128xf32> to vector<16x128xf32>
    %81 = arith.addf %79, %80 : vector<16x128xf32>
    %82 = vector.extract_strided_slice %7 {offsets = [3, 0], sizes = [16, 128], strides = [1, 1]} : vector<20x128xf32> to vector<16x128xf32>
    %83 = arith.addf %81, %82 : vector<16x128xf32>
    %84 = vector.extract_strided_slice %7 {offsets = [4, 0], sizes = [16, 128], strides = [1, 1]} : vector<20x128xf32> to vector<16x128xf32>
    %85 = arith.addf %83, %84 : vector<16x128xf32>
    %86 = vector.extract_strided_slice %85 {offsets = [0, 0], sizes = [16, 16], strides = [1, 1]} : vector<16x128xf32> to vector<16x16xf32>
    %87 = vector.extract_strided_slice %85 {offsets = [0, 1], sizes = [16, 16], strides = [1, 1]} : vector<16x128xf32> to vector<16x16xf32>
    %88 = arith.addf %86, %87 : vector<16x16xf32>
    %89 = vector.extract_strided_slice %85 {offsets = [0, 2], sizes = [16, 16], strides = [1, 1]} : vector<16x128xf32> to vector<16x16xf32>
    %90 = arith.addf %88, %89 : vector<16x16xf32>
    %91 = vector.extract_strided_slice %85 {offsets = [0, 3], sizes = [16, 16], strides = [1, 1]} : vector<16x128xf32> to vector<16x16xf32>
    %92 = arith.addf %90, %91 : vector<16x16xf32>
    %93 = vector.extract_strided_slice %85 {offsets = [0, 4], sizes = [16, 16], strides = [1, 1]} : vector<16x128xf32> to vector<16x16xf32>
    %94 = arith.addf %92, %93 : vector<16x16xf32>
    %cst_27 = arith.constant 4.000000e-02 : f32
    %95 = vector.broadcast %cst_27 : f32 to vector<16x16xf32>
    %96 = arith.mulf %94, %95 : vector<16x16xf32>
    %c0_28 = arith.constant 0 : index
    %c0_29 = arith.constant 0 : index
    %c0_30 = arith.constant 0 : index
    %c0_31 = arith.constant 0 : index
    %97 = vector.load %arg4[%c0_28, %c0_29, %c0_30, %c0_31] : memref<1x1x16x128xf32, #tpu.memory_space<vmem>>, vector<1x1x16x16xf32>
    %98 = vector.shape_cast %97 : vector<1x1x16x16xf32> to vector<16x16xf32>
    %99 = vector.shape_cast %96 : vector<16x16xf32> to vector<1x1x16x16xf32>
    tpu.vector_store %arg4[%c0_28, %c0_29, %c0_30, %c0_31], %99 {strides = array<i32>} : memref<1x1x16x128xf32, #tpu.memory_space<vmem>>, vector<1x1x16x16xf32>,
    %100 = arith.mulf %1, %7 : vector<20x128xf32>
    %101 = vector.extract_strided_slice %100 {offsets = [0, 0], sizes = [16, 128], strides = [1, 1]} : vector<20x128xf32> to vector<16x128xf32>
    %102 = vector.extract_strided_slice %100 {offsets = [1, 0], sizes = [16, 128], strides = [1, 1]} : vector<20x128xf32> to vector<16x128xf32>
    %103 = arith.addf %101, %102 : vector<16x128xf32>
    %104 = vector.extract_strided_slice %100 {offsets = [2, 0], sizes = [16, 128], strides = [1, 1]} : vector<20x128xf32> to vector<16x128xf32>
    %105 = arith.addf %103, %104 : vector<16x128xf32>
    %106 = vector.extract_strided_slice %100 {offsets = [3, 0], sizes = [16, 128], strides = [1, 1]} : vector<20x128xf32> to vector<16x128xf32>
    %107 = arith.addf %105, %106 : vector<16x128xf32>
    %108 = vector.extract_strided_slice %100 {offsets = [4, 0], sizes = [16, 128], strides = [1, 1]} : vector<20x128xf32> to vector<16x128xf32>
    %109 = arith.addf %107, %108 : vector<16x128xf32>
    %110 = vector.extract_strided_slice %109 {offsets = [0, 0], sizes = [16, 16], strides = [1, 1]} : vector<16x128xf32> to vector<16x16xf32>
    %111 = vector.extract_strided_slice %109 {offsets = [0, 1], sizes = [16, 16], strides = [1, 1]} : vector<16x128xf32> to vector<16x16xf32>
    %112 = arith.addf %110, %111 : vector<16x16xf32>
    %113 = vector.extract_strided_slice %109 {offsets = [0, 2], sizes = [16, 16], strides = [1, 1]} : vector<16x128xf32> to vector<16x16xf32>
    %114 = arith.addf %112, %113 : vector<16x16xf32>
    %115 = vector.extract_strided_slice %109 {offsets = [0, 3], sizes = [16, 16], strides = [1, 1]} : vector<16x128xf32> to vector<16x16xf32>
    %116 = arith.addf %114, %115 : vector<16x16xf32>
    %117 = vector.extract_strided_slice %109 {offsets = [0, 4], sizes = [16, 16], strides = [1, 1]} : vector<16x128xf32> to vector<16x16xf32>
    %118 = arith.addf %116, %117 : vector<16x16xf32>
    %cst_32 = arith.constant 4.000000e-02 : f32
    %119 = vector.broadcast %cst_32 : f32 to vector<16x16xf32>
    %120 = arith.mulf %118, %119 : vector<16x16xf32>
    %c0_33 = arith.constant 0 : index
    %c0_34 = arith.constant 0 : index
    %c0_35 = arith.constant 0 : index
    %c0_36 = arith.constant 0 : index
    %121 = vector.load %arg5[%c0_33, %c0_34, %c0_35, %c0_36] : memref<1x3x16x128xf32, #tpu.memory_space<vmem>>, vector<1x1x16x16xf32>
    %122 = vector.shape_cast %121 : vector<1x1x16x16xf32> to vector<16x16xf32>
    %123 = vector.shape_cast %120 : vector<16x16xf32> to vector<1x1x16x16xf32>
    tpu.vector_store %arg5[%c0_33, %c0_34, %c0_35, %c0_36], %123 {strides = array<i32>} : memref<1x3x16x128xf32, #tpu.memory_space<vmem>>, vector<1x1x16x16xf32>,
    %124 = arith.mulf %3, %7 : vector<20x128xf32>
    %125 = vector.extract_strided_slice %124 {offsets = [0, 0], sizes = [16, 128], strides = [1, 1]} : vector<20x128xf32> to vector<16x128xf32>
    %126 = vector.extract_strided_slice %124 {offsets = [1, 0], sizes = [16, 128], strides = [1, 1]} : vector<20x128xf32> to vector<16x128xf32>
    %127 = arith.addf %125, %126 : vector<16x128xf32>
    %128 = vector.extract_strided_slice %124 {offsets = [2, 0], sizes = [16, 128], strides = [1, 1]} : vector<20x128xf32> to vector<16x128xf32>
    %129 = arith.addf %127, %128 : vector<16x128xf32>
    %130 = vector.extract_strided_slice %124 {offsets = [3, 0], sizes = [16, 128], strides = [1, 1]} : vector<20x128xf32> to vector<16x128xf32>
    %131 = arith.addf %129, %130 : vector<16x128xf32>
    %132 = vector.extract_strided_slice %124 {offsets = [4, 0], sizes = [16, 128], strides = [1, 1]} : vector<20x128xf32> to vector<16x128xf32>
    %133 = arith.addf %131, %132 : vector<16x128xf32>
    %134 = vector.extract_strided_slice %133 {offsets = [0, 0], sizes = [16, 16], strides = [1, 1]} : vector<16x128xf32> to vector<16x16xf32>
    %135 = vector.extract_strided_slice %133 {offsets = [0, 1], sizes = [16, 16], strides = [1, 1]} : vector<16x128xf32> to vector<16x16xf32>
    %136 = arith.addf %134, %135 : vector<16x16xf32>
    %137 = vector.extract_strided_slice %133 {offsets = [0, 2], sizes = [16, 16], strides = [1, 1]} : vector<16x128xf32> to vector<16x16xf32>
    %138 = arith.addf %136, %137 : vector<16x16xf32>
    %139 = vector.extract_strided_slice %133 {offsets = [0, 3], sizes = [16, 16], strides = [1, 1]} : vector<16x128xf32> to vector<16x16xf32>
    %140 = arith.addf %138, %139 : vector<16x16xf32>
    %141 = vector.extract_strided_slice %133 {offsets = [0, 4], sizes = [16, 16], strides = [1, 1]} : vector<16x128xf32> to vector<16x16xf32>
    %142 = arith.addf %140, %141 : vector<16x16xf32>
    %cst_37 = arith.constant 4.000000e-02 : f32
    %143 = vector.broadcast %cst_37 : f32 to vector<16x16xf32>
    %144 = arith.mulf %142, %143 : vector<16x16xf32>
    %c0_38 = arith.constant 0 : index
    %c1_39 = arith.constant 1 : index
    %c0_40 = arith.constant 0 : index
    %c0_41 = arith.constant 0 : index
    %145 = vector.load %arg5[%c0_38, %c1_39, %c0_40, %c0_41] : memref<1x3x16x128xf32, #tpu.memory_space<vmem>>, vector<1x1x16x16xf32>
    %146 = vector.shape_cast %145 : vector<1x1x16x16xf32> to vector<16x16xf32>
    %147 = vector.shape_cast %144 : vector<16x16xf32> to vector<1x1x16x16xf32>
    tpu.vector_store %arg5[%c0_38, %c1_39, %c0_40, %c0_41], %147 {strides = array<i32>} : memref<1x3x16x128xf32, #tpu.memory_space<vmem>>, vector<1x1x16x16xf32>,
    %148 = arith.mulf %5, %7 : vector<20x128xf32>
    %149 = vector.extract_strided_slice %148 {offsets = [0, 0], sizes = [16, 128], strides = [1, 1]} : vector<20x128xf32> to vector<16x128xf32>
    %150 = vector.extract_strided_slice %148 {offsets = [1, 0], sizes = [16, 128], strides = [1, 1]} : vector<20x128xf32> to vector<16x128xf32>
    %151 = arith.addf %149, %150 : vector<16x128xf32>
    %152 = vector.extract_strided_slice %148 {offsets = [2, 0], sizes = [16, 128], strides = [1, 1]} : vector<20x128xf32> to vector<16x128xf32>
    %153 = arith.addf %151, %152 : vector<16x128xf32>
    %154 = vector.extract_strided_slice %148 {offsets = [3, 0], sizes = [16, 128], strides = [1, 1]} : vector<20x128xf32> to vector<16x128xf32>
    %155 = arith.addf %153, %154 : vector<16x128xf32>
    %156 = vector.extract_strided_slice %148 {offsets = [4, 0], sizes = [16, 128], strides = [1, 1]} : vector<20x128xf32> to vector<16x128xf32>
    %157 = arith.addf %155, %156 : vector<16x128xf32>
    %158 = vector.extract_strided_slice %157 {offsets = [0, 0], sizes = [16, 16], strides = [1, 1]} : vector<16x128xf32> to vector<16x16xf32>
    %159 = vector.extract_strided_slice %157 {offsets = [0, 1], sizes = [16, 16], strides = [1, 1]} : vector<16x128xf32> to vector<16x16xf32>
    %160 = arith.addf %158, %159 : vector<16x16xf32>
    %161 = vector.extract_strided_slice %157 {offsets = [0, 2], sizes = [16, 16], strides = [1, 1]} : vector<16x128xf32> to vector<16x16xf32>
    %162 = arith.addf %160, %161 : vector<16x16xf32>
    %163 = vector.extract_strided_slice %157 {offsets = [0, 3], sizes = [16, 16], strides = [1, 1]} : vector<16x128xf32> to vector<16x16xf32>
    %164 = arith.addf %162, %163 : vector<16x16xf32>
    %165 = vector.extract_strided_slice %157 {offsets = [0, 4], sizes = [16, 16], strides = [1, 1]} : vector<16x128xf32> to vector<16x16xf32>
    %166 = arith.addf %164, %165 : vector<16x16xf32>
    %cst_42 = arith.constant 4.000000e-02 : f32
    %167 = vector.broadcast %cst_42 : f32 to vector<16x16xf32>
    %168 = arith.mulf %166, %167 : vector<16x16xf32>
    %c0_43 = arith.constant 0 : index
    %c2_44 = arith.constant 2 : index
    %c0_45 = arith.constant 0 : index
    %c0_46 = arith.constant 0 : index
    %169 = vector.load %arg5[%c0_43, %c2_44, %c0_45, %c0_46] : memref<1x3x16x128xf32, #tpu.memory_space<vmem>>, vector<1x1x16x16xf32>
    %170 = vector.shape_cast %169 : vector<1x1x16x16xf32> to vector<16x16xf32>
    %171 = vector.shape_cast %168 : vector<16x16xf32> to vector<1x1x16x16xf32>
    tpu.vector_store %arg5[%c0_43, %c2_44, %c0_45, %c0_46], %171 {strides = array<i32>} : memref<1x3x16x128xf32, #tpu.memory_space<vmem>>, vector<1x1x16x16xf32>,
    %172 = arith.mulf %1, %1 : vector<20x128xf32>
    %173 = vector.extract_strided_slice %172 {offsets = [0, 0], sizes = [16, 128], strides = [1, 1]} : vector<20x128xf32> to vector<16x128xf32>
    %174 = vector.extract_strided_slice %172 {offsets = [1, 0], sizes = [16, 128], strides = [1, 1]} : vector<20x128xf32> to vector<16x128xf32>
    %175 = arith.addf %173, %174 : vector<16x128xf32>
    %176 = vector.extract_strided_slice %172 {offsets = [2, 0], sizes = [16, 128], strides = [1, 1]} : vector<20x128xf32> to vector<16x128xf32>
    %177 = arith.addf %175, %176 : vector<16x128xf32>
    %178 = vector.extract_strided_slice %172 {offsets = [3, 0], sizes = [16, 128], strides = [1, 1]} : vector<20x128xf32> to vector<16x128xf32>
    %179 = arith.addf %177, %178 : vector<16x128xf32>
    %180 = vector.extract_strided_slice %172 {offsets = [4, 0], sizes = [16, 128], strides = [1, 1]} : vector<20x128xf32> to vector<16x128xf32>
    %181 = arith.addf %179, %180 : vector<16x128xf32>
    %182 = vector.extract_strided_slice %181 {offsets = [0, 0], sizes = [16, 16], strides = [1, 1]} : vector<16x128xf32> to vector<16x16xf32>
    %183 = vector.extract_strided_slice %181 {offsets = [0, 1], sizes = [16, 16], strides = [1, 1]} : vector<16x128xf32> to vector<16x16xf32>
    %184 = arith.addf %182, %183 : vector<16x16xf32>
    %185 = vector.extract_strided_slice %181 {offsets = [0, 2], sizes = [16, 16], strides = [1, 1]} : vector<16x128xf32> to vector<16x16xf32>
    %186 = arith.addf %184, %185 : vector<16x16xf32>
    %187 = vector.extract_strided_slice %181 {offsets = [0, 3], sizes = [16, 16], strides = [1, 1]} : vector<16x128xf32> to vector<16x16xf32>
    %188 = arith.addf %186, %187 : vector<16x16xf32>
    %189 = vector.extract_strided_slice %181 {offsets = [0, 4], sizes = [16, 16], strides = [1, 1]} : vector<16x128xf32> to vector<16x16xf32>
    %190 = arith.addf %188, %189 : vector<16x16xf32>
    %cst_47 = arith.constant 4.000000e-02 : f32
    %191 = vector.broadcast %cst_47 : f32 to vector<16x16xf32>
    %192 = arith.mulf %190, %191 : vector<16x16xf32>
    %c0_48 = arith.constant 0 : index
    %c0_49 = arith.constant 0 : index
    %c0_50 = arith.constant 0 : index
    %c0_51 = arith.constant 0 : index
    %193 = vector.load %arg6[%c0_48, %c0_49, %c0_50, %c0_51] : memref<1x6x16x128xf32, #tpu.memory_space<vmem>>, vector<1x1x16x16xf32>
    %194 = vector.shape_cast %193 : vector<1x1x16x16xf32> to vector<16x16xf32>
    %195 = vector.shape_cast %192 : vector<16x16xf32> to vector<1x1x16x16xf32>
    tpu.vector_store %arg6[%c0_48, %c0_49, %c0_50, %c0_51], %195 {strides = array<i32>} : memref<1x6x16x128xf32, #tpu.memory_space<vmem>>, vector<1x1x16x16xf32>,
    %196 = arith.mulf %1, %3 : vector<20x128xf32>
    %197 = vector.extract_strided_slice %196 {offsets = [0, 0], sizes = [16, 128], strides = [1, 1]} : vector<20x128xf32> to vector<16x128xf32>
    %198 = vector.extract_strided_slice %196 {offsets = [1, 0], sizes = [16, 128], strides = [1, 1]} : vector<20x128xf32> to vector<16x128xf32>
    %199 = arith.addf %197, %198 : vector<16x128xf32>
    %200 = vector.extract_strided_slice %196 {offsets = [2, 0], sizes = [16, 128], strides = [1, 1]} : vector<20x128xf32> to vector<16x128xf32>
    %201 = arith.addf %199, %200 : vector<16x128xf32>
    %202 = vector.extract_strided_slice %196 {offsets = [3, 0], sizes = [16, 128], strides = [1, 1]} : vector<20x128xf32> to vector<16x128xf32>
    %203 = arith.addf %201, %202 : vector<16x128xf32>
    %204 = vector.extract_strided_slice %196 {offsets = [4, 0], sizes = [16, 128], strides = [1, 1]} : vector<20x128xf32> to vector<16x128xf32>
    %205 = arith.addf %203, %204 : vector<16x128xf32>
    %206 = vector.extract_strided_slice %205 {offsets = [0, 0], sizes = [16, 16], strides = [1, 1]} : vector<16x128xf32> to vector<16x16xf32>
    %207 = vector.extract_strided_slice %205 {offsets = [0, 1], sizes = [16, 16], strides = [1, 1]} : vector<16x128xf32> to vector<16x16xf32>
    %208 = arith.addf %206, %207 : vector<16x16xf32>
    %209 = vector.extract_strided_slice %205 {offsets = [0, 2], sizes = [16, 16], strides = [1, 1]} : vector<16x128xf32> to vector<16x16xf32>
    %210 = arith.addf %208, %209 : vector<16x16xf32>
    %211 = vector.extract_strided_slice %205 {offsets = [0, 3], sizes = [16, 16], strides = [1, 1]} : vector<16x128xf32> to vector<16x16xf32>
    %212 = arith.addf %210, %211 : vector<16x16xf32>
    %213 = vector.extract_strided_slice %205 {offsets = [0, 4], sizes = [16, 16], strides = [1, 1]} : vector<16x128xf32> to vector<16x16xf32>
    %214 = arith.addf %212, %213 : vector<16x16xf32>
    %cst_52 = arith.constant 4.000000e-02 : f32
    %215 = vector.broadcast %cst_52 : f32 to vector<16x16xf32>
    %216 = arith.mulf %214, %215 : vector<16x16xf32>
    %c0_53 = arith.constant 0 : index
    %c1_54 = arith.constant 1 : index
    %c0_55 = arith.constant 0 : index
    %c0_56 = arith.constant 0 : index
    %217 = vector.load %arg6[%c0_53, %c1_54, %c0_55, %c0_56] : memref<1x6x16x128xf32, #tpu.memory_space<vmem>>, vector<1x1x16x16xf32>
    %218 = vector.shape_cast %217 : vector<1x1x16x16xf32> to vector<16x16xf32>
    %219 = vector.shape_cast %216 : vector<16x16xf32> to vector<1x1x16x16xf32>
    tpu.vector_store %arg6[%c0_53, %c1_54, %c0_55, %c0_56], %219 {strides = array<i32>} : memref<1x6x16x128xf32, #tpu.memory_space<vmem>>, vector<1x1x16x16xf32>,
    %220 = arith.mulf %1, %5 : vector<20x128xf32>
    %221 = vector.extract_strided_slice %220 {offsets = [0, 0], sizes = [16, 128], strides = [1, 1]} : vector<20x128xf32> to vector<16x128xf32>
    %222 = vector.extract_strided_slice %220 {offsets = [1, 0], sizes = [16, 128], strides = [1, 1]} : vector<20x128xf32> to vector<16x128xf32>
    %223 = arith.addf %221, %222 : vector<16x128xf32>
    %224 = vector.extract_strided_slice %220 {offsets = [2, 0], sizes = [16, 128], strides = [1, 1]} : vector<20x128xf32> to vector<16x128xf32>
    %225 = arith.addf %223, %224 : vector<16x128xf32>
    %226 = vector.extract_strided_slice %220 {offsets = [3, 0], sizes = [16, 128], strides = [1, 1]} : vector<20x128xf32> to vector<16x128xf32>
    %227 = arith.addf %225, %226 : vector<16x128xf32>
    %228 = vector.extract_strided_slice %220 {offsets = [4, 0], sizes = [16, 128], strides = [1, 1]} : vector<20x128xf32> to vector<16x128xf32>
    %229 = arith.addf %227, %228 : vector<16x128xf32>
    %230 = vector.extract_strided_slice %229 {offsets = [0, 0], sizes = [16, 16], strides = [1, 1]} : vector<16x128xf32> to vector<16x16xf32>
    %231 = vector.extract_strided_slice %229 {offsets = [0, 1], sizes = [16, 16], strides = [1, 1]} : vector<16x128xf32> to vector<16x16xf32>
    %232 = arith.addf %230, %231 : vector<16x16xf32>
    %233 = vector.extract_strided_slice %229 {offsets = [0, 2], sizes = [16, 16], strides = [1, 1]} : vector<16x128xf32> to vector<16x16xf32>
    %234 = arith.addf %232, %233 : vector<16x16xf32>
    %235 = vector.extract_strided_slice %229 {offsets = [0, 3], sizes = [16, 16], strides = [1, 1]} : vector<16x128xf32> to vector<16x16xf32>
    %236 = arith.addf %234, %235 : vector<16x16xf32>
    %237 = vector.extract_strided_slice %229 {offsets = [0, 4], sizes = [16, 16], strides = [1, 1]} : vector<16x128xf32> to vector<16x16xf32>
    %238 = arith.addf %236, %237 : vector<16x16xf32>
    %cst_57 = arith.constant 4.000000e-02 : f32
    %239 = vector.broadcast %cst_57 : f32 to vector<16x16xf32>
    %240 = arith.mulf %238, %239 : vector<16x16xf32>
    %c0_58 = arith.constant 0 : index
    %c2_59 = arith.constant 2 : index
    %c0_60 = arith.constant 0 : index
    %c0_61 = arith.constant 0 : index
    %241 = vector.load %arg6[%c0_58, %c2_59, %c0_60, %c0_61] : memref<1x6x16x128xf32, #tpu.memory_space<vmem>>, vector<1x1x16x16xf32>
    %242 = vector.shape_cast %241 : vector<1x1x16x16xf32> to vector<16x16xf32>
    %243 = vector.shape_cast %240 : vector<16x16xf32> to vector<1x1x16x16xf32>
    tpu.vector_store %arg6[%c0_58, %c2_59, %c0_60, %c0_61], %243 {strides = array<i32>} : memref<1x6x16x128xf32, #tpu.memory_space<vmem>>, vector<1x1x16x16xf32>,
    %244 = arith.mulf %3, %3 : vector<20x128xf32>
    %245 = vector.extract_strided_slice %244 {offsets = [0, 0], sizes = [16, 128], strides = [1, 1]} : vector<20x128xf32> to vector<16x128xf32>
    %246 = vector.extract_strided_slice %244 {offsets = [1, 0], sizes = [16, 128], strides = [1, 1]} : vector<20x128xf32> to vector<16x128xf32>
    %247 = arith.addf %245, %246 : vector<16x128xf32>
    %248 = vector.extract_strided_slice %244 {offsets = [2, 0], sizes = [16, 128], strides = [1, 1]} : vector<20x128xf32> to vector<16x128xf32>
    %249 = arith.addf %247, %248 : vector<16x128xf32>
    %250 = vector.extract_strided_slice %244 {offsets = [3, 0], sizes = [16, 128], strides = [1, 1]} : vector<20x128xf32> to vector<16x128xf32>
    %251 = arith.addf %249, %250 : vector<16x128xf32>
    %252 = vector.extract_strided_slice %244 {offsets = [4, 0], sizes = [16, 128], strides = [1, 1]} : vector<20x128xf32> to vector<16x128xf32>
    %253 = arith.addf %251, %252 : vector<16x128xf32>
    %254 = vector.extract_strided_slice %253 {offsets = [0, 0], sizes = [16, 16], strides = [1, 1]} : vector<16x128xf32> to vector<16x16xf32>
    %255 = vector.extract_strided_slice %253 {offsets = [0, 1], sizes = [16, 16], strides = [1, 1]} : vector<16x128xf32> to vector<16x16xf32>
    %256 = arith.addf %254, %255 : vector<16x16xf32>
    %257 = vector.extract_strided_slice %253 {offsets = [0, 2], sizes = [16, 16], strides = [1, 1]} : vector<16x128xf32> to vector<16x16xf32>
    %258 = arith.addf %256, %257 : vector<16x16xf32>
    %259 = vector.extract_strided_slice %253 {offsets = [0, 3], sizes = [16, 16], strides = [1, 1]} : vector<16x128xf32> to vector<16x16xf32>
    %260 = arith.addf %258, %259 : vector<16x16xf32>
    %261 = vector.extract_strided_slice %253 {offsets = [0, 4], sizes = [16, 16], strides = [1, 1]} : vector<16x128xf32> to vector<16x16xf32>
    %262 = arith.addf %260, %261 : vector<16x16xf32>
    %cst_62 = arith.constant 4.000000e-02 : f32
    %263 = vector.broadcast %cst_62 : f32 to vector<16x16xf32>
    %264 = arith.mulf %262, %263 : vector<16x16xf32>
    %c0_63 = arith.constant 0 : index
    %c3 = arith.constant 3 : index
    %c0_64 = arith.constant 0 : index
    %c0_65 = arith.constant 0 : index
    %265 = vector.load %arg6[%c0_63, %c3, %c0_64, %c0_65] : memref<1x6x16x128xf32, #tpu.memory_space<vmem>>, vector<1x1x16x16xf32>
    %266 = vector.shape_cast %265 : vector<1x1x16x16xf32> to vector<16x16xf32>
    %267 = vector.shape_cast %264 : vector<16x16xf32> to vector<1x1x16x16xf32>
    tpu.vector_store %arg6[%c0_63, %c3, %c0_64, %c0_65], %267 {strides = array<i32>} : memref<1x6x16x128xf32, #tpu.memory_space<vmem>>, vector<1x1x16x16xf32>,
    %268 = arith.mulf %3, %5 : vector<20x128xf32>
    %269 = vector.extract_strided_slice %268 {offsets = [0, 0], sizes = [16, 128], strides = [1, 1]} : vector<20x128xf32> to vector<16x128xf32>
    %270 = vector.extract_strided_slice %268 {offsets = [1, 0], sizes = [16, 128], strides = [1, 1]} : vector<20x128xf32> to vector<16x128xf32>
    %271 = arith.addf %269, %270 : vector<16x128xf32>
    %272 = vector.extract_strided_slice %268 {offsets = [2, 0], sizes = [16, 128], strides = [1, 1]} : vector<20x128xf32> to vector<16x128xf32>
    %273 = arith.addf %271, %272 : vector<16x128xf32>
    %274 = vector.extract_strided_slice %268 {offsets = [3, 0], sizes = [16, 128], strides = [1, 1]} : vector<20x128xf32> to vector<16x128xf32>
    %275 = arith.addf %273, %274 : vector<16x128xf32>
    %276 = vector.extract_strided_slice %268 {offsets = [4, 0], sizes = [16, 128], strides = [1, 1]} : vector<20x128xf32> to vector<16x128xf32>
    %277 = arith.addf %275, %276 : vector<16x128xf32>
    %278 = vector.extract_strided_slice %277 {offsets = [0, 0], sizes = [16, 16], strides = [1, 1]} : vector<16x128xf32> to vector<16x16xf32>
    %279 = vector.extract_strided_slice %277 {offsets = [0, 1], sizes = [16, 16], strides = [1, 1]} : vector<16x128xf32> to vector<16x16xf32>
    %280 = arith.addf %278, %279 : vector<16x16xf32>
    %281 = vector.extract_strided_slice %277 {offsets = [0, 2], sizes = [16, 16], strides = [1, 1]} : vector<16x128xf32> to vector<16x16xf32>
    %282 = arith.addf %280, %281 : vector<16x16xf32>
    %283 = vector.extract_strided_slice %277 {offsets = [0, 3], sizes = [16, 16], strides = [1, 1]} : vector<16x128xf32> to vector<16x16xf32>
    %284 = arith.addf %282, %283 : vector<16x16xf32>
    %285 = vector.extract_strided_slice %277 {offsets = [0, 4], sizes = [16, 16], strides = [1, 1]} : vector<16x128xf32> to vector<16x16xf32>
    %286 = arith.addf %284, %285 : vector<16x16xf32>
    %cst_66 = arith.constant 4.000000e-02 : f32
    %287 = vector.broadcast %cst_66 : f32 to vector<16x16xf32>
    %288 = arith.mulf %286, %287 : vector<16x16xf32>
    %c0_67 = arith.constant 0 : index
    %c4 = arith.constant 4 : index
    %c0_68 = arith.constant 0 : index
    %c0_69 = arith.constant 0 : index
    %289 = vector.load %arg6[%c0_67, %c4, %c0_68, %c0_69] : memref<1x6x16x128xf32, #tpu.memory_space<vmem>>, vector<1x1x16x16xf32>
    %290 = vector.shape_cast %289 : vector<1x1x16x16xf32> to vector<16x16xf32>
    %291 = vector.shape_cast %288 : vector<16x16xf32> to vector<1x1x16x16xf32>
    tpu.vector_store %arg6[%c0_67, %c4, %c0_68, %c0_69], %291 {strides = array<i32>} : memref<1x6x16x128xf32, #tpu.memory_space<vmem>>, vector<1x1x16x16xf32>,
    %292 = arith.mulf %5, %5 : vector<20x128xf32>
    %293 = vector.extract_strided_slice %292 {offsets = [0, 0], sizes = [16, 128], strides = [1, 1]} : vector<20x128xf32> to vector<16x128xf32>
    %294 = vector.extract_strided_slice %292 {offsets = [1, 0], sizes = [16, 128], strides = [1, 1]} : vector<20x128xf32> to vector<16x128xf32>
    %295 = arith.addf %293, %294 : vector<16x128xf32>
    %296 = vector.extract_strided_slice %292 {offsets = [2, 0], sizes = [16, 128], strides = [1, 1]} : vector<20x128xf32> to vector<16x128xf32>
    %297 = arith.addf %295, %296 : vector<16x128xf32>
    %298 = vector.extract_strided_slice %292 {offsets = [3, 0], sizes = [16, 128], strides = [1, 1]} : vector<20x128xf32> to vector<16x128xf32>
    %299 = arith.addf %297, %298 : vector<16x128xf32>
    %300 = vector.extract_strided_slice %292 {offsets = [4, 0], sizes = [16, 128], strides = [1, 1]} : vector<20x128xf32> to vector<16x128xf32>
    %301 = arith.addf %299, %300 : vector<16x128xf32>
    %302 = vector.extract_strided_slice %301 {offsets = [0, 0], sizes = [16, 16], strides = [1, 1]} : vector<16x128xf32> to vector<16x16xf32>
    %303 = vector.extract_strided_slice %301 {offsets = [0, 1], sizes = [16, 16], strides = [1, 1]} : vector<16x128xf32> to vector<16x16xf32>
    %304 = arith.addf %302, %303 : vector<16x16xf32>
    %305 = vector.extract_strided_slice %301 {offsets = [0, 2], sizes = [16, 16], strides = [1, 1]} : vector<16x128xf32> to vector<16x16xf32>
    %306 = arith.addf %304, %305 : vector<16x16xf32>
    %307 = vector.extract_strided_slice %301 {offsets = [0, 3], sizes = [16, 16], strides = [1, 1]} : vector<16x128xf32> to vector<16x16xf32>
    %308 = arith.addf %306, %307 : vector<16x16xf32>
    %309 = vector.extract_strided_slice %301 {offsets = [0, 4], sizes = [16, 16], strides = [1, 1]} : vector<16x128xf32> to vector<16x16xf32>
    %310 = arith.addf %308, %309 : vector<16x16xf32>
    %cst_70 = arith.constant 4.000000e-02 : f32
    %311 = vector.broadcast %cst_70 : f32 to vector<16x16xf32>
    %312 = arith.mulf %310, %311 : vector<16x16xf32>
    %c0_71 = arith.constant 0 : index
    %c5 = arith.constant 5 : index
    %c0_72 = arith.constant 0 : index
    %c0_73 = arith.constant 0 : index
    %313 = vector.load %arg6[%c0_71, %c5, %c0_72, %c0_73] : memref<1x6x16x128xf32, #tpu.memory_space<vmem>>, vector<1x1x16x16xf32>
    %314 = vector.shape_cast %313 : vector<1x1x16x16xf32> to vector<16x16xf32>
    %315 = vector.shape_cast %312 : vector<16x16xf32> to vector<1x1x16x16xf32>
    tpu.vector_store %arg6[%c0_71, %c5, %c0_72, %c0_73], %315 {strides = array<i32>} : memref<1x6x16x128xf32, #tpu.memory_space<vmem>>, vector<1x1x16x16xf32>,
    return
  }
  func.func @transform_0(%arg0: i32) -> (i32, i32, i32, i32) {
    %c0_i32 = arith.constant 0 : i32
    %c0_i32_0 = arith.constant 0 : i32
    %c0_i32_1 = arith.constant 0 : i32
    %c0_i32_2 = arith.constant 0 : i32
    return %arg0, %c0_i32, %c0_i32_0, %c0_i32_1 : i32, i32, i32, i32
  }
  func.func @transform_1(%arg0: i32) -> (i32, i32, i32, i32) {
    %c0_i32 = arith.constant 0 : i32
    %c0_i32_0 = arith.constant 0 : i32
    %c0_i32_1 = arith.constant 0 : i32
    %c0_i32_2 = arith.constant 0 : i32
    return %arg0, %c0_i32, %c0_i32_0, %c0_i32_1 : i32, i32, i32, i32
  }
  func.func @transform_2(%arg0: i32) -> (i32, i32, i32, i32) {
    %c0_i32 = arith.constant 0 : i32
    %c0_i32_0 = arith.constant 0 : i32
    %c0_i32_1 = arith.constant 0 : i32
    %c0_i32_2 = arith.constant 0 : i32
    return %arg0, %c0_i32, %c0_i32_0, %c0_i32_1 : i32, i32, i32, i32
  }
  func.func @transform_3(%arg0: i32) -> (i32, i32, i32, i32) {
    %c0_i32 = arith.constant 0 : i32
    %c0_i32_0 = arith.constant 0 : i32
    %c0_i32_1 = arith.constant 0 : i32
    %c0_i32_2 = arith.constant 0 : i32
    return %arg0, %c0_i32, %c0_i32_0, %c0_i32_1 : i32, i32, i32, i32
  }
  func.func @transform_4(%arg0: i32) -> (i32, i32, i32, i32) {
    %c0_i32 = arith.constant 0 : i32
    %c0_i32_0 = arith.constant 0 : i32
    %c0_i32_1 = arith.constant 0 : i32
    %c0_i32_2 = arith.constant 0 : i32
    return %arg0, %c0_i32, %c0_i32_0, %c0_i32_1 : i32, i32, i32, i32
  }
  func.func @transform_5(%arg0: i32) -> (i32, i32, i32, i32) {
    %c0_i32 = arith.constant 0 : i32
    %c0_i32_0 = arith.constant 0 : i32
    %c0_i32_1 = arith.constant 0 : i32
    %c0_i32_2 = arith.constant 0 : i32
    return %arg0, %c0_i32, %c0_i32_0, %c0_i32_1 : i32, i32, i32, i32
  }
}

module attributes {stable_mosaic.version = 11 : i64} {
  func.func @_stage3_kernel(%arg0: i32, %arg1: memref<1x3x20x128xf32, #tpu.memory_space<vmem>>, %arg2: memref<1x1x20x128xf32, #tpu.memory_space<vmem>>, %arg3: memref<1x3x20x128xf32, #tpu.memory_space<vmem>>, %arg4: memref<1x1x16x128xf32, #tpu.memory_space<vmem>>) attributes {dimension_semantics = [#tpu.dimension_semantics<parallel>], iteration_bounds = array<i64: 2>, scalar_prefetch = 0 : i64, scratch_operands = 0 : i64, tpu.core_type = #tpu.core_type<tc>, window_params = [{transform_indices = @transform_0, window_bounds = array<i64: 1, 3, 20, 128>}, {transform_indices = @transform_1, window_bounds = array<i64: 1, 1, 20, 128>}, {transform_indices = @transform_2, window_bounds = array<i64: 1, 3, 20, 128>}, {transform_indices = @transform_3, window_bounds = array<i64: 1, 1, 16, 128>}]} {
    %c0 = arith.constant 0 : index
    %c0_0 = arith.constant 0 : index
    %c0_1 = arith.constant 0 : index
    %c0_2 = arith.constant 0 : index
    %0 = vector.load %arg2[%c0, %c0_0, %c0_1, %c0_2] : memref<1x1x20x128xf32, #tpu.memory_space<vmem>>, vector<1x1x20x128xf32>
    %1 = vector.shape_cast %0 : vector<1x1x20x128xf32> to vector<20x128xf32>
    %2 = vector.extract_strided_slice %1 {offsets = [0, 0], sizes = [16, 128], strides = [1, 1]} : vector<20x128xf32> to vector<16x128xf32>
    %3 = vector.extract_strided_slice %1 {offsets = [1, 0], sizes = [16, 128], strides = [1, 1]} : vector<20x128xf32> to vector<16x128xf32>
    %4 = arith.addf %2, %3 : vector<16x128xf32>
    %5 = vector.extract_strided_slice %1 {offsets = [2, 0], sizes = [16, 128], strides = [1, 1]} : vector<20x128xf32> to vector<16x128xf32>
    %6 = arith.addf %4, %5 : vector<16x128xf32>
    %7 = vector.extract_strided_slice %1 {offsets = [3, 0], sizes = [16, 128], strides = [1, 1]} : vector<20x128xf32> to vector<16x128xf32>
    %8 = arith.addf %6, %7 : vector<16x128xf32>
    %9 = vector.extract_strided_slice %1 {offsets = [4, 0], sizes = [16, 128], strides = [1, 1]} : vector<20x128xf32> to vector<16x128xf32>
    %10 = arith.addf %8, %9 : vector<16x128xf32>
    %11 = vector.extract_strided_slice %10 {offsets = [0, 0], sizes = [16, 16], strides = [1, 1]} : vector<16x128xf32> to vector<16x16xf32>
    %12 = vector.extract_strided_slice %10 {offsets = [0, 1], sizes = [16, 16], strides = [1, 1]} : vector<16x128xf32> to vector<16x16xf32>
    %13 = arith.addf %11, %12 : vector<16x16xf32>
    %14 = vector.extract_strided_slice %10 {offsets = [0, 2], sizes = [16, 16], strides = [1, 1]} : vector<16x128xf32> to vector<16x16xf32>
    %15 = arith.addf %13, %14 : vector<16x16xf32>
    %16 = vector.extract_strided_slice %10 {offsets = [0, 3], sizes = [16, 16], strides = [1, 1]} : vector<16x128xf32> to vector<16x16xf32>
    %17 = arith.addf %15, %16 : vector<16x16xf32>
    %18 = vector.extract_strided_slice %10 {offsets = [0, 4], sizes = [16, 16], strides = [1, 1]} : vector<16x128xf32> to vector<16x16xf32>
    %19 = arith.addf %17, %18 : vector<16x16xf32>
    %cst = arith.constant 4.000000e-02 : f32
    %20 = vector.broadcast %cst : f32 to vector<16x16xf32>
    %21 = arith.mulf %19, %20 : vector<16x16xf32>
    %c0_3 = arith.constant 0 : index
    %c0_4 = arith.constant 0 : index
    %c0_5 = arith.constant 0 : index
    %c0_6 = arith.constant 0 : index
    %22 = vector.load %arg1[%c0_3, %c0_4, %c0_5, %c0_6] : memref<1x3x20x128xf32, #tpu.memory_space<vmem>>, vector<1x1x20x128xf32>
    %23 = vector.shape_cast %22 : vector<1x1x20x128xf32> to vector<20x128xf32>
    %24 = vector.extract_strided_slice %23 {offsets = [0, 0], sizes = [16, 128], strides = [1, 1]} : vector<20x128xf32> to vector<16x128xf32>
    %25 = vector.extract_strided_slice %23 {offsets = [1, 0], sizes = [16, 128], strides = [1, 1]} : vector<20x128xf32> to vector<16x128xf32>
    %26 = arith.addf %24, %25 : vector<16x128xf32>
    %27 = vector.extract_strided_slice %23 {offsets = [2, 0], sizes = [16, 128], strides = [1, 1]} : vector<20x128xf32> to vector<16x128xf32>
    %28 = arith.addf %26, %27 : vector<16x128xf32>
    %29 = vector.extract_strided_slice %23 {offsets = [3, 0], sizes = [16, 128], strides = [1, 1]} : vector<20x128xf32> to vector<16x128xf32>
    %30 = arith.addf %28, %29 : vector<16x128xf32>
    %31 = vector.extract_strided_slice %23 {offsets = [4, 0], sizes = [16, 128], strides = [1, 1]} : vector<20x128xf32> to vector<16x128xf32>
    %32 = arith.addf %30, %31 : vector<16x128xf32>
    %33 = vector.extract_strided_slice %32 {offsets = [0, 0], sizes = [16, 16], strides = [1, 1]} : vector<16x128xf32> to vector<16x16xf32>
    %34 = vector.extract_strided_slice %32 {offsets = [0, 1], sizes = [16, 16], strides = [1, 1]} : vector<16x128xf32> to vector<16x16xf32>
    %35 = arith.addf %33, %34 : vector<16x16xf32>
    %36 = vector.extract_strided_slice %32 {offsets = [0, 2], sizes = [16, 16], strides = [1, 1]} : vector<16x128xf32> to vector<16x16xf32>
    %37 = arith.addf %35, %36 : vector<16x16xf32>
    %38 = vector.extract_strided_slice %32 {offsets = [0, 3], sizes = [16, 16], strides = [1, 1]} : vector<16x128xf32> to vector<16x16xf32>
    %39 = arith.addf %37, %38 : vector<16x16xf32>
    %40 = vector.extract_strided_slice %32 {offsets = [0, 4], sizes = [16, 16], strides = [1, 1]} : vector<16x128xf32> to vector<16x16xf32>
    %41 = arith.addf %39, %40 : vector<16x16xf32>
    %cst_7 = arith.constant 4.000000e-02 : f32
    %42 = vector.broadcast %cst_7 : f32 to vector<16x16xf32>
    %43 = arith.mulf %41, %42 : vector<16x16xf32>
    %c0_8 = arith.constant 0 : index
    %c0_9 = arith.constant 0 : index
    %c0_10 = arith.constant 0 : index
    %c0_11 = arith.constant 0 : index
    %44 = vector.load %arg3[%c0_8, %c0_9, %c0_10, %c0_11] : memref<1x3x20x128xf32, #tpu.memory_space<vmem>>, vector<1x1x20x128xf32>
    %45 = vector.shape_cast %44 : vector<1x1x20x128xf32> to vector<20x128xf32>
    %46 = vector.extract_strided_slice %45 {offsets = [2, 2], sizes = [16, 16], strides = [1, 1]} : vector<20x128xf32> to vector<16x16xf32>
    %47 = arith.mulf %43, %46 : vector<16x16xf32>
    %48 = arith.addf %21, %47 : vector<16x16xf32>
    %c0_12 = arith.constant 0 : index
    %c1 = arith.constant 1 : index
    %c0_13 = arith.constant 0 : index
    %c0_14 = arith.constant 0 : index
    %49 = vector.load %arg1[%c0_12, %c1, %c0_13, %c0_14] : memref<1x3x20x128xf32, #tpu.memory_space<vmem>>, vector<1x1x20x128xf32>
    %50 = vector.shape_cast %49 : vector<1x1x20x128xf32> to vector<20x128xf32>
    %51 = vector.extract_strided_slice %50 {offsets = [0, 0], sizes = [16, 128], strides = [1, 1]} : vector<20x128xf32> to vector<16x128xf32>
    %52 = vector.extract_strided_slice %50 {offsets = [1, 0], sizes = [16, 128], strides = [1, 1]} : vector<20x128xf32> to vector<16x128xf32>
    %53 = arith.addf %51, %52 : vector<16x128xf32>
    %54 = vector.extract_strided_slice %50 {offsets = [2, 0], sizes = [16, 128], strides = [1, 1]} : vector<20x128xf32> to vector<16x128xf32>
    %55 = arith.addf %53, %54 : vector<16x128xf32>
    %56 = vector.extract_strided_slice %50 {offsets = [3, 0], sizes = [16, 128], strides = [1, 1]} : vector<20x128xf32> to vector<16x128xf32>
    %57 = arith.addf %55, %56 : vector<16x128xf32>
    %58 = vector.extract_strided_slice %50 {offsets = [4, 0], sizes = [16, 128], strides = [1, 1]} : vector<20x128xf32> to vector<16x128xf32>
    %59 = arith.addf %57, %58 : vector<16x128xf32>
    %60 = vector.extract_strided_slice %59 {offsets = [0, 0], sizes = [16, 16], strides = [1, 1]} : vector<16x128xf32> to vector<16x16xf32>
    %61 = vector.extract_strided_slice %59 {offsets = [0, 1], sizes = [16, 16], strides = [1, 1]} : vector<16x128xf32> to vector<16x16xf32>
    %62 = arith.addf %60, %61 : vector<16x16xf32>
    %63 = vector.extract_strided_slice %59 {offsets = [0, 2], sizes = [16, 16], strides = [1, 1]} : vector<16x128xf32> to vector<16x16xf32>
    %64 = arith.addf %62, %63 : vector<16x16xf32>
    %65 = vector.extract_strided_slice %59 {offsets = [0, 3], sizes = [16, 16], strides = [1, 1]} : vector<16x128xf32> to vector<16x16xf32>
    %66 = arith.addf %64, %65 : vector<16x16xf32>
    %67 = vector.extract_strided_slice %59 {offsets = [0, 4], sizes = [16, 16], strides = [1, 1]} : vector<16x128xf32> to vector<16x16xf32>
    %68 = arith.addf %66, %67 : vector<16x16xf32>
    %cst_15 = arith.constant 4.000000e-02 : f32
    %69 = vector.broadcast %cst_15 : f32 to vector<16x16xf32>
    %70 = arith.mulf %68, %69 : vector<16x16xf32>
    %c0_16 = arith.constant 0 : index
    %c1_17 = arith.constant 1 : index
    %c0_18 = arith.constant 0 : index
    %c0_19 = arith.constant 0 : index
    %71 = vector.load %arg3[%c0_16, %c1_17, %c0_18, %c0_19] : memref<1x3x20x128xf32, #tpu.memory_space<vmem>>, vector<1x1x20x128xf32>
    %72 = vector.shape_cast %71 : vector<1x1x20x128xf32> to vector<20x128xf32>
    %73 = vector.extract_strided_slice %72 {offsets = [2, 2], sizes = [16, 16], strides = [1, 1]} : vector<20x128xf32> to vector<16x16xf32>
    %74 = arith.mulf %70, %73 : vector<16x16xf32>
    %75 = arith.addf %48, %74 : vector<16x16xf32>
    %c0_20 = arith.constant 0 : index
    %c2 = arith.constant 2 : index
    %c0_21 = arith.constant 0 : index
    %c0_22 = arith.constant 0 : index
    %76 = vector.load %arg1[%c0_20, %c2, %c0_21, %c0_22] : memref<1x3x20x128xf32, #tpu.memory_space<vmem>>, vector<1x1x20x128xf32>
    %77 = vector.shape_cast %76 : vector<1x1x20x128xf32> to vector<20x128xf32>
    %78 = vector.extract_strided_slice %77 {offsets = [0, 0], sizes = [16, 128], strides = [1, 1]} : vector<20x128xf32> to vector<16x128xf32>
    %79 = vector.extract_strided_slice %77 {offsets = [1, 0], sizes = [16, 128], strides = [1, 1]} : vector<20x128xf32> to vector<16x128xf32>
    %80 = arith.addf %78, %79 : vector<16x128xf32>
    %81 = vector.extract_strided_slice %77 {offsets = [2, 0], sizes = [16, 128], strides = [1, 1]} : vector<20x128xf32> to vector<16x128xf32>
    %82 = arith.addf %80, %81 : vector<16x128xf32>
    %83 = vector.extract_strided_slice %77 {offsets = [3, 0], sizes = [16, 128], strides = [1, 1]} : vector<20x128xf32> to vector<16x128xf32>
    %84 = arith.addf %82, %83 : vector<16x128xf32>
    %85 = vector.extract_strided_slice %77 {offsets = [4, 0], sizes = [16, 128], strides = [1, 1]} : vector<20x128xf32> to vector<16x128xf32>
    %86 = arith.addf %84, %85 : vector<16x128xf32>
    %87 = vector.extract_strided_slice %86 {offsets = [0, 0], sizes = [16, 16], strides = [1, 1]} : vector<16x128xf32> to vector<16x16xf32>
    %88 = vector.extract_strided_slice %86 {offsets = [0, 1], sizes = [16, 16], strides = [1, 1]} : vector<16x128xf32> to vector<16x16xf32>
    %89 = arith.addf %87, %88 : vector<16x16xf32>
    %90 = vector.extract_strided_slice %86 {offsets = [0, 2], sizes = [16, 16], strides = [1, 1]} : vector<16x128xf32> to vector<16x16xf32>
    %91 = arith.addf %89, %90 : vector<16x16xf32>
    %92 = vector.extract_strided_slice %86 {offsets = [0, 3], sizes = [16, 16], strides = [1, 1]} : vector<16x128xf32> to vector<16x16xf32>
    %93 = arith.addf %91, %92 : vector<16x16xf32>
    %94 = vector.extract_strided_slice %86 {offsets = [0, 4], sizes = [16, 16], strides = [1, 1]} : vector<16x128xf32> to vector<16x16xf32>
    %95 = arith.addf %93, %94 : vector<16x16xf32>
    %cst_23 = arith.constant 4.000000e-02 : f32
    %96 = vector.broadcast %cst_23 : f32 to vector<16x16xf32>
    %97 = arith.mulf %95, %96 : vector<16x16xf32>
    %c0_24 = arith.constant 0 : index
    %c2_25 = arith.constant 2 : index
    %c0_26 = arith.constant 0 : index
    %c0_27 = arith.constant 0 : index
    %98 = vector.load %arg3[%c0_24, %c2_25, %c0_26, %c0_27] : memref<1x3x20x128xf32, #tpu.memory_space<vmem>>, vector<1x1x20x128xf32>
    %99 = vector.shape_cast %98 : vector<1x1x20x128xf32> to vector<20x128xf32>
    %100 = vector.extract_strided_slice %99 {offsets = [2, 2], sizes = [16, 16], strides = [1, 1]} : vector<20x128xf32> to vector<16x16xf32>
    %101 = arith.mulf %97, %100 : vector<16x16xf32>
    %102 = arith.addf %75, %101 : vector<16x16xf32>
    %c0_28 = arith.constant 0 : index
    %c0_29 = arith.constant 0 : index
    %c0_30 = arith.constant 0 : index
    %c0_31 = arith.constant 0 : index
    %103 = vector.load %arg4[%c0_28, %c0_29, %c0_30, %c0_31] : memref<1x1x16x128xf32, #tpu.memory_space<vmem>>, vector<1x1x16x16xf32>
    %104 = vector.shape_cast %103 : vector<1x1x16x16xf32> to vector<16x16xf32>
    %105 = vector.shape_cast %102 : vector<16x16xf32> to vector<1x1x16x16xf32>
    tpu.vector_store %arg4[%c0_28, %c0_29, %c0_30, %c0_31], %105 {strides = array<i32>} : memref<1x1x16x128xf32, #tpu.memory_space<vmem>>, vector<1x1x16x16xf32>,
    return
  }
  func.func @transform_0(%arg0: i32) -> (i32, i32, i32, i32) {
    %c0_i32 = arith.constant 0 : i32
    %c0_i32_0 = arith.constant 0 : i32
    %c0_i32_1 = arith.constant 0 : i32
    %c0_i32_2 = arith.constant 0 : i32
    return %arg0, %c0_i32, %c0_i32_0, %c0_i32_1 : i32, i32, i32, i32
  }
  func.func @transform_1(%arg0: i32) -> (i32, i32, i32, i32) {
    %c0_i32 = arith.constant 0 : i32
    %c0_i32_0 = arith.constant 0 : i32
    %c0_i32_1 = arith.constant 0 : i32
    %c0_i32_2 = arith.constant 0 : i32
    return %arg0, %c0_i32, %c0_i32_0, %c0_i32_1 : i32, i32, i32, i32
  }
  func.func @transform_2(%arg0: i32) -> (i32, i32, i32, i32) {
    %c0_i32 = arith.constant 0 : i32
    %c0_i32_0 = arith.constant 0 : i32
    %c0_i32_1 = arith.constant 0 : i32
    %c0_i32_2 = arith.constant 0 : i32
    return %arg0, %c0_i32, %c0_i32_0, %c0_i32_1 : i32, i32, i32, i32
  }
  func.func @transform_3(%arg0: i32) -> (i32, i32, i32, i32) {
    %c0_i32 = arith.constant 0 : i32
    %c0_i32_0 = arith.constant 0 : i32
    %c0_i32_1 = arith.constant 0 : i32
    %c0_i32_2 = arith.constant 0 : i32
    return %arg0, %c0_i32, %c0_i32_0, %c0_i32_1 : i32, i32, i32, i32
  }
}

</mosaic_0001>

<bundles_post_ra>
// kernel: color_guided_filter.4
= control target key start
LH: loop header
LB: loop body
LE: loop exit
PB: predicated region body
PF: predicated region fallthrough
CT: control target
= control target key end

     0   :  { %s997_s18 = smov 0   ;;  %s999_s19 = smov 0   ;;  %s1198_s0 = inlined_call_operand.vmem [shape: f32[2,3,16,128], index: 0, kind: input, shape index: {}]   ;;  %s1199_s1 = inlined_call_operand.vmem [shape: f32[2,1,16,128], index: 1, kind: input, shape index: {}]   ;;  %s1200_s2 = inlined_call_operand.vmem [shape: f32[2,3,16,128], index: 2, kind: input, shape index: {}]   ;;  %s1201_s3 = inlined_call_operand.vmem [shape: f32[2,6,16,128], index: 3, kind: input, shape index: {}]   ;;  %s1202_s4 = inlined_call_operand.vmem [shape: f32[2,3,16,128], index: 4, kind: output, shape index: {0}]   ;;  %s1203_s5 = inlined_call_operand.vmem [shape: f32[2,1,16,128], index: 5, kind: output, shape index: {1}]  }
   0x1   :  { %s1001_s20 = smov 0  }
   0x2 LB: > { %s35_s21 = sadd.s32 1, %s961_s19  ;;  %p878_p0 = scmp.ge.s32.totalorder %s965_s20, 1  ;;  %s965_s20 = sphi %s1001_s20, %s16_s20   ;;  %s961_s19 = sphi %s999_s19, %s1205_s19   ;;  %s957_s18 = sphi %s997_s18, %s1204_s18  }
   0x3   : > { %p37_p1 = scmp.ge.s32.totalorder %s35_s21, 2  ;;  %p295_p2 = scmp.lt.s32.totalorder %s965_s20, 3 }
   0x5   : > { %s1207_s21 = smov (%p37_p1, %s35_s21), 0  ;;  %p296_p3 = pnand %p878_p0, %p295_p2 }
   0x6   : > { %p386_p4 = scmp.lt.s32.totalorder (!%p296_p3), %s957_s18, 1 }
   0x7   : > { %299 = sbr.rel (%p296_p3) target bundleno = 67 (0x43), region = 36 }
   0xe   : > { %s1209_s18 = smov (!%p386_p4, %s957_s18), 1 }
   0xf   : > { %s1018_s22 = smul.u32 48, %s1209_s18  ;;  %s911_s23 = sshll.u32 %s1209_s18, 4 }
  0x10   : > { %s409_s26 = scalar_lea.vmem %s1199_s1, %s911_s23  ;;  %s914_s27 = smul.u32 96, %s1209_s18 }
  0x11   : > { %s1031_s30 = scalar_lea.vmem %s1198_s0, %s1018_s22  ;;  %s1037_s8 = scalar_lea.vmem %s1200_s2, %s1018_s22  ;;  %v1039_v0 = vld [vmem:[%s409_s26] sm:$0xff]  ;;  %v1062_v8 = vld [vmem:[%s409_s26 + $0x8] sm:$0xff] }
  0x12   : > { %s1044_s11 = scalar_lea.vmem %s1201_s3, %s914_s27  ;;  %v1047_v1 = vld [vmem:[%s1031_s30] sm:$0xff]  ;;  %v1050_v2 = vld [vmem:[%s1031_s30 + $0x10] sm:$0xff]  ;;  %v1089_v29 = vld [vmem:[%s1031_s30 + $0x8] sm:$0xff]  ;;  %s448_s14 = scalar_lea.vmem %s1202_s4, %s1018_s22 }
  0x13   : > { %v1053_v3 = vld [vmem:[%s1031_s30 + $0x20] sm:$0xff]  ;;  %v475_v5 = vmul.f32 %v1039_v0, %v1047_v1  ;;  %v482_v6 = vmul.f32 %v1050_v2, %v1039_v0  ;;  %v495_v7 = vmul.f32 %v1047_v1, %v1047_v1  ;;  %v895_v10 = vld [vmem:[%s1044_s11 + $0x10] sm:$0xff]  ;;  %v504_v11 = vmul.f32 %v1050_v2, %v1047_v1  ;;  %v1097_v33 = vld [vmem:[%s1031_s30 + $0x18] sm:$0xff]  ;;  %s461_s17 = scalar_lea.vmem %s1203_s5, %s911_s23 }
  0x14   : > { %v473_v4 = vld [vmem:[%s1037_s8] sm:$0xff]  ;;  %v511_v13 = vmul.f32 %v1053_v3, %v1047_v1  ;;  %v518_v14 = vmul.f32 %v1050_v2, %v1050_v2  ;;  %v527_v15 = vmul.f32 %v1053_v3, %v1050_v2  ;;  %v891_v16 = vld [vmem:[%s1037_s8 + $0x10] sm:$0xff]  ;;  %v489_v17 = vmul.f32 %v1053_v3, %v1039_v0  ;;  %v1106_v39 = vld [vmem:[%s1031_s30 + $0x28] sm:$0xff] }
  0x15   : > { %v493_v9 = vld [vmem:[%s1044_s11] sm:$0xff]  ;;  %v899_v19 = vld [vmem:[%s1044_s11 + $0x30] sm:$0xff]  ;;  %v1081_v22 = vsub.f32 %v895_v10, %v504_v11  ;;  %v1084_v26 = vsub.f32 %v473_v4, %v475_v5  ;;  %v534_v28 = vmul.f32 %v1053_v3, %v1053_v3  ;;  %v1091_v30 = vsub.f32 %v891_v16, %v482_v6  ;;  %v474_v40 = vld [vmem:[%s1037_s8 + $0x8] sm:$0xff] }
  0x16   : > { %v897_v12 = vld [vmem:[%s1044_s11 + $0x20] sm:$0xff]  ;;  %v497_v18 = vsub.f32 %v493_v9, %v495_v7  ;;  %v520_v23 = vsub.f32 %v899_v19, %v518_v14  ;;  %v903_v25 = vld [vmem:[%s1044_s11 + $0x50] sm:$0xff]  ;;  %v476_v34 = vmul.f32 %v1062_v8, %v1089_v29  ;;  %v898_v41 = vld [vmem:[%s1044_s11 + $0x28] sm:$0xff]  ;;  %v496_v43 = vmul.f32 %v1089_v29, %v1089_v29 }
  0x17   : > { %v901_v20 = vld [vmem:[%s1044_s11 + $0x40] sm:$0xff]  ;;  %v513_v27 = vsub.f32 %v897_v12, %v511_v13  ;;  %v536_v37 = vsub.f32 %v903_v25, %v534_v28  ;;  %v505_v44 = vmul.f32 %v1097_v33, %v1089_v29  ;;  %v512_v45 = vmul.f32 %v1106_v39, %v1089_v29  ;;  %v900_v46 = vld [vmem:[%s1044_s11 + $0x38] sm:$0xff]  ;;  %v902_v47 = vld [vmem:[%s1044_s11 + $0x48] sm:$0xff] }
  0x18   : > { %v893_v21 = vld [vmem:[%s1037_s8 + $0x20] sm:$0xff]  ;;  %v529_v24 = vsub.f32 %v901_v20, %v527_v15  ;;  %v1093_v31 = vadd.f32 0.01, %v520_v23  ;;  %v1103_v36 = vadd.f32 0.01, %v497_v18  ;;  %v494_v50 = vld [vmem:[%s1044_s11 + $0x8] sm:$0xff]  ;;  %v519_v52 = vmul.f32 %v1097_v33, %v1097_v33 }
  0x19   : > { %v1101_v35 = vsub.f32 %v893_v21, %v489_v17  ;;  %v538_v48 = vadd.f32 0.01, %v536_v37  ;;  %v896_v51 = vld [vmem:[%s1044_s11 + $0x18] sm:$0xff]  ;;  %v528_v53 = vmul.f32 %v1106_v39, %v1097_v33  ;;  %v1127_v55 = vsub.f32 %v474_v40, %v476_v34 }
  0x1a   : > { %v552_v32 = vmul.f32 %v529_v24, %v1081_v22  ;;  %v542_v38 = vmul.f32 %v529_v24, %v529_v24  ;;  %v554_v42 = vmul.f32 %v1093_v31, %v513_v27  ;;  %v546_v49 = vmul.f32 %v529_v24, %v513_v27  ;;  %v904_v62 = vld [vmem:[%s1044_s11 + $0x58] sm:$0xff] }
  0x1b   : > { %v483_v56 = vmul.f32 %v1097_v33, %v1062_v8  ;;  %v514_v57 = vsub.f32 %v898_v41, %v512_v45  ;;  %v540_v58 = vmul.f32 %v538_v48, %v1093_v31  ;;  %v548_v59 = vmul.f32 %v538_v48, %v1081_v22 }
  0x1c   : > { %v1125_v54 = vsub.f32 %v552_v32, %v554_v42  ;;  %v521_v60 = vsub.f32 %v900_v46, %v519_v52  ;;  %v530_v61 = vsub.f32 %v902_v47, %v528_v53  ;;  %v498_v4 = vsub.f32 %v494_v50, %v496_v43 }
  0x1d   : > { %v1135_v5 = vsub.f32 %v896_v51, %v505_v44  ;;  %v535_v6 = vmul.f32 %v1106_v39, %v1106_v39  ;;  %v544_v7 = vsub.f32 %v540_v58, %v542_v38  ;;  %v550_v9 = vsub.f32 %v546_v49, %v548_v59  ;;  %v892_v38 = vld [vmem:[%s1037_s8 + $0x18] sm:$0xff]  ;;  %v894_v51 = vld [vmem:[%s1037_s8 + $0x28] sm:$0xff] }
  0x1e   : > { %v564_v63 = vmul.f32 %v1125_v54, %v513_v27  ;;  %v523_v10 = vadd.f32 0.01, %v521_v60  ;;  %v543_v11 = vmul.f32 %v530_v61, %v530_v61  ;;  %v547_v13 = vmul.f32 %v530_v61, %v514_v57 }
  0x1f   : > { %v537_v12 = vsub.f32 %v904_v62, %v535_v6  ;;  %v553_v14 = vmul.f32 %v530_v61, %v1135_v5  ;;  %v578_v15 = vmul.f32 %v538_v48, %v1103_v36  ;;  %v558_v16 = vmul.f32 %v544_v7, %v1103_v36 }
  0x20   : > { %v560_v17 = vmul.f32 %v550_v9, %v1081_v22  ;;  %v568_v18 = vmul.f32 %v544_v7, %v1084_v26  ;;  %v570_v19 = vmul.f32 %v550_v9, %v1091_v30  ;;  %v555_v21 = vmul.f32 %v523_v10, %v514_v57 }
  0x21   : > { %v539_v20 = vadd.f32 0.01, %v537_v12  ;;  %v580_v23 = vmul.f32 %v513_v27, %v513_v27  ;;  %v584_v25 = vmul.f32 %v513_v27, %v1081_v22  ;;  %v490_v32 = vmul.f32 %v1106_v39, %v1062_v8 }
  0x22   : > { %v562_v28 = vadd.f32 %v560_v17, %v558_v16  ;;  %v500_v34 = vadd.f32 0.01, %v498_v4  ;;  %v586_v37 = vmul.f32 %v529_v24, %v1103_v36  ;;  %v557_v42 = vsub.f32 %v553_v14, %v555_v21 }
  0x23   : > { %v541_v40 = vmul.f32 %v539_v20, %v523_v10  ;;  %v549_v41 = vmul.f32 %v539_v20, %v1135_v5  ;;  %v582_v43 = vsub.f32 %v578_v15, %v580_v23  ;;  %v590_v46 = vmul.f32 %v550_v9, %v1084_v26 }
  0x24   : > { %v566_v44 = vadd.f32 %v564_v63, %v562_v28  ;;  %v588_v45 = vsub.f32 %v584_v25, %v586_v37  ;;  %v579_v47 = vmul.f32 %v539_v20, %v500_v34  ;;  %v572_v27 = vadd.f32 %v570_v19, %v568_v18 }
  0x25   : > { %v574_v48 = vmul.f32 %v1125_v54, %v1101_v35  ;;  %v545_v49 = vsub.f32 %v541_v40, %v543_v11  ;;  %v551_v50 = vsub.f32 %v547_v13, %v549_v41  ;;  %v485_v24 = vsub.f32 %v892_v38, %v483_v56 }
  0x26   : > { %939 = vrcp.f32 %v566_v44  ;;  %v592_v52 = vmul.f32 %v582_v43, %v1091_v30  ;;  %v581_v53 = vmul.f32 %v514_v57, %v514_v57  ;;  %v565_v60 = vmul.f32 %v557_v42, %v514_v57 }
  0x27   : > { %v559_v58 = vmul.f32 %v545_v49, %v500_v34  ;;  %v561_v59 = vmul.f32 %v551_v50, %v1135_v5  ;;  %v596_v62 = vmul.f32 %v588_v45, %v1101_v35  ;;  %v585_v6 = vmul.f32 %v514_v57, %v1135_v5 }
  0x28   : > { %v594_v63 = vadd.f32 %v592_v52, %v590_v46  ;;  %v583_v4 = vsub.f32 %v579_v47, %v581_v53  ;;  %v587_v7 = vmul.f32 %v530_v61, %v500_v34  ;;  %v576_v9 = vadd.f32 %v574_v48, %v572_v27 }
  0x29   : > { %v492_v11 = vsub.f32 %v894_v51, %v490_v32  ;;  %v563_v12 = vadd.f32 %v561_v59, %v559_v58  ;;  %v600_v56 = vmul.f32 %v1093_v31, %v1103_v36  ;;  %v569_v13 = vmul.f32 %v545_v49, %v1127_v55 }
  0x2a   : > { %v571_v14 = vmul.f32 %v551_v50, %v485_v24  ;;  %v589_v15 = vsub.f32 %v585_v6, %v587_v7  ;;  %v602_v16 = vmul.f32 %v1081_v22, %v1081_v22  ;;  %v591_v18 = vmul.f32 %v551_v50, %v1127_v55 }
  0x2b   : > { %v567_v17 = vadd.f32 %v565_v60, %v563_v12  ;;  %v606_v57 = vmul.f32 %v1125_v54, %v1084_v26  ;;  %v608_v61 = vmul.f32 %v588_v45, %v1091_v30  ;;  %v598_v19 = vadd.f32 %v596_v62, %v594_v63 }
  0x2c   : > { %v593_v20 = vmul.f32 %v583_v4, %v485_v24  ;;  %v604_v21 = vsub.f32 %v600_v56, %v602_v16  ;;  %v601_v31 = vmul.f32 %v523_v10, %v500_v34  ;;  %v603_v23 = vmul.f32 %v1135_v5, %v1135_v5 }
  0x2d   : > { %941 = vrcp.f32 %v567_v17  ;;  %v610_v36 = vadd.f32 %v608_v61, %v606_v57  ;;  %v607_v22 = vmul.f32 %v557_v42, %v1127_v55  ;;  %v609_v28 = vmul.f32 %v589_v15, %v485_v24 }
  0x2e   : > { %v612_v25 = vmul.f32 %v604_v21, %v1101_v35  ;;  %v573_v32 = vadd.f32 %v571_v14, %v569_v13  ;;  %v575_v37 = vmul.f32 %v557_v42, %v492_v11  ;;  %v605_v26 = vsub.f32 %v601_v31, %v603_v23 }
  0x2f   : > { %v595_v30 = vadd.f32 %v593_v20, %v591_v18  ;;  %v597_v10 = vmul.f32 %v589_v15, %v492_v11  ;;  %v611_v38 = vadd.f32 %v609_v28, %v607_v22 }
  0x30   : > { %v940_v54 = vpop.eup %939  ;;  %v614_v34 = vadd.f32 %v612_v25, %v610_v36  ;;  %v613_v5 = vmul.f32 %v605_v26, %v492_v11  ;;  %v577_v42 = vadd.f32 %v575_v37, %v573_v32 }
  0x31   : > { %v620_v40 = vmul.f32 %v940_v54, %v576_v9  ;;  %v622_v41 = vmul.f32 %v940_v54, %v598_v19  ;;  %v599_v44 = vadd.f32 %v597_v10, %v595_v30 }
  0x32   : > { %v624_v43 = vmul.f32 %v940_v54, %v614_v34  ;;  %v615_v45 = vadd.f32 %v613_v5, %v611_v38 }
  0x33   : > { %626 = vst [vmem:[%s448_s14] sm:$0xff] %v620_v40  ;;  %v628_v35 = vmul.f32 %v620_v40, %v1047_v1  ;;  %905 = vst [vmem:[%s448_s14 + $0x10] sm:$0xff] %v622_v41  ;;  %v635_v55 = vmul.f32 %v1050_v2, %v622_v41 }
  0x34   : > { %907 = vst [vmem:[%s448_s14 + $0x20] sm:$0xff] %v624_v43  ;;  %v642_v47 = vmul.f32 %v1053_v3, %v624_v43 }
  0x35   : > { %v630_v46 = vsub.f32 %v1039_v0, %v628_v35 }
  0x37   : > { %v942_v27 = vpop.eup %941  ;;  %v637_v48 = vsub.f32 %v630_v46, %v635_v55 }
  0x38   : > { %v621_v49 = vmul.f32 %v942_v27, %v577_v42  ;;  %v623_v50 = vmul.f32 %v942_v27, %v599_v44  ;;  %v625_v24 = vmul.f32 %v942_v27, %v615_v45 }
  0x39   : > { %v644_v1 = vsub.f32 %v637_v48, %v642_v47 }
  0x3a   : > { %627 = vst [vmem:[%s448_s14 + $0x8] sm:$0xff] %v621_v49  ;;  %v629_v2 = vmul.f32 %v621_v49, %v1089_v29  ;;  %906 = vst [vmem:[%s448_s14 + $0x18] sm:$0xff] %v623_v50  ;;  %v636_v51 = vmul.f32 %v1097_v33, %v623_v50  ;;  %v643_v3 = vmul.f32 %v1106_v39, %v625_v24 }
  0x3b   : > { %908 = vst [vmem:[%s448_s14 + $0x28] sm:$0xff] %v625_v24  ;;  %646 = vst [vmem:[%s461_s17] sm:$0xff] %v644_v1 }
  0x3c   : > { %v631_v0 = vsub.f32 %v1062_v8, %v629_v2 }
  0x3e   : > { %v638_v52 = vsub.f32 %v631_v0, %v636_v51 }
  0x40   : > { %v645_v53 = vsub.f32 %v638_v52, %v643_v3 }
  0x42   : > { %647 = vst [vmem:[%s461_s17 + $0x8] sm:$0xff] %v645_v53 }
  0x43 PF: > { %s16_s20 = sadd.s32 1, %s965_s20   ;;  %s1204_s18 = smov %s961_s19 }
  0x44   : > { %p13_p5 = scmp.ge.s32.totalorder %s16_s20, 4   ;;  %s1205_s19 = smov %s1207_s21 }
  0x46   :  { %15 = sbr.rel (!%p13_p5) target bundleno = 2 (0x2), region = 98 }

// kernel: color_guided_filter.5
= control target key start
LH: loop header
LB: loop body
LE: loop exit
PB: predicated region body
PF: predicated region fallthrough
CT: control target
= control target key end

     0   :  { %8 = vsyncpa [#allocation3], 0  ;;  %s1138_s0 = inlined_call_operand.vmem [shape: f32[2,3,20,128], index: 0, kind: input, shape index: {}]   ;;  %s1139_s1 = inlined_call_operand.vmem [shape: f32[2,1,20,128], index: 1, kind: input, shape index: {}]   ;;  %s1140_s2 = inlined_call_operand.vmem [shape: f32[2,3,20,128], index: 2, kind: input, shape index: {}]   ;;  %s1141_s3 = inlined_call_operand.hbm [shape: f32[2,1,16,128], index: 3, kind: output, shape index: {}]  }
   0x1   :  { %10 = vsyncpa [#allocation3 + $0x1], 0  ;;  %s859_s12 = smov 0   ;;  %s861_s13 = smov 0  }
   0x2   :  { %s863_s14 = smov 0   ;;  %s865_s15 = smov 0  }
   0x3 LB: > { %s880_s16 = sadd.s32 4294967295, %s830_s15   ;;  %s695_s17 = sadd.s32 4294967294, %s830_s15   ;;  %s830_s15 = sphi %s865_s15, %s1147_s15   ;;  %s826_s14 = sphi %s863_s14, %s1146_s14   ;;  %s822_s13 = sphi %s861_s13, %s1145_s13   ;;  %s818_s12 = sphi %s859_s12, %s1144_s12  }
   0x4   : > { %s884_s18 = sadd.s32 1, %s830_s15   ;;  %s101_s19 = sadd.s32 1, %s826_s14 }
   0x5   : > { %s98_s20 = ssub.s32 %s830_s15, %s884_s18  ;;  %p111_p0 = scmp.ne.s32.totalorder %s826_s14, %s822_s13 }
   0x6   : > { %p99_p1 = scmp.eq.s32.totalorder %s98_s20, 0  ;;  %p112_p2 = scmp.eq.s32.totalorder %s880_s16, 1 }
   0x7   : > { %p117_p3 = scmp.ne.s32.totalorder %s822_s13, %s818_s12  ;;  %p118_p4 = scmp.eq.s32.totalorder %s695_s17, 1 }
   0x8   : > { %s895_s21 = scalar_select %p99_p1, %s826_s14, %s101_s19  }
   0x9   : > { %p897_p5 = por %p112_p2, %p111_p0  ;;  %p901_p6 = por %p118_p4, %p117_p3 }
   0xa   : > { %p698_p7 = scmp.ge.s32.totalorder %s830_s15, 1  ;;  %p160_p8 = scmp.lt.s32.totalorder %s830_s15, 3 }
   0xc   : > { %p161_p9 = pnand %p698_p7, %p160_p8 }
   0xd   : > { %p194_p10 = scmp.lt.s32.totalorder (!%p161_p9), %s880_s16, 1  ;;  %vm215_vm0 = vcmask (!%p161_p9), 1046528   ;;  %vm225_vm1 = vcmask (!%p161_p9), 1045504   ;;  %vm235_vm2 = vcmask (!%p161_p9), 1044480   ;;  %vm245_vm3 = vcmask (!%p161_p9), 1043456   ;;  %s832_s6 = smov (!%p161_p9), 127  }
   0xe   : > { %164 = sbr.rel (%p161_p9) target bundleno = 248 (0xf8), region = 32  ;;  %s833_s10 = smov (!%p161_p9), 126   ;;  %vm592_vm4 = vcmask (!%p161_p9), 130048  }
   0xf   : > { %s834_s11 = smov (!%p161_p9), 125   ;;  %s835_s17 = smov (!%p161_p9), 124  }
  0x10   : > { %s191_s19 = sand.u32 (!%p161_p9), 1, %s822_s13   ;;  %s836_s4 = smov (!%p161_p9), [#allocation2]  }
  0x11   : > { %s699_s20 = sshll.u32 (!%p161_p9), %s191_s19, 4 }
  0x15   : > { %s909_s24 = scalar_select %p194_p10, %s880_s16, 1 }
  0x17   : > { %s722_s25 = smul.u32 24, %s909_s24 }
  0x18   : > { %s721_s26 = smul.u32 72, %s909_s24  ;;  %s193_s24 = scalar_lea.vmem [#allocation2], %s699_s20 }
  0x19   : > { %s203_s29 = scalar_lea.vmem %s1139_s1, %s722_s25  ;;  %s609_s25 = sshll.u32 %s193_s24, 4  ;;  %s1093_s25 = int_to_ptr.vmem [resolvable:$true] %s609_s25 }
  0x1a   : > { %v209_v0 = vld [vmem:[%s203_s29] sm:$0xff]  ;;  %v210_v1 = vld [vmem:[%s203_s29 + $0x8] sm:$0xff]  ;;  %s921_s5 = scalar_lea.vmem %s1138_s0, %s721_s26  ;;  %v211_v20 = vld [vmem:[%s203_s29 + $0x10] sm:$0xf]  ;;  %s979_s9 = scalar_lea.vmem %s1140_s2, %s721_s26 }
  0x1b   : > { %v216_v2 = vrot.slane %v209_v0, 1  ;;  %v217_v3 = vrot.slane %v210_v1, 1  ;;  %v226_v4 = vrot.slane %v209_v0, 2  ;;  %v227_v5 = vrot.slane %v210_v1, 2  ;;  %v291_v6 = vld [vmem:[%s921_s5] sm:$0xff]  ;;  %v292_v7 = vld [vmem:[%s921_s5 + $0x8] sm:$0xff] }
  0x1c   : > { %v236_v8 = vrot.slane %v209_v0, 3  ;;  %v237_v9 = vrot.slane %v210_v1, 3  ;;  %v246_v10 = vrot.slane %v209_v0, 4  ;;  %v247_v11 = vrot.slane %v210_v1, 4  ;;  %v293_v29 = vld [vmem:[%s921_s5 + $0x10] sm:$0xf] }
  0x1d   : > { %v218_v12 = vsel %vm215_vm0, %v216_v2, %v217_v3  ;;  %v228_v13 = vsel %vm225_vm1, %v226_v4, %v227_v5  ;;  %v297_v14 = vrot.slane %v291_v6, 1  ;;  %v298_v15 = vrot.slane %v292_v7, 1  ;;  %v704_v46 = vld [vmem:[%s921_s5 + $0x20] sm:$0xff]  ;;  %v705_v47 = vld [vmem:[%s921_s5 + $0x28] sm:$0xf]  ;;  %s720_s26 = sshll.u32 %s880_s16, 8 }
  0x1e   : > { %v223_v16 = vadd.f32 %v218_v12, %v209_v0  ;;  %v238_v17 = vsel %vm235_vm2, %v236_v8, %v237_v9  ;;  %v248_v18 = vsel %vm245_vm3, %v246_v10, %v247_v11  ;;  %v306_v19 = vrot.slane %v291_v6, 2  ;;  %v703_v0 = vld [vmem:[%s921_s5 + $0x18] sm:$0xff]  ;;  %s1091_s29 = scalar_lea.hbm %s1141_s3, %s720_s26  ;;  %s1097_s16 = scalar_lea.sflag [#allocation3], %s191_s19 }
  0x1f   : > { %v299_v21 = vsel %vm215_vm0, %v297_v14, %v298_v15  ;;  %v307_v22 = vrot.slane %v292_v7, 2  ;;  %v315_v23 = vrot.slane %v291_v6, 3  ;;  %v316_v24 = vrot.slane %v292_v7, 3  ;;  %s768_s30 = scalar_lea.vmem %s1093_s25, 256 }
  0x20   : > { %v233_v25 = vadd.f32 %v228_v13, %v223_v16  ;;  %v304_v26 = vadd.f32 %v299_v21, %v291_v6  ;;  %v324_v27 = vrot.slane %v291_v6, 4  ;;  %v325_v28 = vrot.slane %v292_v7, 4  ;;  %p769_p11 = scmp.ne.s32.totalorder %s1093_s25, %s768_s30 }
  0x21   : > { %v308_v30 = vsel %vm225_vm1, %v306_v19, %v307_v22  ;;  %v317_v31 = vsel %vm235_vm2, %v315_v23, %v316_v24  ;;  %v219_v32 = vrot.slane %v211_v20, 1  ;;  %v229_v33 = vrot.slane %v211_v20, 2 }
  0x22   : > { %v243_v34 = vadd.f32 %v238_v17, %v233_v25  ;;  %v313_v35 = vadd.f32 %v308_v30, %v304_v26  ;;  %v326_v36 = vsel %vm245_vm3, %v324_v27, %v325_v28  ;;  %v239_v37 = vrot.slane %v211_v20, 3  ;;  %p770_p12 = pnand %p769_p11, %p897_p5 }
  0x23   : > { %v220_v38 = vsel %vm215_vm0, %v217_v3, %v219_v32  ;;  %v230_v39 = vsel %vm225_vm1, %v227_v5, %v229_v33  ;;  %v249_v40 = vrot.slane %v211_v20, 4  ;;  %v300_v41 = vrot.slane %v293_v29, 1 }
  0x24   : > { %v936_v42 = vadd.f32 %v248_v18, %v243_v34  ;;  %v322_v43 = vadd.f32 %v317_v31, %v313_v35  ;;  %v224_v44 = vadd.f32 %v220_v38, %v210_v1  ;;  %v240_v45 = vsel %vm235_vm2, %v237_v9, %v239_v37  ;;  %v957_v9 = vld [vmem:[%s921_s5 + $0x38] sm:$0xff]  ;;  %v966_v18 = vld [vmem:[%s921_s5 + $0x40] sm:$0xf]  ;;  %v370_v35 = vld [vmem:[%s979_s9 + $0x8] sm:$0xff]  ;;  %p771_p13 = pneg %p770_p12 }
  0x25   : > { %v250_v48 = vsel %vm245_vm3, %v247_v11, %v249_v40  ;;  %v301_v49 = vsel %vm215_vm0, %v298_v15, %v300_v41  ;;  %v309_v50 = vrot.slane %v293_v29, 2  ;;  %v318_v51 = vrot.slane %v293_v29, 3  ;;  %v371_v38 = vld [vmem:[%s979_s9 + $0x10] sm:$0xf] }
  0x26   : > { %257 = vrot.lane.b32.xlu1 %v936_v42, %s832_s6  ;;  %v945_v52 = vadd.f32 %v326_v36, %v322_v43  ;;  %v234_v53 = vadd.f32 %v230_v39, %v224_v44  ;;  %v305_v54 = vadd.f32 %v301_v49, %v292_v7  ;;  %v327_v55 = vrot.slane %v293_v29, 4  ;;  %v369_v43 = vld [vmem:[%s979_s9] sm:$0xff]  ;;  %v708_v49 = vld [vmem:[%s979_s9 + $0x28] sm:$0xf] }
  0x27   : > { %v310_v56 = vsel %vm225_vm1, %v307_v22, %v309_v50  ;;  %v319_v57 = vsel %vm235_vm2, %v316_v24, %v318_v51  ;;  %v398_v58 = vrot.slane %v704_v46, 1  ;;  %v400_v59 = vrot.slane %v705_v47, 1  ;;  %v707_v44 = vld [vmem:[%s979_s9 + $0x20] sm:$0xff]  ;;  %v706_v50 = vld [vmem:[%s979_s9 + $0x18] sm:$0xff] }
  0x28   : > { %335 = vrot.lane.b32.xlu0 %v945_v52, %s832_s6  ;;  %v244_v60 = vadd.f32 %v240_v45, %v234_v53  ;;  %v314_v61 = vadd.f32 %v310_v56, %v305_v54  ;;  %v328_v62 = vsel %vm245_vm3, %v325_v28, %v327_v55  ;;  %v407_v63 = vrot.slane %v704_v46, 2  ;;  %v984_v28 = vld [vmem:[%s921_s5 + $0x30] sm:$0xff]  ;;  %v713_v51 = vld [vmem:[%s979_s9 + $0x38] sm:$0xff]  ;;  %s772_s5 = sshll.u32 %s836_s4, 4  ;;  %s773_s5 = int_to_ptr.vmem [resolvable:$false] %s772_s5 }
  0x29   : > { %v401_v1 = vsel %vm215_vm0, %v398_v58, %v400_v59  ;;  %v409_v2 = vrot.slane %v705_v47, 2  ;;  %v416_v3 = vrot.slane %v704_v46, 3  ;;  %v418_v4 = vrot.slane %v705_v47, 3  ;;  %p775_p0 = scmp.lt.s32.totalorder %s1093_s25, %s773_s5 }
  0x2a   : > { %v954_v5 = vadd.f32 %v250_v48, %v244_v60  ;;  %v323_v6 = vadd.f32 %v319_v57, %v314_v61  ;;  %v405_v7 = vadd.f32 %v704_v46, %v401_v1  ;;  %v425_v8 = vrot.slane %v704_v46, 4  ;;  %v714_v57 = vld [vmem:[%s979_s9 + $0x40] sm:$0xf] }
  0x2b   : > { %v410_v10 = vsel %vm225_vm1, %v407_v63, %v409_v2  ;;  %v419_v11 = vsel %vm235_vm2, %v416_v3, %v418_v4  ;;  %v427_v12 = vrot.slane %v705_v47, 4  ;;  %v397_v13 = vrot.slane %v703_v0, 1 }
  0x2c   : > { %259 = vrot.lane.b32.xlu1 %v954_v5, %s832_s6  ;;  %v963_v14 = vadd.f32 %v328_v62, %v323_v6  ;;  %v414_v15 = vadd.f32 %v410_v10, %v405_v7  ;;  %v406_v16 = vrot.slane %v703_v0, 2  ;;  %v415_v17 = vrot.slane %v703_v0, 3  ;;  %v712_v62 = vld [vmem:[%s979_s9 + $0x30] sm:$0xff] }
  0x2d   : > { %v428_v19 = vsel %vm245_vm3, %v425_v8, %v427_v12  ;;  %v399_v20 = vsel %vm215_vm0, %v397_v13, %v398_v58  ;;  %v424_v21 = vrot.slane %v703_v0, 4  ;;  %v499_v22 = vrot.slane %v957_v9, 1 }
  0x2e   : > { %337 = vrot.lane.b32.xlu0 %v963_v14, %s832_s6  ;;  %v423_v23 = vadd.f32 %v419_v11, %v414_v15  ;;  %v404_v24 = vadd.f32 %v703_v0, %v399_v20  ;;  %v408_v25 = vsel %vm225_vm1, %v406_v16, %v407_v63  ;;  %v417_v26 = vsel %vm235_vm2, %v415_v17, %v416_v3 }
  0x2f   : > { %v501_v27 = vrot.slane %v966_v18, 1  ;;  %v426_v31 = vsel %vm245_vm3, %v424_v21, %v425_v8  ;;  %v508_v33 = vrot.slane %v957_v9, 2  ;;  %v510_v34 = vrot.slane %v966_v18, 2 }
  0x30   : > { %345 = vrot.lane.b32.xlu1 %v963_v14, %s833_s10  ;;  %v988_v29 = vadd.f32 %v428_v19, %v423_v23  ;;  %v413_v30 = vadd.f32 %v408_v25, %v404_v24  ;;  %v498_v37 = vrot.slane %v984_v28, 1  ;;  %v517_v39 = vrot.slane %v957_v9, 3 }
  0x31   : > { %v502_v32 = vsel %vm215_vm0, %v499_v22, %v501_v27  ;;  %v519_v40 = vrot.slane %v966_v18, 3  ;;  %v507_v41 = vrot.slane %v984_v28, 2  ;;  %v376_v48 = vrot.slane %v370_v35, 2 }
  0x32   : > { %343 = vrot.lane.b32.xlu0 %v945_v52, %s833_s10  ;;  %v422_v36 = vadd.f32 %v417_v26, %v413_v30  ;;  %v506_v46 = vadd.f32 %v957_v9, %v502_v32  ;;  %v500_v47 = vsel %vm215_vm0, %v498_v37, %v499_v22  ;;  %v511_v53 = vsel %vm225_vm1, %v508_v33, %v510_v34 }
  0x33   : > { %v526_v54 = vrot.slane %v957_v9, 4  ;;  %v528_v55 = vrot.slane %v966_v18, 4  ;;  %v516_v56 = vrot.slane %v984_v28, 3  ;;  %v505_v58 = vadd.f32 %v984_v28, %v500_v47 }
  0x34   : > { %437 = vrot.lane.b32.xlu1 %v988_v29, %s832_s6  ;;  %v1006_v45 = vadd.f32 %v426_v31, %v422_v36  ;;  %v378_v59 = vrot.slane %v371_v38, 2  ;;  %v375_v60 = vrot.slane %v369_v43, 2  ;;  %v477_v61 = vrot.slane %v707_v44, 2 }
  0x35   : > { %v509_v63 = vsel %vm225_vm1, %v507_v41, %v508_v33  ;;  %v479_v0 = vrot.slane %v708_v49, 2  ;;  %v476_v1 = vrot.slane %v706_v50, 2  ;;  %v578_v2 = vrot.slane %v713_v51, 2 }
  0x36   : > { %435 = vrot.lane.b32.xlu0 %v1006_v45, %s832_s6  ;;  %v515_v3 = vadd.f32 %v511_v53, %v506_v46  ;;  %v379_v4 = vsel %vm225_vm1, %v376_v48, %v378_v59  ;;  %v377_v6 = vsel %vm225_vm1, %v375_v60, %v376_v48  ;;  %v580_v7 = vrot.slane %v714_v57, 2 }
  0x37   : > { %v520_v8 = vsel %vm235_vm2, %v517_v39, %v519_v40  ;;  %v480_v9 = vsel %vm225_vm1, %v477_v61, %v479_v0  ;;  %v478_v10 = vsel %vm225_vm1, %v476_v1, %v477_v61  ;;  %v577_v11 = vrot.slane %v712_v62, 2 }
  0x38   : > { %267 = vrot.lane.b32.xlu1 %v954_v5, %s833_s10  ;;  %v514_v12 = vadd.f32 %v509_v63, %v505_v58  ;;  %v581_v13 = vsel %vm225_vm1, %v578_v2, %v580_v7  ;;  %v518_v15 = vsel %vm235_vm2, %v516_v56, %v517_v39  ;;  %v525_v16 = vrot.slane %v984_v28, 4 }
  0x39   : > { %v579_v17 = vsel %vm225_vm1, %v577_v11, %v578_v2  ;;  %v524_v18 = vadd.f32 %v520_v8, %v515_v3  ;;  %v529_v19 = vsel %vm245_vm3, %v526_v54, %v528_v55 }
  0x3a   : > { %265 = vrot.lane.b32.xlu0 %v936_v42, %s833_s10  ;;  %v523_v20 = vadd.f32 %v518_v15, %v514_v12  ;;  %v527_v21 = vsel %vm245_vm3, %v525_v16, %v526_v54 }
  0x3b   : > { %v1042_v22 = vadd.f32 %v529_v19, %v524_v18 }
  0x3c   : > { %353 = vrot.lane.b32.xlu1 %v963_v14, %s834_s11  ;;  %v1046_v23 = vadd.f32 %v527_v21, %v523_v20 }
  0x3e   : > { %351 = vrot.lane.b32.xlu0 %v945_v52, %s834_s11 }
  0x40   : > { %445 = vrot.lane.b32.xlu1 %v988_v29, %s833_s10 }
  0x42   : > { %443 = vrot.lane.b32.xlu0 %v1006_v45, %s833_s10 }
  0x44   : > { %538 = vrot.lane.b32.xlu1 %v1042_v22, %s832_s6 }
  0x46   : > { %536 = vrot.lane.b32.xlu0 %v1046_v23, %s832_s6  ;;  %s774_s6 = scalar_lea.vmem %s773_s5, 512 }
  0x47   : > { %p776_p1 = scmp.lt.s32.totalorder %s774_s6, %s768_s30 }
  0x48   : > { %275 = vrot.lane.b32.xlu1 %v954_v5, %s834_s11 }
  0x49   : > { %p777_p2 = por %p776_p1, %p775_p0 }
  0x4a   : > { %273 = vrot.lane.b32.xlu0 %v936_v42, %s834_s11 }
  0x4b   : > { %p778_p3 = pnand %p777_p2, %p771_p13 }
  0x4c   : > { %361 = vrot.lane.b32.xlu1 %v963_v14, %s835_s17 }
  0x4e   : > { %359 = vrot.lane.b32.xlu0 %v945_v52, %s835_s17 }
  0x50   : > { %453 = vrot.lane.b32.xlu1 %v988_v29, %s834_s11 }
  0x52   : > { %451 = vrot.lane.b32.xlu0 %v1006_v45, %s834_s11 }
  0x54   : > { %546 = vrot.lane.b32.xlu1 %v1042_v22, %s833_s10 }
  0x56   : > { %544 = vrot.lane.b32.xlu0 %v1046_v23, %s833_s10 }
  0x58   : > { %283 = vrot.lane.b32.xlu1 %v954_v5, %s835_s17 }
  0x5a   : > { %281 = vrot.lane.b32.xlu0 %v936_v42, %s835_s17 }
  0x5c   : > { %461 = vrot.lane.b32.xlu1 %v988_v29, %s835_s17 }
  0x5e   : > { %459 = vrot.lane.b32.xlu0 %v1006_v45, %s835_s17 }
  0x60   : > { %554 = vrot.lane.b32.xlu1 %v1042_v22, %s834_s11 }
  0x62   : > { %552 = vrot.lane.b32.xlu0 %v1046_v23, %s834_s11 }
  0x64   : > { %382 = vrot.lane.b32.xlu1 %v379_v4, %s833_s10 }
  0x66   : > { %380 = vrot.lane.b32.xlu0 %v377_v6, %s833_s10 }
  0x68   : > { %562 = vrot.lane.b32.xlu1 %v1042_v22, %s835_s17 }
  0x6a   : > { %560 = vrot.lane.b32.xlu0 %v1046_v23, %s835_s17 }
  0x6c   : > { %483 = vrot.lane.b32.xlu1 %v480_v9, %s833_s10 }
  0x6e   : > { %481 = vrot.lane.b32.xlu0 %v478_v10, %s833_s10 }
  0x70   : > { %584 = vrot.lane.b32.xlu1 %v581_v13, %s833_s10 }
  0x72   : > { %582 = vrot.lane.b32.xlu0 %v579_v17, %s833_s10 }
  0x98   : > { %v258_v24 = vpop.permute.xlu1 %257 }
  0x99   : > { %v263_v3 = vadd.f32 %v258_v24, %v936_v42 }
  0x9a   : > { %v336_v25 = vpop.permute.xlu0 %335 }
  0x9b   : > { %v341_v57 = vadd.f32 %v336_v25, %v945_v52 }
  0x9e   : > { %v260_v26 = vpop.permute.xlu1 %259 }
  0x9f   : > { %v264_v61 = vadd.f32 %v260_v26, %v954_v5 }
  0xa0   : > { %v338_v27 = vpop.permute.xlu0 %337 }
  0xa1   : > { %v342_v56 = vadd.f32 %v338_v27, %v963_v14 }
  0xa2   : > { %v346_v28 = vpop.permute.xlu1 %345 }
  0xa3   : > { %v350_v59 = vadd.f32 %v346_v28, %v342_v56 }
  0xa4   : > { %v344_v30 = vpop.permute.xlu0 %343 }
  0xa5   : > { %v349_v62 = vadd.f32 %v344_v30, %v341_v57 }
  0xa6   : > { %v438_v31 = vpop.permute.xlu1 %437 }
  0xa7   : > { %v442_v60 = vadd.f32 %v438_v31, %v988_v29 }
  0xa8   : > { %v436_v32 = vpop.permute.xlu0 %435 }
  0xa9   : > { %v441_v0 = vadd.f32 %v436_v32, %v1006_v45 }
  0xaa   : > { %v268_v33 = vpop.permute.xlu1 %267 }
  0xab   : > { %v272_v4 = vadd.f32 %v268_v33, %v264_v61 }
  0xac   : > { %v266_v34 = vpop.permute.xlu0 %265 }
  0xad   : > { %v271_v29 = vadd.f32 %v266_v34, %v263_v3 }
  0xae   : > { %v354_v35 = vpop.permute.xlu1 %353 }
  0xaf   : > { %v358_v1 = vadd.f32 %v354_v35, %v350_v59 }
  0xb0   : > { %v352_v36 = vpop.permute.xlu0 %351 }
  0xb1   : > { %v357_v6 = vadd.f32 %v352_v36, %v349_v62 }
  0xb2   : > { %v446_v37 = vpop.permute.xlu1 %445 }
  0xb3   : > { %v450_v2 = vadd.f32 %v446_v37, %v442_v60 }
  0xb4   : > { %v444_v38 = vpop.permute.xlu0 %443 }
  0xb5   : > { %v449_v14 = vadd.f32 %v444_v38, %v441_v0 }
  0xb6   : > { %v539_v39 = vpop.permute.xlu1 %538 }
  0xb7   : > { %v543_v52 = vadd.f32 %v539_v39, %v1042_v22 }
  0xb8   : > { %v537_v40 = vpop.permute.xlu0 %536 }
  0xb9   : > { %v542_v12 = vadd.f32 %v537_v40, %v1046_v23 }
  0xba   : > { %v276_v41 = vpop.permute.xlu1 %275 }
  0xbb   : > { %v280_v10 = vadd.f32 %v276_v41, %v272_v4 }
  0xbc   : > { %v274_v43 = vpop.permute.xlu0 %273 }
  0xbd   : > { %v279_v42 = vadd.f32 %v274_v43, %v271_v29 }
  0xbe   : > { %v362_v44 = vpop.permute.xlu1 %361 }
  0xbf   : > { %v366_v8 = vadd.f32 %v362_v44, %v358_v1 }
  0xc0   : > { %v360_v46 = vpop.permute.xlu0 %359 }
  0xc1   : > { %v365_v5 = vadd.f32 %v360_v46, %v357_v6  ;;  %v368_v18 = vmul.f32 0.04, %v366_v8 }
  0xc2   : > { %v454_v47 = vpop.permute.xlu1 %453 }
  0xc3   : > { %v458_v9 = vadd.f32 %v454_v47, %v450_v2  ;;  %v367_v22 = vmul.f32 0.04, %v365_v5 }
  0xc4   : > { %v452_v48 = vpop.permute.xlu0 %451 }
  0xc5   : > { %v457_v45 = vadd.f32 %v452_v48, %v449_v14 }
  0xc6   : > { %v547_v49 = vpop.permute.xlu1 %546 }
  0xc7   : > { %v551_v13 = vadd.f32 %v547_v49, %v543_v52 }
  0xc8   : > { %v545_v50 = vpop.permute.xlu0 %544 }
  0xc9   : > { %v550_v19 = vadd.f32 %v545_v50, %v542_v12 }
  0xca   : > { %v284_v51 = vpop.permute.xlu1 %283 }
  0xcb   : > { %v288_v16 = vadd.f32 %v284_v51, %v280_v10 }
  0xcc   : > { %v282_v53 = vpop.permute.xlu0 %281 }
  0xcd   : > { %v287_v24 = vadd.f32 %v282_v53, %v279_v42  ;;  %v290_v23 = vmul.f32 0.04, %v288_v16 }
  0xce   : > { %v462_v54 = vpop.permute.xlu1 %461 }
  0xcf   : > { %v466_v15 = vadd.f32 %v462_v54, %v458_v9  ;;  %v289_v37 = vmul.f32 0.04, %v287_v24 }
  0xd0   : > { %v460_v55 = vpop.permute.xlu0 %459 }
  0xd1   : > { %v465_v20 = vadd.f32 %v460_v55, %v457_v45  ;;  %v468_v26 = vmul.f32 0.04, %v466_v15 }
  0xd2   : > { %v555_v58 = vpop.permute.xlu1 %554 }
  0xd3   : > { %v559_v21 = vadd.f32 %v555_v58, %v551_v13  ;;  %v467_v32 = vmul.f32 0.04, %v465_v20 }
  0xd4   : > { %v553_v63 = vpop.permute.xlu0 %552 }
  0xd5   : > { %v558_v27 = vadd.f32 %v553_v63, %v550_v19 }
  0xd6   : > { %v383_v7 = vpop.permute.xlu1 %382 }
  0xd7   : > { %v387_v28 = vmul.f32 %v383_v7, %v368_v18 }
  0xd8   : > { %v381_v11 = vpop.permute.xlu0 %380 }
  0xd9   : > { %v386_v33 = vmul.f32 %v381_v11, %v367_v22  ;;  %v389_v38 = vadd.f32 %v387_v28, %v290_v23 }
  0xda   : > { %v563_v17 = vpop.permute.xlu1 %562 }
  0xdb   : > { %v567_v30 = vadd.f32 %v563_v17, %v559_v21  ;;  %v388_v43 = vadd.f32 %v386_v33, %v289_v37 }
  0xdc   : > { %v561_v25 = vpop.permute.xlu0 %560 }
  0xdd   : > { %v566_v34 = vadd.f32 %v561_v25, %v558_v27  ;;  %v569_v39 = vmul.f32 0.04, %v567_v30 }
  0xde   : > { %v484_v31 = vpop.permute.xlu1 %483 }
  0xdf   : > { %v488_v35 = vmul.f32 %v484_v31, %v468_v26  ;;  %v568_v44 = vmul.f32 0.04, %v566_v34 }
  0xe0   : > { %v482_v36 = vpop.permute.xlu0 %481 }
  0xe1   : > { %v487_v40 = vmul.f32 %v482_v36, %v467_v32  ;;  %v490_v46 = vadd.f32 %v488_v35, %v389_v38 }
  0xe2   : > { %v585_v41 = vpop.permute.xlu1 %584 }
  0xe3   : > { %v589_v47 = vmul.f32 %v585_v41, %v569_v39  ;;  %v489_v49 = vadd.f32 %v487_v40, %v388_v43 }
  0xe4   : > { %v583_v48 = vpop.permute.xlu0 %582 }
  0xe5   : > { %v591_v50 = vadd.f32 %v589_v47, %v490_v46  ;;  %v588_v51 = vmul.f32 %v583_v48, %v568_v44 }
  0xe7   : > { %594 = vst.msk [vmem:[%s193_s24 + $0x8] sm:$0xff] %vm592_vm4, %v591_v50  ;;  %v590_v53 = vadd.f32 %v588_v51, %v489_v49 }
  0xe9   : > { %593 = vst.msk [vmem:[%s193_s24] sm:$0xff] %vm592_vm4, %v590_v53 }
  0xea   : > { %781 = shalt.err (!%p778_p3)
}
  0xeb   : > { %s782_s7 = scalar_lea.hbm %s1091_s29, 256  ;;  %s786_s10 = scalar_lea.hbm %s1141_s3, 512 }
  0xec   : > { %p783_p4 = scmp.ne.s32.totalorder %s1091_s29, %s782_s7  ;;  %p787_p9 = scmp.lt.u32.totalorder %s1091_s29, %s1141_s3 }
  0xed   : > { %p788_p10 = scmp.lt.u32.totalorder %s786_s10, %s782_s7  ;;  %p790_p12 = scmp.lt.u32.totalorder %s782_s7, %s1091_s29 }
  0xee   : > { %p784_p7 = pnand %p783_p4, %p897_p5 }
  0xef   : > { %p789_p11 = por %p788_p10, %p787_p9 }
  0xf0   : > { %p785_p8 = pneg %p784_p7 }
  0xf1   : > { %p791_p13 = por %p790_p12, %p789_p11 }
  0xf3   : > { %p792_p0 = pnand %p791_p13, %p785_p8 }
  0xf5   : > { %795 = shalt.err (!%p792_p0)
}
  0xf6   : > { %s837_s19 = smov 128   ;;  %s838_s20 = smov 8  }
  0xf7   : > { %723 = dma.vmem_to_hbm [thread:$0]  (%p897_p5), %s1093_s25, 256, %s1091_s29, %s1097_s16, %s837_s19, %s837_s19, %s838_s20  }
  0xf8 PF: > { %p729_p1 = scmp.ge.s32.totalorder %s830_s15, 2  ;;  %s624_s24 = sand.u32 1, %s818_s12  }
  0xf9   : > { %s625_s26 = scalar_lea.sflag [#allocation3], %s624_s24 }
  0xfa   : > { %p726_p2 = pnand %p729_p1, %p901_p6 }
  0xfc   : > { %813 = dma.done.wait (!%p726_p2), %s625_s26, 256  }
  0xfd   : > { %815 = vsyncadd (!%p726_p2), %s625_s26, 4294967040  ;;  %p13_p3 = scmp.ge.s32.totalorder %s884_s18, 4   ;;  %s1144_s12 = smov %s822_s13 }
  0xfe   : > { %s1145_s13 = smov %s826_s14  ;;  %s1146_s14 = smov %s895_s21 }
  0xff   : > { %s1147_s15 = smov %s884_s18  ;;  %15 = sbr.rel (!%p13_p3) target bundleno = 3 (0x3), region = 77 }
 0x106   :  { %630 = vsyncpa [#allocation3], 1 }
 0x107   :  { %632 = vsyncpa [#allocation3 + $0x1], 1 }

// kernel: color_guided_filter.3
= control target key start
LH: loop header
LB: loop body
LE: loop exit
PB: predicated region body
PF: predicated region fallthrough
CT: control target
= control target key end

     0   :  { %s1601_s18 = smov 0   ;;  %s2346_s0 = inlined_call_operand.vmem [shape: f32[2,3,20,128], index: 0, kind: input, shape index: {}]   ;;  %s2347_s1 = inlined_call_operand.vmem [shape: f32[2,1,20,128], index: 1, kind: input, shape index: {}]   ;;  %s2348_s2 = inlined_call_operand.vmem [shape: f32[2,3,16,128], index: 2, kind: output, shape index: {0}]   ;;  %s2349_s3 = inlined_call_operand.vmem [shape: f32[2,1,16,128], index: 3, kind: output, shape index: {1}]   ;;  %s2350_s4 = inlined_call_operand.vmem [shape: f32[2,3,16,128], index: 4, kind: output, shape index: {2}]   ;;  %s2351_s5 = inlined_call_operand.vmem [shape: f32[2,6,16,128], index: 5, kind: output, shape index: {3}]  }
   0x1 LB: > { %s1504_s19 = sadd.s32 4294967295, %s1565_s18   ;;  %p1508_p0 = scmp.ge.s32.totalorder %s1565_s18, 1  ;;  %s1565_s18 = sphi %s1601_s18, %s16_s18  }
   0x2   : > { %p204_p1 = scmp.lt.s32.totalorder %s1565_s18, 3 }
   0x4   : > { %p205_p2 = pnand %p1508_p0, %p204_p1 }
   0x5   : > { %p252_p3 = scmp.lt.s32.totalorder (!%p205_p2), %s1504_s19, 1  ;;  %vm299_vm0 = vcmask (!%p205_p2), 1046528   ;;  %vm309_vm1 = vcmask (!%p205_p2), 1045504   ;;  %vm319_vm2 = vcmask (!%p205_p2), 1044480   ;;  %vm329_vm3 = vcmask (!%p205_p2), 1043456   ;;  %s1567_s24 = smov (!%p205_p2), 126  }
   0x6   : > { %208 = sbr.rel (%p205_p2) target bundleno = 353 (0x161), region = 28  ;;  %s1568_s25 = smov (!%p205_p2), 127   ;;  %vm375_vm4 = vcmask (!%p205_p2), 130048  }
   0x7   : > { %s1569_s26 = smov (!%p205_p2), 125   ;;  %s1570_s27 = smov (!%p205_p2), 124  }
   0xd   : > { %s2353_s19 = smov (!%p252_p3, %s1504_s19), 1 }
   0xe   : > { %s1543_s20 = smul.u32 72, %s2353_s19  ;;  %s1542_s11 = sshll.u32 %s2353_s19, 4 }
   0xf   : > { %s1544_s28 = smul.u32 24, %s2353_s19  ;;  %s271_s14 = scalar_lea.vmem %s2349_s3, %s1542_s11 }
  0x10   : > { %s1615_s23 = scalar_lea.vmem %s2346_s0, %s1543_s20  ;;  %s1545_s7 = smul.u32 48, %s2353_s19 }
  0x11   : > { %v1618_v0 = vld [vmem:[%s1615_s23] sm:$0xff]  ;;  %v1621_v1 = vld [vmem:[%s1615_s23 + $0x8] sm:$0xff]  ;;  %v1624_v2 = vld [vmem:[%s1615_s23 + $0x10] sm:$0xf]  ;;  %s261_s6 = scalar_lea.vmem %s2347_s1, %s1544_s28  ;;  %s1546_s20 = smul.u32 96, %s2353_s19 }
  0x12   : > { %v300_v3 = vrot.slane %v1618_v0, 1  ;;  %v301_v4 = vrot.slane %v1621_v1, 1  ;;  %v310_v5 = vrot.slane %v1618_v0, 2  ;;  %v311_v6 = vrot.slane %v1621_v1, 2  ;;  %v1635_v11 = vld [vmem:[%s1615_s23 + $0x20] sm:$0xff]  ;;  %v1656_v29 = vld [vmem:[%s1615_s23 + $0x18] sm:$0xff]  ;;  %s2120_s10 = scalar_lea.vmem %s2348_s2, %s1545_s7  ;;  %s2267_s17 = scalar_lea.vmem %s2350_s4, %s1545_s7 }
  0x13   : > { %v320_v7 = vrot.slane %v1618_v0, 3  ;;  %v321_v8 = vrot.slane %v1621_v1, 3  ;;  %v330_v9 = vrot.slane %v1618_v0, 4  ;;  %v331_v10 = vrot.slane %v1621_v1, 4  ;;  %v1642_v16 = vld [vmem:[%s1615_s23 + $0x28] sm:$0xf] }
  0x14   : > { %v302_v12 = vsel %vm299_vm0, %v300_v3, %v301_v4  ;;  %v312_v13 = vsel %vm309_vm1, %v310_v5, %v311_v6  ;;  %v303_v14 = vrot.slane %v1624_v2, 1  ;;  %v313_v15 = vrot.slane %v1624_v2, 2  ;;  %v1690_v56 = vld [vmem:[%s1615_s23 + $0x38] sm:$0xff]  ;;  %v1693_v57 = vld [vmem:[%s1615_s23 + $0x40] sm:$0xf]  ;;  %v1696_v58 = vld [vmem:[%s1615_s23 + $0x30] sm:$0xff]  ;;  %s2307_s23 = scalar_lea.vmem %s2351_s5, %s1546_s20 }
  0x15   : > { %v307_v17 = vadd.f32 %v302_v12, %v1618_v0  ;;  %v322_v18 = vsel %vm319_vm2, %v320_v7, %v321_v8  ;;  %v323_v19 = vrot.slane %v1624_v2, 3  ;;  %v333_v22 = vrot.slane %v1624_v2, 4 }
  0x16   : > { %v304_v20 = vsel %vm299_vm0, %v301_v4, %v303_v14  ;;  %v314_v21 = vsel %vm309_vm1, %v311_v6, %v313_v15  ;;  %v382_v23 = vrot.slane %v1635_v11, 1  ;;  %v384_v26 = vrot.slane %v1642_v16, 1 }
  0x17   : > { %v317_v24 = vadd.f32 %v312_v13, %v307_v17  ;;  %v308_v25 = vadd.f32 %v304_v20, %v1621_v1  ;;  %v332_v27 = vsel %vm329_vm3, %v330_v9, %v331_v10  ;;  %v324_v28 = vsel %vm319_vm2, %v321_v8, %v323_v19 }
  0x18   : > { %v334_v32 = vsel %vm329_vm3, %v331_v10, %v333_v22  ;;  %v385_v33 = vsel %vm299_vm0, %v382_v23, %v384_v26  ;;  %v391_v34 = vrot.slane %v1635_v11, 2  ;;  %v393_v35 = vrot.slane %v1642_v16, 2 }
  0x19   : > { %v327_v30 = vadd.f32 %v322_v18, %v317_v24  ;;  %v318_v31 = vadd.f32 %v314_v21, %v308_v25  ;;  %v381_v38 = vrot.slane %v1656_v29, 1  ;;  %v400_v39 = vrot.slane %v1635_v11, 3 }
  0x1a   : > { %v390_v40 = vrot.slane %v1656_v29, 2  ;;  %v389_v42 = vadd.f32 %v1635_v11, %v385_v33  ;;  %v402_v43 = vrot.slane %v1642_v16, 3  ;;  %v394_v45 = vsel %vm309_vm1, %v391_v34, %v393_v35 }
  0x1b   : > { %v1662_v36 = vadd.f32 %v332_v27, %v327_v30  ;;  %v328_v37 = vadd.f32 %v324_v28, %v318_v31  ;;  %v383_v44 = vsel %vm299_vm0, %v381_v38, %v382_v23  ;;  %v399_v48 = vrot.slane %v1656_v29, 3  ;;  %v1744_v28 = vld [vmem:[%s261_s6 + $0x8] sm:$0xff]  ;;  %v1746_v30 = vld [vmem:[%s261_s6 + $0x10] sm:$0xf]  ;;  %v1748_v31 = vld [vmem:[%s261_s6] sm:$0xff] }
  0x1c   : > { %v388_v46 = vadd.f32 %v1656_v29, %v383_v44  ;;  %v392_v47 = vsel %vm309_vm1, %v390_v40, %v391_v34  ;;  %v398_v49 = vadd.f32 %v394_v45, %v389_v42  ;;  %v409_v50 = vrot.slane %v1635_v11, 4 }
  0x1d   : > { %349 = vrot.lane.b32.xlu1 %v1662_v36, %s1567_s24  ;;  %341 = vrot.lane.b32.xlu0 %v1662_v36, %s1568_s25  ;;  %v1671_v41 = vadd.f32 %v334_v32, %v328_v37  ;;  %v411_v51 = vrot.slane %v1642_v16, 4  ;;  %v403_v53 = vsel %vm319_vm2, %v400_v39, %v402_v43  ;;  %v401_v54 = vsel %vm319_vm2, %v399_v48, %v400_v39 }
  0x1e   : > { %v397_v52 = vadd.f32 %v392_v47, %v388_v46  ;;  %v408_v55 = vrot.slane %v1656_v29, 4  ;;  %v407_v59 = vadd.f32 %v403_v53, %v398_v49  ;;  %v460_v63 = vrot.slane %v1690_v56, 1 }
  0x1f   : > { %v412_v60 = vsel %vm329_vm3, %v409_v50, %v411_v51  ;;  %v462_v3 = vrot.slane %v1693_v57, 1  ;;  %v459_v4 = vrot.slane %v1696_v58, 1  ;;  %v469_v7 = vrot.slane %v1690_v56, 2 }
  0x20   : > { %v406_v61 = vadd.f32 %v401_v54, %v397_v52  ;;  %v410_v62 = vsel %vm329_vm3, %v408_v55, %v409_v50  ;;  %v1711_v5 = vadd.f32 %v412_v60, %v407_v59  ;;  %v471_v9 = vrot.slane %v1693_v57, 2 }
  0x21   : > { %351 = vrot.lane.b32.xlu1 %v1671_v41, %s1567_s24  ;;  %343 = vrot.lane.b32.xlu0 %v1671_v41, %s1568_s25  ;;  %v463_v8 = vsel %vm299_vm0, %v460_v63, %v462_v3  ;;  %v461_v10 = vsel %vm299_vm0, %v459_v4, %v460_v63  ;;  %v468_v12 = vrot.slane %v1696_v58, 2  ;;  %v478_v14 = vrot.slane %v1690_v56, 3 }
  0x22   : > { %v1713_v6 = vadd.f32 %v410_v62, %v406_v61  ;;  %v467_v13 = vadd.f32 %v1690_v56, %v463_v8  ;;  %v466_v15 = vadd.f32 %v1696_v58, %v461_v10  ;;  %v472_v17 = vsel %vm309_vm1, %v469_v7, %v471_v9 }
  0x23   : > { %v480_v18 = vrot.slane %v1693_v57, 3  ;;  %v470_v19 = vsel %vm309_vm1, %v468_v12, %v469_v7  ;;  %v477_v20 = vrot.slane %v1696_v58, 3  ;;  %v487_v22 = vrot.slane %v1690_v56, 4 }
  0x24   : > { %v476_v21 = vadd.f32 %v472_v17, %v467_v13  ;;  %v489_v23 = vrot.slane %v1693_v57, 4  ;;  %v475_v24 = vadd.f32 %v470_v19, %v466_v15  ;;  %v486_v27 = vrot.slane %v1696_v58, 4 }
  0x25   : > { %359 = vrot.lane.b32.xlu1 %v1671_v41, %s1569_s26  ;;  %357 = vrot.lane.b32.xlu0 %v1662_v36, %s1569_s26  ;;  %v481_v25 = vsel %vm319_vm2, %v478_v14, %v480_v18  ;;  %v479_v26 = vsel %vm319_vm2, %v477_v20, %v478_v14  ;;  %v538_v37 = vrot.slane %v1744_v28, 1  ;;  %v540_v38 = vrot.slane %v1746_v30, 1 }
  0x26   : > { %v485_v32 = vadd.f32 %v481_v25, %v476_v21  ;;  %v490_v33 = vsel %vm329_vm3, %v487_v22, %v489_v23  ;;  %v484_v34 = vadd.f32 %v479_v26, %v475_v24  ;;  %v488_v35 = vsel %vm329_vm3, %v486_v27, %v487_v22 }
  0x27   : > { %v537_v39 = vrot.slane %v1748_v31, 1  ;;  %v547_v43 = vrot.slane %v1744_v28, 2  ;;  %v541_v44 = vsel %vm299_vm0, %v538_v37, %v540_v38  ;;  %v549_v45 = vrot.slane %v1746_v30, 2 }
  0x28   : > { %v1763_v40 = vadd.f32 %v490_v33, %v485_v32  ;;  %v1765_v42 = vadd.f32 %v488_v35, %v484_v34  ;;  %v546_v47 = vrot.slane %v1748_v31, 2  ;;  %v556_v48 = vrot.slane %v1744_v28, 3 }
  0x29   : > { %367 = vrot.lane.b32.xlu1 %v1671_v41, %s1570_s27  ;;  %365 = vrot.lane.b32.xlu0 %v1662_v36, %s1570_s27  ;;  %v539_v46 = vsel %vm299_vm0, %v537_v39, %v538_v37  ;;  %v558_v49 = vrot.slane %v1746_v30, 3  ;;  %v545_v50 = vadd.f32 %v541_v44, %v1744_v28  ;;  %v550_v52 = vsel %vm309_vm1, %v547_v43, %v549_v45 }
  0x2a   : > { %v544_v51 = vadd.f32 %v539_v46, %v1748_v31  ;;  %v548_v53 = vsel %vm309_vm1, %v546_v47, %v547_v43  ;;  %v555_v54 = vrot.slane %v1748_v31, 3  ;;  %v565_v59 = vrot.slane %v1744_v28, 4 }
  0x2b   : > { %v559_v55 = vsel %vm319_vm2, %v556_v48, %v558_v49  ;;  %v554_v60 = vadd.f32 %v550_v52, %v545_v50  ;;  %v567_v61 = vrot.slane %v1746_v30, 4  ;;  %v564_v63 = vrot.slane %v1748_v31, 4 }
  0x2c   : > { %v553_v62 = vadd.f32 %v548_v53, %v544_v51  ;;  %v557_v3 = vsel %vm319_vm2, %v555_v54, %v556_v48  ;;  %v612_v4 = vmul.f32 %v1744_v28, %v1621_v1  ;;  %v613_v7 = vmul.f32 %v1746_v30, %v1624_v2 }
  0x2d   : > { %421 = vrot.lane.b32.xlu1 %v1711_v5, %s1568_s25  ;;  %419 = vrot.lane.b32.xlu0 %v1713_v6, %s1568_s25  ;;  %v611_v8 = vmul.f32 %v1748_v31, %v1618_v0  ;;  %v563_v9 = vadd.f32 %v559_v55, %v554_v60  ;;  %v568_v10 = vsel %vm329_vm3, %v565_v59, %v567_v61 }
  0x2e   : > { %v562_v12 = vadd.f32 %v557_v3, %v553_v62  ;;  %v566_v13 = vsel %vm329_vm3, %v564_v63, %v565_v59  ;;  %v618_v14 = vrot.slane %v612_v4, 1  ;;  %v620_v15 = vrot.slane %v613_v7, 1 }
  0x2f   : > { %v617_v17 = vrot.slane %v611_v8, 1  ;;  %v1808_v18 = vadd.f32 %v568_v10, %v563_v9  ;;  %v627_v20 = vrot.slane %v612_v4, 2  ;;  %v629_v22 = vrot.slane %v613_v7, 2 }
  0x30   : > { %v1810_v19 = vadd.f32 %v566_v13, %v562_v12  ;;  %v621_v21 = vsel %vm299_vm0, %v618_v14, %v620_v15  ;;  %v626_v24 = vrot.slane %v611_v8, 2  ;;  %v636_v26 = vrot.slane %v612_v4, 3 }
  0x31   : > { %429 = vrot.lane.b32.xlu1 %v1711_v5, %s1567_s24  ;;  %427 = vrot.lane.b32.xlu0 %v1713_v6, %s1567_s24  ;;  %v619_v23 = vsel %vm299_vm0, %v617_v17, %v618_v14  ;;  %v625_v25 = vadd.f32 %v621_v21, %v612_v4  ;;  %v630_v32 = vsel %vm309_vm1, %v627_v20, %v629_v22  ;;  %v638_v33 = vrot.slane %v613_v7, 3 }
  0x32   : > { %v624_v27 = vadd.f32 %v619_v23, %v611_v8  ;;  %v628_v34 = vsel %vm309_vm1, %v626_v24, %v627_v20  ;;  %v635_v35 = vrot.slane %v611_v8, 3  ;;  %v645_v37 = vrot.slane %v612_v4, 4 }
  0x33   : > { %v692_v38 = vmul.f32 %v1635_v11, %v1744_v28  ;;  %v634_v39 = vadd.f32 %v630_v32, %v625_v25  ;;  %v647_v43 = vrot.slane %v613_v7, 4  ;;  %v693_v45 = vmul.f32 %v1642_v16, %v1746_v30 }
  0x34   : > { %v633_v44 = vadd.f32 %v628_v34, %v624_v27  ;;  %v639_v46 = vsel %vm319_vm2, %v636_v26, %v638_v33  ;;  %v637_v47 = vsel %vm319_vm2, %v635_v35, %v636_v26  ;;  %v644_v48 = vrot.slane %v611_v8, 4 }
  0x35   : > { %437 = vrot.lane.b32.xlu1 %v1711_v5, %s1569_s26  ;;  %435 = vrot.lane.b32.xlu0 %v1713_v6, %s1569_s26  ;;  %v691_v49 = vmul.f32 %v1656_v29, %v1748_v31  ;;  %v643_v50 = vadd.f32 %v639_v46, %v634_v39  ;;  %v648_v51 = vsel %vm329_vm3, %v645_v37, %v647_v43  ;;  %v698_v54 = vrot.slane %v692_v38, 1 }
  0x36   : > { %v642_v52 = vadd.f32 %v637_v47, %v633_v44  ;;  %v646_v53 = vsel %vm329_vm3, %v644_v48, %v645_v37  ;;  %v700_v55 = vrot.slane %v693_v45, 1  ;;  %v707_v62 = vrot.slane %v692_v38, 2 }
  0x37   : > { %v697_v59 = vrot.slane %v691_v49, 1  ;;  %v1842_v60 = vadd.f32 %v648_v51, %v643_v50  ;;  %v709_v3 = vrot.slane %v693_v45, 2  ;;  %v706_v7 = vrot.slane %v691_v49, 2 }
  0x38   : > { %v1844_v61 = vadd.f32 %v646_v53, %v642_v52  ;;  %v701_v63 = vsel %vm299_vm0, %v698_v54, %v700_v55  ;;  %v716_v9 = vrot.slane %v692_v38, 3  ;;  %v718_v10 = vrot.slane %v693_v45, 3 }
  0x39   : > { %445 = vrot.lane.b32.xlu1 %v1711_v5, %s1570_s27  ;;  %443 = vrot.lane.b32.xlu0 %v1713_v6, %s1570_s27  ;;  %v699_v4 = vsel %vm299_vm0, %v697_v59, %v698_v54  ;;  %v705_v8 = vadd.f32 %v701_v63, %v692_v38  ;;  %v710_v13 = vsel %vm309_vm1, %v707_v62, %v709_v3  ;;  %v715_v15 = vrot.slane %v691_v49, 3 }
  0x3a   : > { %v704_v12 = vadd.f32 %v699_v4, %v691_v49  ;;  %v708_v14 = vsel %vm309_vm1, %v706_v7, %v707_v62  ;;  %v725_v17 = vrot.slane %v692_v38, 4  ;;  %v727_v20 = vrot.slane %v693_v45, 4 }
  0x3b   : > { %v714_v21 = vadd.f32 %v710_v13, %v705_v8  ;;  %v719_v22 = vsel %vm319_vm2, %v716_v9, %v718_v10  ;;  %v724_v24 = vrot.slane %v691_v49, 4  ;;  %v717_v25 = vsel %vm319_vm2, %v715_v15, %v716_v9 }
  0x3c   : > { %v713_v23 = vadd.f32 %v708_v14, %v704_v12  ;;  %v773_v26 = vmul.f32 %v1690_v56, %v1744_v28  ;;  %v774_v27 = vmul.f32 %v1693_v57, %v1746_v30  ;;  %v772_v32 = vmul.f32 %v1696_v58, %v1748_v31 }
  0x3d   : > { %499 = vrot.lane.b32.xlu1 %v1763_v40, %s1568_s25  ;;  %497 = vrot.lane.b32.xlu0 %v1765_v42, %s1568_s25  ;;  %v723_v33 = vadd.f32 %v719_v22, %v714_v21  ;;  %v728_v34 = vsel %vm329_vm3, %v725_v17, %v727_v20  ;;  %v726_v37 = vsel %vm329_vm3, %v724_v24, %v725_v17 }
  0x3e   : > { %v722_v35 = vadd.f32 %v717_v25, %v713_v23  ;;  %v779_v38 = vrot.slane %v773_v26, 1  ;;  %v781_v28 = vrot.slane %v774_v27, 1  ;;  %v778_v39 = vrot.slane %v772_v32, 1 }
  0x3f   : > { %v1876_v30 = vadd.f32 %v728_v34, %v723_v33  ;;  %v788_v43 = vrot.slane %v773_v26, 2  ;;  %v790_v45 = vrot.slane %v774_v27, 2  ;;  %v787_v47 = vrot.slane %v772_v32, 2 }
  0x40   : > { %v1878_v31 = vadd.f32 %v726_v37, %v722_v35  ;;  %v782_v44 = vsel %vm299_vm0, %v779_v38, %v781_v28  ;;  %v780_v46 = vsel %vm299_vm0, %v778_v39, %v779_v38  ;;  %v1884_v48 = vmul.f32 %v1621_v1, %v1621_v1 }
  0x41   : > { %507 = vrot.lane.b32.xlu1 %v1763_v40, %s1567_s24  ;;  %505 = vrot.lane.b32.xlu0 %v1765_v42, %s1567_s24  ;;  %v855_v49 = vmul.f32 %v1624_v2, %v1624_v2  ;;  %v786_v50 = vadd.f32 %v782_v44, %v773_v26  ;;  %v797_v51 = vrot.slane %v773_v26, 3  ;;  %v785_v52 = vadd.f32 %v780_v46, %v772_v32 }
  0x42   : > { %v791_v53 = vsel %vm309_vm1, %v788_v43, %v790_v45  ;;  %v799_v54 = vrot.slane %v774_v27, 3  ;;  %v789_v55 = vsel %vm309_vm1, %v787_v47, %v788_v43  ;;  %v796_v59 = vrot.slane %v772_v32, 3 }
  0x43   : > { %v860_v62 = vrot.slane %v1884_v48, 1  ;;  %v862_v63 = vrot.slane %v855_v49, 1  ;;  %v795_v3 = vadd.f32 %v791_v53, %v786_v50  ;;  %v806_v4 = vrot.slane %v773_v26, 4 }
  0x44   : > { %v808_v7 = vrot.slane %v774_v27, 4  ;;  %v794_v8 = vadd.f32 %v789_v55, %v785_v52  ;;  %v800_v9 = vsel %vm319_vm2, %v797_v51, %v799_v54  ;;  %v798_v10 = vsel %vm319_vm2, %v796_v59, %v797_v51 }
  0x45   : > { %515 = vrot.lane.b32.xlu1 %v1763_v40, %s1569_s26  ;;  %513 = vrot.lane.b32.xlu0 %v1765_v42, %s1569_s26  ;;  %v805_v12 = vrot.slane %v772_v32, 4  ;;  %v1903_v13 = vmul.f32 %v1618_v0, %v1618_v0  ;;  %v863_v14 = vsel %vm299_vm0, %v860_v62, %v862_v63  ;;  %v869_v15 = vrot.slane %v1884_v48, 2 }
  0x46   : > { %v871_v17 = vrot.slane %v855_v49, 2  ;;  %v804_v20 = vadd.f32 %v800_v9, %v795_v3  ;;  %v803_v21 = vadd.f32 %v798_v10, %v794_v8  ;;  %v809_v22 = vsel %vm329_vm3, %v806_v4, %v808_v7 }
  0x47   : > { %v807_v23 = vsel %vm329_vm3, %v805_v12, %v806_v4  ;;  %v859_v24 = vrot.slane %v1903_v13, 1  ;;  %v867_v25 = vadd.f32 %v863_v14, %v1884_v48  ;;  %v878_v26 = vrot.slane %v1884_v48, 3 }
  0x48   : > { %v872_v27 = vsel %vm309_vm1, %v869_v15, %v871_v17  ;;  %v880_v32 = vrot.slane %v855_v49, 3  ;;  %v1919_v33 = vmul.f32 %v1635_v11, %v1621_v1  ;;  %v1923_v34 = vmul.f32 %v1642_v16, %v1624_v2 }
  0x49   : > { %523 = vrot.lane.b32.xlu1 %v1763_v40, %s1570_s27  ;;  %521 = vrot.lane.b32.xlu0 %v1765_v42, %s1570_s27  ;;  %v1929_v35 = vadd.f32 %v809_v22, %v804_v20  ;;  %v1931_v37 = vadd.f32 %v807_v23, %v803_v21  ;;  %v861_v38 = vsel %vm299_vm0, %v859_v24, %v860_v62  ;;  %v868_v28 = vrot.slane %v1903_v13, 2 }
  0x4a   : > { %v876_v39 = vadd.f32 %v872_v27, %v867_v25  ;;  %v887_v43 = vrot.slane %v1884_v48, 4  ;;  %v889_v44 = vrot.slane %v855_v49, 4  ;;  %v881_v45 = vsel %vm319_vm2, %v878_v26, %v880_v32 }
  0x4b   : > { %v940_v46 = vrot.slane %v1919_v33, 1  ;;  %v942_v47 = vrot.slane %v1923_v34, 1  ;;  %v1941_v50 = vmul.f32 %v1656_v29, %v1618_v0  ;;  %v866_v51 = vadd.f32 %v861_v38, %v1903_v13 }
  0x4c   : > { %v877_v48 = vrot.slane %v1903_v13, 3  ;;  %v870_v49 = vsel %vm309_vm1, %v868_v28, %v869_v15  ;;  %v1952_v52 = vmul.f32 %v1690_v56, %v1621_v1  ;;  %v1956_v53 = vmul.f32 %v1693_v57, %v1624_v2 }
  0x4d   : > { %577 = vrot.lane.b32.xlu1 %v1808_v18, %s1568_s25  ;;  %575 = vrot.lane.b32.xlu0 %v1810_v19, %s1568_s25  ;;  %v1960_v54 = vmul.f32 %v1696_v58, %v1618_v0  ;;  %v885_v55 = vadd.f32 %v881_v45, %v876_v39  ;;  %v890_v59 = vsel %vm329_vm3, %v887_v43, %v889_v44  ;;  %v949_v63 = vrot.slane %v1919_v33, 2 }
  0x4e   : > { %v943_v62 = vsel %vm299_vm0, %v940_v46, %v942_v47  ;;  %v951_v3 = vrot.slane %v1923_v34, 2  ;;  %v939_v1 = vrot.slane %v1941_v50, 1  ;;  %v875_v2 = vadd.f32 %v870_v49, %v866_v51 }
  0x4f   : > { %v886_v0 = vrot.slane %v1903_v13, 4  ;;  %v879_v4 = vsel %vm319_vm2, %v877_v48, %v878_v26  ;;  %v1021_v7 = vrot.slane %v1952_v52, 1  ;;  %v1023_v8 = vrot.slane %v1956_v53, 1 }
  0x50   : > { %v1020_v9 = vrot.slane %v1960_v54, 1  ;;  %v1976_v10 = vadd.f32 %v890_v59, %v885_v55  ;;  %v947_v12 = vadd.f32 %v943_v62, %v1919_v33  ;;  %v958_v14 = vrot.slane %v1919_v33, 3 }
  0x51   : > { %585 = vrot.lane.b32.xlu1 %v1808_v18, %s1567_s24  ;;  %583 = vrot.lane.b32.xlu0 %v1810_v19, %s1567_s24  ;;  %v952_v15 = vsel %vm309_vm1, %v949_v63, %v951_v3  ;;  %v960_v17 = vrot.slane %v1923_v34, 3  ;;  %v941_v13 = vsel %vm299_vm0, %v939_v1, %v940_v46  ;;  %v948_v20 = vrot.slane %v1941_v50, 2 }
  0x52   : > { %v884_v21 = vadd.f32 %v879_v4, %v875_v2  ;;  %v888_v22 = vsel %vm329_vm3, %v886_v0, %v887_v43  ;;  %v967_v23 = vrot.slane %v1919_v33, 4  ;;  %v1030_v24 = vrot.slane %v1952_v52, 2 }
  0x53   : > { %v1024_v25 = vsel %vm299_vm0, %v1021_v7, %v1023_v8  ;;  %v1032_v26 = vrot.slane %v1956_v53, 2  ;;  %v1022_v27 = vsel %vm299_vm0, %v1020_v9, %v1021_v7  ;;  %v1029_v32 = vrot.slane %v1960_v54, 2 }
  0x54   : > { %v956_v38 = vadd.f32 %v952_v15, %v947_v12  ;;  %v969_v28 = vrot.slane %v1923_v34, 4  ;;  %v946_v39 = vadd.f32 %v941_v13, %v1941_v50  ;;  %v957_v44 = vrot.slane %v1941_v50, 3 }
  0x55   : > { %593 = vrot.lane.b32.xlu1 %v1808_v18, %s1569_s26  ;;  %591 = vrot.lane.b32.xlu0 %v1810_v19, %s1569_s26  ;;  %v961_v43 = vsel %vm319_vm2, %v958_v14, %v960_v17  ;;  %v950_v33 = vsel %vm309_vm1, %v948_v20, %v949_v63  ;;  %v2002_v45 = vmul.f32 %v1635_v11, %v1635_v11  ;;  %v1039_v51 = vrot.slane %v1952_v52, 3 }
  0x56   : > { %v2006_v46 = vmul.f32 %v1642_v16, %v1642_v16  ;;  %v2012_v34 = vadd.f32 %v888_v22, %v884_v21  ;;  %v1028_v47 = vadd.f32 %v1024_v25, %v1952_v52  ;;  %v1027_v48 = vadd.f32 %v1022_v27, %v1960_v54 }
  0x57   : > { %v1033_v49 = vsel %vm309_vm1, %v1030_v24, %v1032_v26  ;;  %v1041_v55 = vrot.slane %v1956_v53, 3  ;;  %v1031_v59 = vsel %vm309_vm1, %v1029_v32, %v1030_v24  ;;  %v1038_v62 = vrot.slane %v1960_v54, 3 }
  0x58   : > { %v965_v63 = vadd.f32 %v961_v43, %v956_v38  ;;  %v955_v3 = vadd.f32 %v950_v33, %v946_v39  ;;  %v959_v1 = vsel %vm319_vm2, %v957_v44, %v958_v14  ;;  %v966_v2 = vrot.slane %v1941_v50, 4 }
  0x59   : > { %601 = vrot.lane.b32.xlu1 %v1808_v18, %s1570_s27  ;;  %599 = vrot.lane.b32.xlu0 %v1810_v19, %s1570_s27  ;;  %v1048_v0 = vrot.slane %v1952_v52, 4  ;;  %v1050_v4 = vrot.slane %v1956_v53, 4  ;;  %v1102_v7 = vrot.slane %v2002_v45, 1  ;;  %v1104_v8 = vrot.slane %v2006_v46, 1 }
  0x5a   : > { %v970_v9 = vsel %vm329_vm3, %v967_v23, %v969_v28  ;;  %v1037_v12 = vadd.f32 %v1033_v49, %v1028_v47  ;;  %v1036_v14 = vadd.f32 %v1031_v59, %v1027_v48  ;;  %v1042_v50 = vsel %vm319_vm2, %v1039_v51, %v1041_v55 }
  0x5b   : > { %v1040_v52 = vsel %vm319_vm2, %v1038_v62, %v1039_v51  ;;  %v1047_v53 = vrot.slane %v1960_v54, 4  ;;  %v2037_v15 = vmul.f32 %v1656_v29, %v1656_v29  ;;  %v964_v20 = vadd.f32 %v959_v1, %v955_v3 }
  0x5c   : > { %v2039_v21 = vadd.f32 %v970_v9, %v965_v63  ;;  %v968_v22 = vsel %vm329_vm3, %v966_v2, %v967_v23  ;;  %v1051_v24 = vsel %vm329_vm3, %v1048_v0, %v1050_v4  ;;  %v1105_v25 = vsel %vm299_vm0, %v1102_v7, %v1104_v8 }
  0x5d   : > { %657 = vrot.lane.b32.xlu1 %v1842_v60, %s1568_s25  ;;  %655 = vrot.lane.b32.xlu0 %v1844_v61, %s1568_s25  ;;  %v1046_v54 = vadd.f32 %v1042_v50, %v1037_v12  ;;  %v1045_v26 = vadd.f32 %v1040_v52, %v1036_v14  ;;  %v1111_v27 = vrot.slane %v2002_v45, 2  ;;  %v1113_v32 = vrot.slane %v2006_v46, 2 }
  0x5e   : > { %v1049_v38 = vsel %vm329_vm3, %v1047_v53, %v1048_v0  ;;  %v1120_v23 = vrot.slane %v2002_v45, 3  ;;  %v1122_v28 = vrot.slane %v2006_v46, 3  ;;  %v1101_v39 = vrot.slane %v2037_v15, 1 }
  0x5f   : > { %v2054_v33 = vadd.f32 %v968_v22, %v964_v20  ;;  %v1109_v47 = vadd.f32 %v1105_v25, %v2002_v45  ;;  %v1129_v51 = vrot.slane %v2002_v45, 4  ;;  %v1131_v48 = vrot.slane %v2006_v46, 4 }
  0x60   : > { %v2063_v59 = vmul.f32 %v1690_v56, %v1635_v11  ;;  %v2067_v62 = vmul.f32 %v1693_v57, %v1642_v16  ;;  %v2073_v45 = vadd.f32 %v1051_v24, %v1046_v54  ;;  %v2075_v46 = vadd.f32 %v1049_v38, %v1045_v26 }
  0x61   : > { %665 = vrot.lane.b32.xlu1 %v1842_v60, %s1567_s24  ;;  %663 = vrot.lane.b32.xlu0 %v1844_v61, %s1567_s24  ;;  %v1123_v11 = vsel %vm319_vm2, %v1120_v23, %v1122_v28  ;;  %v1103_v63 = vsel %vm299_vm0, %v1101_v39, %v1102_v7  ;;  %v2082_v16 = vmul.f32 %v1696_v58, %v1656_v29  ;;  %v1110_v0 = vrot.slane %v2037_v15, 2 }
  0x62   : > { %v1132_v2 = vsel %vm329_vm3, %v1129_v51, %v1131_v48  ;;  %v1119_v4 = vrot.slane %v2037_v15, 3  ;;  %v1128_v8 = vrot.slane %v2037_v15, 4  ;;  %v1183_v14 = vrot.slane %v2063_v59, 1 }
  0x63   : > { %v1185_v7 = vrot.slane %v2067_v62, 1  ;;  %v1108_v29 = vadd.f32 %v1103_v63, %v2037_v15  ;;  %v2098_v50 = vmul.f32 %v1690_v56, %v1690_v56  ;;  %v2102_v52 = vmul.f32 %v1693_v57, %v1693_v57 }
  0x64   : > { %v2107_v20 = vmul.f32 %v1696_v58, %v1696_v58  ;;  %v1112_v15 = vsel %vm309_vm1, %v1110_v0, %v1111_v27  ;;  %v1121_v56 = vsel %vm319_vm2, %v1119_v4, %v1120_v23  ;;  %v1130_v25 = vsel %vm329_vm3, %v1128_v8, %v1129_v51 }
  0x65   : > { %673 = vrot.lane.b32.xlu1 %v1842_v60, %s1569_s26  ;;  %671 = vrot.lane.b32.xlu0 %v1844_v61, %s1569_s26  ;;  %v1192_v54 = vrot.slane %v2063_v59, 2  ;;  %v1194_v38 = vrot.slane %v2067_v62, 2  ;;  %v1264_v23 = vrot.slane %v2098_v50, 1  ;;  %v1266_v28 = vrot.slane %v2102_v52, 1 }
  0x66   : > { %v1200_v63 = vrot.slane %v2082_v16, 3 }
  0x67   : > { %v1267_v8 = vsel %vm299_vm0, %v1264_v23, %v1266_v28 }
  0x69   : > { %681 = vrot.lane.b32.xlu1 %v1842_v60, %s1570_s27  ;;  %679 = vrot.lane.b32.xlu0 %v1844_v61, %s1570_s27 }
  0x6d   : > { %737 = vrot.lane.b32.xlu1 %v1876_v30, %s1568_s25  ;;  %735 = vrot.lane.b32.xlu0 %v1878_v31, %s1568_s25 }
  0x71   : > { %745 = vrot.lane.b32.xlu1 %v1876_v30, %s1567_s24  ;;  %743 = vrot.lane.b32.xlu0 %v1878_v31, %s1567_s24 }
  0x75   : > { %753 = vrot.lane.b32.xlu1 %v1876_v30, %s1569_s26  ;;  %751 = vrot.lane.b32.xlu0 %v1878_v31, %s1569_s26 }
  0x79   : > { %761 = vrot.lane.b32.xlu1 %v1876_v30, %s1570_s27  ;;  %759 = vrot.lane.b32.xlu0 %v1878_v31, %s1570_s27 }
  0x7d   : > { %818 = vrot.lane.b32.xlu1 %v1929_v35, %s1568_s25  ;;  %816 = vrot.lane.b32.xlu0 %v1931_v37, %s1568_s25 }
  0x81   : > { %826 = vrot.lane.b32.xlu1 %v1929_v35, %s1567_s24  ;;  %824 = vrot.lane.b32.xlu0 %v1931_v37, %s1567_s24 }
  0x85   : > { %834 = vrot.lane.b32.xlu1 %v1929_v35, %s1569_s26  ;;  %832 = vrot.lane.b32.xlu0 %v1931_v37, %s1569_s26 }
  0x89   : > { %842 = vrot.lane.b32.xlu1 %v1929_v35, %s1570_s27  ;;  %840 = vrot.lane.b32.xlu0 %v1931_v37, %s1570_s27 }
  0x8d   : > { %899 = vrot.lane.b32.xlu1 %v1976_v10, %s1568_s25  ;;  %897 = vrot.lane.b32.xlu0 %v2012_v34, %s1568_s25 }
  0x8f   : > { %v350_v17 = vpop.permute.xlu1 %349  ;;  %v342_v13 = vpop.permute.xlu0 %341 }
  0x90   : > { %v347_v49 = vadd.f32 %v342_v13, %v1662_v36  ;;  %v1114_v36 = vsel %vm309_vm1, %v1111_v27, %v1113_v32  ;;  %v1182_v13 = vrot.slane %v2082_v16, 1  ;;  %v1186_v32 = vsel %vm299_vm0, %v1183_v14, %v1185_v7 }
  0x91   : > { %907 = vrot.lane.b32.xlu1 %v1976_v10, %s1567_s24  ;;  %905 = vrot.lane.b32.xlu0 %v2012_v34, %s1567_s24  ;;  %v1118_v12 = vadd.f32 %v1114_v36, %v1109_v47  ;;  %v1191_v27 = vrot.slane %v2082_v16, 2  ;;  %v1263_v47 = vrot.slane %v2107_v20, 1  ;;  %v1201_v36 = vrot.slane %v2063_v59, 3 }
  0x92   : > { %v355_v9 = vadd.f32 %v350_v17, %v347_v49  ;;  %v1117_v49 = vadd.f32 %v1112_v15, %v1108_v29  ;;  %v1272_v7 = vrot.slane %v2107_v20, 2 }
  0x93   : > { %v352_v44 = vpop.permute.xlu1 %351  ;;  %v344_v43 = vpop.permute.xlu0 %343  ;;  %v1127_v58 = vadd.f32 %v1123_v11, %v1118_v12  ;;  %v1195_v11 = vsel %vm309_vm1, %v1192_v54, %v1194_v38  ;;  %v1193_v12 = vsel %vm309_vm1, %v1191_v27, %v1192_v54  ;;  %v1202_v15 = vsel %vm319_vm2, %v1200_v63, %v1201_v36 }
  0x94   : > { %v348_v55 = vadd.f32 %v344_v43, %v1671_v41  ;;  %v1184_v43 = vsel %vm299_vm0, %v1182_v13, %v1183_v14  ;;  %v1265_v14 = vsel %vm299_vm0, %v1263_v47, %v1264_v23  ;;  %v1290_v63 = vrot.slane %v2107_v20, 4 }
  0x95   : > { %915 = vrot.lane.b32.xlu1 %v1976_v10, %s1569_s26  ;;  %913 = vrot.lane.b32.xlu0 %v2012_v34, %s1569_s26  ;;  %v2146_v0 = vadd.f32 %v1132_v2, %v1127_v58  ;;  %v1189_v4 = vadd.f32 %v1184_v43, %v2082_v16  ;;  %v1209_v2 = vrot.slane %v2082_v16, 4  ;;  %v1270_v16 = vadd.f32 %v1265_v14, %v2107_v20 }
  0x96   : > { %v356_v41 = vadd.f32 %v352_v44, %v348_v55  ;;  %v1190_v55 = vadd.f32 %v1186_v32, %v2063_v59  ;;  %v1281_v58 = vrot.slane %v2107_v20, 3 }
  0x97   : > { %v360_v3 = vpop.permute.xlu1 %359  ;;  %v358_v1 = vpop.permute.xlu0 %357 }
  0x98   : > { %v364_v53 = vadd.f32 %v360_v3, %v356_v41  ;;  %v363_v17 = vadd.f32 %v358_v1, %v355_v9  ;;  %v1203_v41 = vrot.slane %v2067_v62, 3  ;;  %v1273_v3 = vrot.slane %v2098_v50, 2 }
  0x99   : > { %923 = vrot.lane.b32.xlu1 %v1976_v10, %s1570_s27  ;;  %921 = vrot.lane.b32.xlu0 %v2012_v34, %s1570_s27  ;;  %v1275_v1 = vrot.slane %v2102_v52, 2  ;;  %v1210_v9 = vrot.slane %v2063_v59, 4  ;;  %v1199_v13 = vadd.f32 %v1195_v11, %v1190_v55  ;;  %v1271_v59 = vadd.f32 %v1267_v8, %v2098_v50 }
  0x9a   : > { %v1274_v38 = vsel %vm309_vm1, %v1272_v7, %v1273_v3 }
  0x9b   : > { %v368_v22 = vpop.permute.xlu1 %367  ;;  %v366_v24 = vpop.permute.xlu0 %365  ;;  %v1276_v54 = vsel %vm309_vm1, %v1273_v3, %v1275_v1  ;;  %v1211_v43 = vsel %vm329_vm3, %v1209_v2, %v1210_v9 }
  0x9c   : > { %v372_v57 = vadd.f32 %v368_v22, %v364_v53  ;;  %v371_v26 = vadd.f32 %v366_v24, %v363_v17  ;;  %v1126_v17 = vadd.f32 %v1121_v56, %v1117_v49  ;;  %v1212_v22 = vrot.slane %v2067_v62, 4 }
  0x9d   : > { %979 = vrot.lane.b32.xlu1 %v2039_v21, %s1568_s25  ;;  %977 = vrot.lane.b32.xlu0 %v2054_v33, %s1568_s25  ;;  %v1204_v24 = vsel %vm319_vm2, %v1201_v36, %v1203_v41  ;;  %v1198_v56 = vadd.f32 %v1193_v12, %v1189_v4  ;;  %v1284_v62 = vrot.slane %v2102_v52, 3  ;;  %v1280_v55 = vadd.f32 %v1276_v54, %v1271_v59 }
  0x9e   : > { %v374_v39 = vmul.f32 0.04, %v372_v57  ;;  %v373_v44 = vmul.f32 0.04, %v371_v26  ;;  %v1282_v57 = vrot.slane %v2098_v50, 3  ;;  %v2171_v28 = vadd.f32 %v1130_v25, %v1126_v17 }
  0x9f   : > { %v422_v51 = vpop.permute.xlu1 %421  ;;  %v420_v48 = vpop.permute.xlu0 %419 }
  0xa0   : > { %377 = vst.msk [vmem:[%s2120_s10 + $0x8] sm:$0xff] %vm375_vm4, %v374_v39  ;;  %376 = vst.msk [vmem:[%s2120_s10] sm:$0xff] %vm375_vm4, %v373_v44  ;;  %v426_v26 = vadd.f32 %v422_v51, %v1711_v5  ;;  %v425_v32 = vadd.f32 %v420_v48, %v1713_v6  ;;  %v1208_v39 = vadd.f32 %v1204_v24, %v1199_v13  ;;  %v1291_v5 = vrot.slane %v2098_v50, 4 }
  0xa1   : > { %987 = vrot.lane.b32.xlu1 %v2039_v21, %s1567_s24  ;;  %985 = vrot.lane.b32.xlu0 %v2054_v33, %s1567_s24  ;;  %v1213_v44 = vsel %vm329_vm3, %v1210_v9, %v1212_v22  ;;  %v1207_v6 = vadd.f32 %v1202_v15, %v1198_v56  ;;  %v1285_v25 = vsel %vm319_vm2, %v1282_v57, %v1284_v62  ;;  %v1293_v51 = vrot.slane %v2102_v52, 4 }
  0xa2   : > { %v1279_v48 = vadd.f32 %v1274_v38, %v1270_v16  ;;  %v1283_v11 = vsel %vm319_vm2, %v1281_v58, %v1282_v57  ;;  %v2184_v8 = vadd.f32 %v1213_v44, %v1208_v39  ;;  %v1289_v9 = vadd.f32 %v1285_v25, %v1280_v55 }
  0xa3   : > { %v430_v29 = vpop.permute.xlu1 %429  ;;  %v428_v53 = vpop.permute.xlu0 %427  ;;  %v2190_v52 = vadd.f32 %v1211_v43, %v1207_v6  ;;  %v1294_v7 = vsel %vm329_vm3, %v1291_v5, %v1293_v51 }
  0xa4   : > { %v434_v47 = vadd.f32 %v430_v29, %v426_v26  ;;  %v433_v49 = vadd.f32 %v428_v53, %v425_v32  ;;  %v1288_v12 = vadd.f32 %v1283_v11, %v1279_v48  ;;  %v1292_v29 = vsel %vm329_vm3, %v1290_v63, %v1291_v5 }
  0xa5   : > { %995 = vrot.lane.b32.xlu1 %v2039_v21, %s1569_s26  ;;  %993 = vrot.lane.b32.xlu0 %v2054_v33, %s1569_s26  ;;  %v2202_v13 = vadd.f32 %v1294_v7, %v1289_v9 }
  0xa6   : > { %v2204_v22 = vadd.f32 %v1292_v29, %v1288_v12 }
  0xa7   : > { %v438_v27 = vpop.permute.xlu1 %437  ;;  %v436_v23 = vpop.permute.xlu0 %435 }
  0xa8   : > { %v442_v36 = vadd.f32 %v438_v27, %v434_v47  ;;  %v441_v41 = vadd.f32 %v436_v23, %v433_v49 }
  0xa9   : > { %1060 = vrot.lane.b32.xlu1 %v2073_v45, %s1568_s25  ;;  %1058 = vrot.lane.b32.xlu0 %v2075_v46, %s1568_s25 }
  0xab   : > { %v446_v3 = vpop.permute.xlu1 %445  ;;  %v444_v50 = vpop.permute.xlu0 %443 }
  0xac   : > { %v450_v1 = vadd.f32 %v446_v3, %v442_v36  ;;  %v449_v4 = vadd.f32 %v444_v50, %v441_v41 }
  0xad   : > { %1141 = vrot.lane.b32.xlu1 %v2146_v0, %s1568_s25  ;;  %1139 = vrot.lane.b32.xlu0 %v2171_v28, %s1568_s25 }
  0xae   : > { %v452_v14 = vmul.f32 0.04, %v450_v1  ;;  %v451_v20 = vmul.f32 0.04, %v449_v4 }
  0xaf   : > { %v500_v53 = vpop.permute.xlu1 %499  ;;  %v498_v17 = vpop.permute.xlu0 %497 }
  0xb0   : > { %1523 = vst.msk [vmem:[%s2120_s10 + $0x18] sm:$0xff] %vm375_vm4, %v452_v14  ;;  %1522 = vst.msk [vmem:[%s2120_s10 + $0x10] sm:$0xff] %vm375_vm4, %v451_v20  ;;  %v504_v15 = vadd.f32 %v500_v53, %v1763_v40  ;;  %v503_v59 = vadd.f32 %v498_v17, %v1765_v42 }
  0xb1   : > { %1222 = vrot.lane.b32.xlu1 %v2184_v8, %s1568_s25  ;;  %1220 = vrot.lane.b32.xlu0 %v2190_v52, %s1568_s25 }
  0xb3   : > { %v508_v2 = vpop.permute.xlu1 %507  ;;  %v506_v24 = vpop.permute.xlu0 %505 }
  0xb4   : > { %v512_v57 = vadd.f32 %v508_v2, %v504_v15  ;;  %v511_v62 = vadd.f32 %v506_v24, %v503_v59 }
  0xb5   : > { %1303 = vrot.lane.b32.xlu1 %v2202_v13, %s1568_s25  ;;  %1301 = vrot.lane.b32.xlu0 %v2204_v22, %s1568_s25 }
  0xb7   : > { %v516_v54 = vpop.permute.xlu1 %515  ;;  %v514_v56 = vpop.permute.xlu0 %513 }
  0xb8   : > { %v520_v16 = vadd.f32 %v516_v54, %v512_v57  ;;  %v519_v26 = vadd.f32 %v514_v56, %v511_v62 }
  0xb9   : > { %1068 = vrot.lane.b32.xlu1 %v2073_v45, %s1567_s24  ;;  %1066 = vrot.lane.b32.xlu0 %v2075_v46, %s1567_s24 }
  0xbb   : > { %v524_v32 = vpop.permute.xlu1 %523  ;;  %v522_v38 = vpop.permute.xlu0 %521 }
  0xbc   : > { %v528_v58 = vadd.f32 %v524_v32, %v520_v16  ;;  %v527_v40 = vadd.f32 %v522_v38, %v519_v26 }
  0xbd   : > { %1149 = vrot.lane.b32.xlu1 %v2146_v0, %s1567_s24  ;;  %1147 = vrot.lane.b32.xlu0 %v2171_v28, %s1567_s24 }
  0xbe   : > { %v530_v42 = vmul.f32 0.04, %v528_v58  ;;  %v529_v27 = vmul.f32 0.04, %v527_v40 }
  0xbf   : > { %v578_v23 = vpop.permute.xlu1 %577  ;;  %v576_v39 = vpop.permute.xlu0 %575 }
  0xc0   : > { %1525 = vst.msk [vmem:[%s2120_s10 + $0x28] sm:$0xff] %vm375_vm4, %v530_v42  ;;  %1524 = vst.msk [vmem:[%s2120_s10 + $0x20] sm:$0xff] %vm375_vm4, %v529_v27  ;;  %v582_v47 = vadd.f32 %v578_v23, %v1808_v18  ;;  %v581_v49 = vadd.f32 %v576_v39, %v1810_v19 }
  0xc1   : > { %1230 = vrot.lane.b32.xlu1 %v2184_v8, %s1567_s24  ;;  %1228 = vrot.lane.b32.xlu0 %v2190_v52, %s1567_s24 }
  0xc3   : > { %v586_v44 = vpop.permute.xlu1 %585  ;;  %v584_v43 = vpop.permute.xlu0 %583 }
  0xc4   : > { %v590_v6 = vadd.f32 %v586_v44, %v582_v47  ;;  %v589_v25 = vadd.f32 %v584_v43, %v581_v49 }
  0xc5   : > { %1311 = vrot.lane.b32.xlu1 %v2202_v13, %s1567_s24  ;;  %1309 = vrot.lane.b32.xlu0 %v2204_v22, %s1567_s24 }
  0xc7   : > { %v594_v55 = vpop.permute.xlu1 %593  ;;  %v592_v5 = vpop.permute.xlu0 %591 }
  0xc8   : > { %v598_v51 = vadd.f32 %v594_v55, %v590_v6  ;;  %v597_v48 = vadd.f32 %v592_v5, %v589_v25 }
  0xc9   : > { %1076 = vrot.lane.b32.xlu1 %v2073_v45, %s1569_s26  ;;  %1074 = vrot.lane.b32.xlu0 %v2075_v46, %s1569_s26 }
  0xcb   : > { %v602_v36 = vpop.permute.xlu1 %601  ;;  %v600_v41 = vpop.permute.xlu0 %599 }
  0xcc   : > { %v606_v11 = vadd.f32 %v602_v36, %v598_v51  ;;  %v605_v63 = vadd.f32 %v600_v41, %v597_v48 }
  0xcd   : > { %1157 = vrot.lane.b32.xlu1 %v2146_v0, %s1569_s26  ;;  %1155 = vrot.lane.b32.xlu0 %v2171_v28, %s1569_s26 }
  0xce   : > { %v608_v18 = vmul.f32 0.04, %v606_v11  ;;  %v607_v19 = vmul.f32 0.04, %v605_v63 }
  0xcf   : > { %v658_v3 = vpop.permute.xlu1 %657  ;;  %v656_v50 = vpop.permute.xlu0 %655 }
  0xd0   : > { %610 = vst.msk [vmem:[%s271_s14 + $0x8] sm:$0xff] %vm375_vm4, %v608_v18  ;;  %609 = vst.msk [vmem:[%s271_s14] sm:$0xff] %vm375_vm4, %v607_v19  ;;  %v662_v9 = vadd.f32 %v658_v3, %v1842_v60  ;;  %v661_v12 = vadd.f32 %v656_v50, %v1844_v61 }
  0xd1   : > { %1238 = vrot.lane.b32.xlu1 %v2184_v8, %s1569_s26  ;;  %1236 = vrot.lane.b32.xlu0 %v2190_v52, %s1569_s26 }
  0xd3   : > { %v666_v1 = vpop.permute.xlu1 %665  ;;  %v664_v4 = vpop.permute.xlu0 %663 }
  0xd4   : > { %v670_v7 = vadd.f32 %v666_v1, %v662_v9  ;;  %v669_v29 = vadd.f32 %v664_v4, %v661_v12 }
  0xd5   : > { %1319 = vrot.lane.b32.xlu1 %v2202_v13, %s1569_s26  ;;  %1317 = vrot.lane.b32.xlu0 %v2204_v22, %s1569_s26 }
  0xd7   : > { %v674_v14 = vpop.permute.xlu1 %673  ;;  %v672_v20 = vpop.permute.xlu0 %671 }
  0xd8   : > { %v678_v53 = vadd.f32 %v674_v14, %v670_v7  ;;  %v677_v17 = vadd.f32 %v672_v20, %v669_v29 }
  0xd9   : > { %1003 = vrot.lane.b32.xlu1 %v2039_v21, %s1570_s27  ;;  %1001 = vrot.lane.b32.xlu0 %v2054_v33, %s1570_s27 }
  0xdb   : > { %v682_v2 = vpop.permute.xlu1 %681  ;;  %v680_v24 = vpop.permute.xlu0 %679 }
  0xdc   : > { %v686_v15 = vadd.f32 %v682_v2, %v678_v53  ;;  %v685_v59 = vadd.f32 %v680_v24, %v677_v17 }
  0xdd   : > { %1084 = vrot.lane.b32.xlu1 %v2073_v45, %s1570_s27  ;;  %1082 = vrot.lane.b32.xlu0 %v2075_v46, %s1570_s27 }
  0xde   : > { %v688_v60 = vmul.f32 0.04, %v686_v15  ;;  %v687_v61 = vmul.f32 0.04, %v685_v59 }
  0xdf   : > { %v738_v54 = vpop.permute.xlu1 %737  ;;  %v736_v56 = vpop.permute.xlu0 %735 }
  0xe0   : > { %690 = vst.msk [vmem:[%s2267_s17 + $0x8] sm:$0xff] %vm375_vm4, %v688_v60  ;;  %689 = vst.msk [vmem:[%s2267_s17] sm:$0xff] %vm375_vm4, %v687_v61  ;;  %v742_v16 = vadd.f32 %v738_v54, %v1876_v30  ;;  %v741_v26 = vadd.f32 %v736_v56, %v1878_v31 }
  0xe1   : > { %1165 = vrot.lane.b32.xlu1 %v2146_v0, %s1570_s27  ;;  %1163 = vrot.lane.b32.xlu0 %v2171_v28, %s1570_s27 }
  0xe3   : > { %v746_v57 = vpop.permute.xlu1 %745  ;;  %v744_v62 = vpop.permute.xlu0 %743 }
  0xe4   : > { %v750_v58 = vadd.f32 %v746_v57, %v742_v16  ;;  %v749_v40 = vadd.f32 %v744_v62, %v741_v26 }
  0xe5   : > { %1246 = vrot.lane.b32.xlu1 %v2184_v8, %s1570_s27  ;;  %1244 = vrot.lane.b32.xlu0 %v2190_v52, %s1570_s27 }
  0xe7   : > { %v754_v32 = vpop.permute.xlu1 %753  ;;  %v752_v38 = vpop.permute.xlu0 %751 }
  0xe8   : > { %v758_v42 = vadd.f32 %v754_v32, %v750_v58  ;;  %v757_v27 = vadd.f32 %v752_v38, %v749_v40 }
  0xe9   : > { %1327 = vrot.lane.b32.xlu1 %v2202_v13, %s1570_s27  ;;  %1325 = vrot.lane.b32.xlu0 %v2204_v22, %s1570_s27 }
  0xeb   : > { %v762_v23 = vpop.permute.xlu1 %761  ;;  %v760_v39 = vpop.permute.xlu0 %759 }
  0xec   : > { %v766_v44 = vadd.f32 %v762_v23, %v758_v42  ;;  %v765_v30 = vadd.f32 %v760_v39, %v757_v27 }
  0xee   : > { %v768_v43 = vmul.f32 0.04, %v766_v44  ;;  %v767_v31 = vmul.f32 0.04, %v765_v30 }
  0xef   : > { %v819_v47 = vpop.permute.xlu1 %818  ;;  %v817_v49 = vpop.permute.xlu0 %816 }
  0xf0   : > { %1527 = vst.msk [vmem:[%s2267_s17 + $0x18] sm:$0xff] %vm375_vm4, %v768_v43  ;;  %1526 = vst.msk [vmem:[%s2267_s17 + $0x10] sm:$0xff] %vm375_vm4, %v767_v31  ;;  %v823_v6 = vadd.f32 %v819_v47, %v1929_v35  ;;  %v822_v25 = vadd.f32 %v817_v49, %v1931_v37 }
  0xf3   : > { %v827_v55 = vpop.permute.xlu1 %826  ;;  %v825_v5 = vpop.permute.xlu0 %824 }
  0xf4   : > { %v831_v36 = vadd.f32 %v827_v55, %v823_v6  ;;  %v830_v41 = vadd.f32 %v825_v5, %v822_v25 }
  0xf7   : > { %v835_v51 = vpop.permute.xlu1 %834  ;;  %v833_v48 = vpop.permute.xlu0 %832 }
  0xf8   : > { %v839_v11 = vadd.f32 %v835_v51, %v831_v36  ;;  %v838_v63 = vadd.f32 %v833_v48, %v830_v41 }
  0xfb   : > { %v843_v18 = vpop.permute.xlu1 %842  ;;  %v841_v19 = vpop.permute.xlu0 %840 }
  0xfc   : > { %v847_v3 = vadd.f32 %v843_v18, %v839_v11  ;;  %v846_v50 = vadd.f32 %v841_v19, %v838_v63 }
  0xfe   : > { %v849_v1 = vmul.f32 0.04, %v847_v3  ;;  %v848_v4 = vmul.f32 0.04, %v846_v50 }
  0xff   : > { %v900_v9 = vpop.permute.xlu1 %899  ;;  %v898_v12 = vpop.permute.xlu0 %897 }
 0x100   : > { %1529 = vst.msk [vmem:[%s2267_s17 + $0x28] sm:$0xff] %vm375_vm4, %v849_v1  ;;  %1528 = vst.msk [vmem:[%s2267_s17 + $0x20] sm:$0xff] %vm375_vm4, %v848_v4  ;;  %v904_v14 = vadd.f32 %v900_v9, %v1976_v10  ;;  %v903_v20 = vadd.f32 %v898_v12, %v2012_v34 }
 0x103   : > { %v908_v35 = vpop.permute.xlu1 %907  ;;  %v906_v37 = vpop.permute.xlu0 %905 }
 0x104   : > { %v912_v53 = vadd.f32 %v908_v35, %v904_v14  ;;  %v911_v17 = vadd.f32 %v906_v37, %v903_v20 }
 0x107   : > { %v916_v7 = vpop.permute.xlu1 %915  ;;  %v914_v29 = vpop.permute.xlu0 %913 }
 0x108   : > { %v920_v2 = vadd.f32 %v916_v7, %v912_v53  ;;  %v919_v24 = vadd.f32 %v914_v29, %v911_v17 }
 0x10b   : > { %v924_v15 = vpop.permute.xlu1 %923  ;;  %v922_v59 = vpop.permute.xlu0 %921 }
 0x10c   : > { %v928_v60 = vadd.f32 %v924_v15, %v920_v2  ;;  %v927_v61 = vadd.f32 %v922_v59, %v919_v24 }
 0x10e   : > { %v930_v10 = vmul.f32 0.04, %v928_v60  ;;  %v929_v34 = vmul.f32 0.04, %v927_v61 }
 0x10f   : > { %v980_v54 = vpop.permute.xlu1 %979  ;;  %v978_v56 = vpop.permute.xlu0 %977 }
 0x110   : > { %932 = vst.msk [vmem:[%s2307_s23 + $0x8] sm:$0xff] %vm375_vm4, %v930_v10  ;;  %931 = vst.msk [vmem:[%s2307_s23] sm:$0xff] %vm375_vm4, %v929_v34  ;;  %v984_v11 = vadd.f32 %v980_v54, %v2039_v21  ;;  %v983_v63 = vadd.f32 %v978_v56, %v2054_v33 }
 0x113   : > { %v988_v57 = vpop.permute.xlu1 %987  ;;  %v986_v62 = vpop.permute.xlu0 %985 }
 0x114   : > { %v992_v3 = vadd.f32 %v988_v57, %v984_v11  ;;  %v991_v50 = vadd.f32 %v986_v62, %v983_v63 }
 0x117   : > { %v996_v16 = vpop.permute.xlu1 %995  ;;  %v994_v26 = vpop.permute.xlu0 %993 }
 0x118   : > { %v1000_v1 = vadd.f32 %v996_v16, %v992_v3  ;;  %v999_v4 = vadd.f32 %v994_v26, %v991_v50 }
 0x11b   : > { %v1061_v32 = vpop.permute.xlu1 %1060  ;;  %v1059_v38 = vpop.permute.xlu0 %1058 }
 0x11c   : > { %v1065_v9 = vadd.f32 %v1061_v32, %v2073_v45  ;;  %v1064_v12 = vadd.f32 %v1059_v38, %v2075_v46 }
 0x11f   : > { %v1142_v58 = vpop.permute.xlu1 %1141  ;;  %v1140_v40 = vpop.permute.xlu0 %1139 }
 0x120   : > { %v1146_v33 = vadd.f32 %v1142_v58, %v2146_v0  ;;  %v1145_v29 = vadd.f32 %v1140_v40, %v2171_v28 }
 0x123   : > { %v1223_v42 = vpop.permute.xlu1 %1222  ;;  %v1221_v27 = vpop.permute.xlu0 %1220 }
 0x124   : > { %v1227_v0 = vadd.f32 %v1223_v42, %v2184_v8  ;;  %v1226_v28 = vadd.f32 %v1221_v27, %v2190_v52 }
 0x127   : > { %v1304_v23 = vpop.permute.xlu1 %1303  ;;  %v1302_v39 = vpop.permute.xlu0 %1301 }
 0x128   : > { %v1308_v8 = vadd.f32 %v1304_v23, %v2202_v13  ;;  %v1307_v52 = vadd.f32 %v1302_v39, %v2204_v22 }
 0x12b   : > { %v1069_v44 = vpop.permute.xlu1 %1068  ;;  %v1067_v30 = vpop.permute.xlu0 %1066 }
 0x12c   : > { %v1073_v14 = vadd.f32 %v1069_v44, %v1065_v9  ;;  %v1072_v20 = vadd.f32 %v1067_v30, %v1064_v12 }
 0x12f   : > { %v1150_v43 = vpop.permute.xlu1 %1149  ;;  %v1148_v31 = vpop.permute.xlu0 %1147 }
 0x130   : > { %v1154_v59 = vadd.f32 %v1150_v43, %v1146_v33  ;;  %v1153_v46 = vadd.f32 %v1148_v31, %v1145_v29 }
 0x133   : > { %v1231_v47 = vpop.permute.xlu1 %1230  ;;  %v1229_v49 = vpop.permute.xlu0 %1228 }
 0x134   : > { %v1235_v16 = vadd.f32 %v1231_v47, %v1227_v0  ;;  %v1234_v26 = vadd.f32 %v1229_v49, %v1226_v28 }
 0x137   : > { %v1312_v55 = vpop.permute.xlu1 %1311  ;;  %v1310_v5 = vpop.permute.xlu0 %1309 }
 0x138   : > { %v1316_v43 = vadd.f32 %v1312_v55, %v1308_v8  ;;  %v1315_v31 = vadd.f32 %v1310_v5, %v1307_v52 }
 0x13b   : > { %v1077_v6 = vpop.permute.xlu1 %1076  ;;  %v1075_v25 = vpop.permute.xlu0 %1074 }
 0x13c   : > { %v1081_v53 = vadd.f32 %v1077_v6, %v1073_v14  ;;  %v1080_v17 = vadd.f32 %v1075_v25, %v1072_v20 }
 0x13f   : > { %v1158_v51 = vpop.permute.xlu1 %1157  ;;  %v1156_v48 = vpop.permute.xlu0 %1155 }
 0x140   : > { %v1162_v10 = vadd.f32 %v1158_v51, %v1154_v59  ;;  %v1161_v34 = vadd.f32 %v1156_v48, %v1153_v46 }
 0x143   : > { %v1239_v36 = vpop.permute.xlu1 %1238  ;;  %v1237_v41 = vpop.permute.xlu0 %1236 }
 0x144   : > { %v1243_v58 = vadd.f32 %v1239_v36, %v1235_v16  ;;  %v1242_v40 = vadd.f32 %v1237_v41, %v1234_v26 }
 0x147   : > { %v1320_v18 = vpop.permute.xlu1 %1319  ;;  %v1318_v19 = vpop.permute.xlu0 %1317 }
 0x148   : > { %v1324_v23 = vadd.f32 %v1320_v18, %v1316_v43  ;;  %v1323_v22 = vadd.f32 %v1318_v19, %v1315_v31 }
 0x14b   : > { %v1004_v35 = vpop.permute.xlu1 %1003  ;;  %v1002_v37 = vpop.permute.xlu0 %1001 }
 0x14c   : > { %v1008_v7 = vadd.f32 %v1004_v35, %v1000_v1  ;;  %v1007_v21 = vadd.f32 %v1002_v37, %v999_v4 }
 0x14e   : > { %v1010_v2 = vmul.f32 0.04, %v1008_v7  ;;  %v1009_v24 = vmul.f32 0.04, %v1007_v21 }
 0x14f   : > { %v1085_v15 = vpop.permute.xlu1 %1084  ;;  %v1083_v45 = vpop.permute.xlu0 %1082 }
 0x150   : > { %1531 = vst.msk [vmem:[%s2307_s23 + $0x18] sm:$0xff] %vm375_vm4, %v1010_v2  ;;  %1530 = vst.msk [vmem:[%s2307_s23 + $0x10] sm:$0xff] %vm375_vm4, %v1009_v24  ;;  %v1089_v60 = vadd.f32 %v1085_v15, %v1081_v53  ;;  %v1088_v61 = vadd.f32 %v1083_v45, %v1080_v17 }
 0x152   : > { %v1091_v54 = vmul.f32 0.04, %v1089_v60  ;;  %v1090_v56 = vmul.f32 0.04, %v1088_v61 }
 0x153   : > { %v1166_v57 = vpop.permute.xlu1 %1165  ;;  %v1164_v62 = vpop.permute.xlu0 %1163 }
 0x154   : > { %1533 = vst.msk [vmem:[%s2307_s23 + $0x28] sm:$0xff] %vm375_vm4, %v1091_v54  ;;  %1532 = vst.msk [vmem:[%s2307_s23 + $0x20] sm:$0xff] %vm375_vm4, %v1090_v56  ;;  %v1170_v32 = vadd.f32 %v1166_v57, %v1162_v10  ;;  %v1169_v38 = vadd.f32 %v1164_v62, %v1161_v34 }
 0x156   : > { %v1172_v42 = vmul.f32 0.04, %v1170_v32  ;;  %v1171_v27 = vmul.f32 0.04, %v1169_v38 }
 0x157   : > { %v1247_v44 = vpop.permute.xlu1 %1246  ;;  %v1245_v30 = vpop.permute.xlu0 %1244 }
 0x158   : > { %1535 = vst.msk [vmem:[%s2307_s23 + $0x38] sm:$0xff] %vm375_vm4, %v1172_v42  ;;  %1534 = vst.msk [vmem:[%s2307_s23 + $0x30] sm:$0xff] %vm375_vm4, %v1171_v27  ;;  %v1251_v47 = vadd.f32 %v1247_v44, %v1243_v58  ;;  %v1250_v13 = vadd.f32 %v1245_v30, %v1242_v40 }
 0x15a   : > { %v1253_v39 = vmul.f32 0.04, %v1251_v47  ;;  %v1252_v49 = vmul.f32 0.04, %v1250_v13 }
 0x15b   : > { %v1328_v6 = vpop.permute.xlu1 %1327  ;;  %v1326_v25 = vpop.permute.xlu0 %1325 }
 0x15c   : > { %1537 = vst.msk [vmem:[%s2307_s23 + $0x48] sm:$0xff] %vm375_vm4, %v1253_v39  ;;  %1536 = vst.msk [vmem:[%s2307_s23 + $0x40] sm:$0xff] %vm375_vm4, %v1252_v49  ;;  %v1332_v55 = vadd.f32 %v1328_v6, %v1324_v23  ;;  %v1331_v5 = vadd.f32 %v1326_v25, %v1323_v22 }
 0x15e   : > { %v1334_v51 = vmul.f32 0.04, %v1332_v55  ;;  %v1333_v48 = vmul.f32 0.04, %v1331_v5 }
 0x160   : > { %1539 = vst.msk [vmem:[%s2307_s23 + $0x58] sm:$0xff] %vm375_vm4, %v1334_v51  ;;  %1538 = vst.msk [vmem:[%s2307_s23 + $0x50] sm:$0xff] %vm375_vm4, %v1333_v48 }
 0x161 PF: > { %s16_s18 = sadd.s32 1, %s1565_s18  }
 0x162   : > { %p13_p4 = scmp.ge.s32.totalorder %s16_s18, 4  }
 0x164   :  { %15 = sbr.rel (!%p13_p4) target bundleno = 1 (0x1), region = 108 }

</bundles_post_ra>
